<compile_context>
chip_gen: v6e
topology: v6e:2x2x1
jax: 0.10.0
libtpu: 0.0.40
codegen_flags: <defaults>
</compile_context>

<pallas_src>
import numpy as np
import jax
import jax.numpy as jnp
from jax.experimental import pallas as pl
from jax.experimental.pallas import tpu as pltpu

# ---------------------------------------------------------------------------
# Synthetic configuration (mirrors LSTMGrammarCopyDecoder.__init__ arguments).
# ---------------------------------------------------------------------------
B = 2              # batch_size
L = 16             # source length
T = 8              # target length
E = 32             # source_encoding_dim
H = 32             # lstm_hidden_dim
R = 16             # rule_embedding_dim
NTE = 16           # nonterminal_embedding_dim
NUM_RULES = 24     # grammar.num_rules + 1
NUM_NT = 10        # grammar.num_non_terminals + 2
MAX_LINK = 3       # max_linked_rule_num
DIN = R + NTE + H  # decoder LSTM input dim
NUM_LSTM_LAYERS = 1
DROPOUT = 0.0
RULE_PAD = NUM_RULES - 1
NT_PAD = NUM_NT - 2
NT_END = NUM_NT - 1

NRP = 128          # rule axis padded to one full lane tile (lane-dense)
T_OUT = T - 1      # number of decode steps
NEG = -1e30        # finite "-inf" (mask-aware softmax, never NaN)

RULE_OFF = 128             # lane offset of the rule-score section in fused head
HEADS_W = RULE_OFF + NRP   # 256 fused-head columns (tile-aligned sections)


# ---------------------------------------------------------------------------
# Softmax helpers.
# ---------------------------------------------------------------------------
def _masked_softmax(x, mask):
    """Exact version (wrapper / reference)."""
    x = jnp.where(mask > 0, x, NEG)
    m = jnp.max(x, axis=-1, keepdims=True)
    e = jnp.exp(x - m)
    return e / jnp.sum(e, axis=-1, keepdims=True)


def _masked_softmax_fast(x, mask):
    """Kernel version: EUP approx reciprocal instead of an f32 divide."""
    x = jnp.where(mask > 0, x, NEG)
    m = jnp.max(x, axis=-1, keepdims=True)
    e = jnp.exp(x - m)
    return e * pl.reciprocal(jnp.sum(e, axis=-1, keepdims=True), approx=True)


def _get_loss(rule_probs, target_rules, target_mask):
    # rule_probs (B, T-1, NR); target_rules (B, T-1); target_mask (B, T-1)
    gathered = jnp.take_along_axis(rule_probs, target_rules[..., None], axis=-1)[..., 0]
    logp = jnp.log(gathered + 1e-10) * target_mask
    norm = target_mask.sum(-1)
    norm = jnp.where(norm == 0, 1.0, norm)
    per_example = logp.sum(-1) / norm
    return -(per_example.sum() / rule_probs.shape[0])


# ---------------------------------------------------------------------------
# Pallas kernel: ONE invocation runs the whole recurrence (statically unrolled).
# ---------------------------------------------------------------------------
def _decode_kernel(
    gates_x_ref,      # (T_OUT, B, 4H)   precomputed input projection of LSTM
    active_mask_ref,  # (T_OUT, B, NRP)  allowed-rule mask per step (padded)
    cond_ref,         # (T_OUT, B, 1)    allow-copy AND overlap condition
    enc_ref,          # (B, L, E)
    mask_ref,         # (B, L)
    copy_oh_ref,      # (B, L, NRP)
    w_kv_ref,         # (E, 2H)   fused key/value projection
    b_kv_ref,         # (1, 2H)
    w_gates_ref,      # (2H, 4H)  fused [w_ih_att ; w_hh] recurrent projection
    w_att_h_ref,      # (H, H)    rows of w_att acting on decoder output
    w_att_c_ref,      # (H, H)    rows of w_att acting on context
    b_att_ref,        # (1, H)
    w_heads_ref,      # (H, HEADS_W)  [tv | copy-gate | pad | rule-scores]
    b_heads_ref,      # (1, HEADS_W)
    out_ref,          # (T_OUT * B, NRP)  single dense store at the end
):
    f32 = jnp.float32

    enc = enc_ref[...]            # (B, L, E)
    src_mask = mask_ref[...]      # (B, L)
    copy_oh = copy_oh_ref[...]    # (B, L, NRP)

    # Source key/value projections (loop-invariant), one fused matmul.
    kv = (jnp.dot(enc.reshape(B * L, E), w_kv_ref[...],
                  preferred_element_type=f32) + b_kv_ref[...])          # (B*L, 2H)
    key = kv[:, :H].reshape(B, L, H)
    val = kv[:, H:].reshape(B, L, H)

    # Load weights / biases once, before the unrolled loop.
    w_gates = w_gates_ref[...]
    w_att_h = w_att_h_ref[...]
    w_att_c = w_att_c_ref[...]
    b_att = b_att_ref[...]
    w_heads = w_heads_ref[...]
    b_heads = b_heads_ref[...]

    h = jnp.zeros((B, H), f32)
    c = jnp.zeros((B, H), f32)
    attv = jnp.zeros((B, H), f32)

    step_probs = []
    for ts in range(T_OUT):
        # ---- decoder LSTM cell (PyTorch gate order i,f,g,o) ----
        # Single fused recurrent matmul: [attv | h] @ [w_ih_att ; w_hh].
        xh = jnp.concatenate([attv, h], axis=-1)                        # (B, 2H)
        gates = gates_x_ref[ts] + jnp.dot(xh, w_gates,
                                          preferred_element_type=f32)   # (B, 4H)
        # Two full-vreg EUP ops instead of four sliced ones.
        sig = jax.nn.sigmoid(gates)
        tnh = jnp.tanh(gates)
        i_g = sig[:, :H]
        f_g = sig[:, H:2 * H]
        o_g = sig[:, 3 * H:]
        g_g = tnh[:, 2 * H:3 * H]
        c = f_g * c + i_g * g_g
        h = o_g * jnp.tanh(c)                                           # (B, H)

        # ---- attention over source encodings (broadcast-mul + reductions) ----
        attw = jnp.sum(h[:, None, :] * key, axis=-1)                    # (B, L)
        attw = _masked_softmax_fast(attw, src_mask)
        context = jnp.sum(attw[:, :, None] * val, axis=1)               # (B, H)

        attv = jnp.tanh(jnp.dot(h, w_att_h, preferred_element_type=f32)
                        + jnp.dot(context, w_att_c, preferred_element_type=f32)
                        + b_att)                                        # (B, H)

        # ---- fused heads (tile-aligned sections): tv | gate | rule scores ----
        heads = jnp.dot(attv, w_heads, preferred_element_type=f32) + b_heads
        tv = heads[:, :E]                                               # (B, E)
        gate = jax.nn.sigmoid(heads[:, E:E + 1])                        # (B, 1)
        rule_scores = heads[:, RULE_OFF:]                               # (B, NRP)

        active_mask = active_mask_ref[ts]                               # (B, NRP)
        probs = _masked_softmax_fast(rule_scores, active_mask)

        # ---- copy path ----
        cw = jnp.sum(tv[:, None, :] * enc, axis=-1)                     # (B, L)
        cw = _masked_softmax_fast(cw, src_mask)
        copy_scores = jnp.sum(cw[:, :, None] * copy_oh, axis=1)         # (B, NRP)
        norm_copy = _masked_softmax_fast(copy_scores, active_mask)

        cond = cond_ref[ts]                                             # (B, 1)
        combined = gate * norm_copy + (1.0 - gate) * probs
        step_probs.append(jnp.where(cond > 0, combined, probs))         # (B, NRP)

    # Single dense lane-aligned store (no per-step masked vst on the chain).
    out_ref[...] = jnp.concatenate(step_probs, axis=0)                  # (T_OUT*B, NRP)


# ---------------------------------------------------------------------------
# Wrapper: precompute time-parallel pieces, fuse/split weights, call Pallas.
# ---------------------------------------------------------------------------
def _full_spec(shape):
    nd = len(shape)
    return pl.BlockSpec(tuple(shape), lambda i, _nd=nd: (0,) * _nd)


def _train_decode(params, encodings, source_mask, source_token_copy_indices,
                  target_rules, target_nonterminals, target_mask,
                  target_allow_copy_mask):
    f32 = jnp.float32

    enc_f = encodings.astype(f32)
    src_mask_f = source_mask.astype(f32)

    # -- pad the rule axis of the grammar tables to NRP (lane-dense) --
    nt_rule_mask_p = jnp.pad(params['nt_rule_mask'],
                             ((0, 0), (0, NRP - NUM_RULES)))            # (NUM_NT, NRP)

    # -- per-timestep embedding gathers + LSTM input projection (time-major) --
    tr = target_rules[:, :T_OUT].T                                      # (T_OUT, B)
    tn = target_nonterminals[:, :T_OUT].T                               # (T_OUT, B)
    prev_rule_emb_all = jnp.take(params['rule_emb'], tr, axis=0)        # (T_OUT, B, R)
    nt_emb_all = jnp.take(params['nt_emb'], tn, axis=0)                 # (T_OUT, B, NTE)
    active_mask_all = jnp.take(nt_rule_mask_p, tn, axis=0)              # (T_OUT, B, NRP)

    w_ih = params['w_ih']                                               # (DIN, 4H)
    gates_x_all = (prev_rule_emb_all @ w_ih[:R]
                   + nt_emb_all @ w_ih[R:R + NTE]
                   + params['b_lstm'])                                  # (T_OUT, B, 4H)

    # Fused recurrent weight: rows acting on [attv | h].
    w_gates = jnp.concatenate([w_ih[R + NTE:], params['w_hh']], axis=0)  # (2H, 4H)

    # -- attention layer weight split (kills the lane concat) --
    w_att_h = params['w_att'][:H]
    w_att_c = params['w_att'][H:]

    # -- fused heads, 128-lane-tile aligned sections:
    #    [tv (0..E-1) | copy-gate (E) | zero pad .. 127 | rule scores (128..255)]
    W_rs = params['w_rp'] @ params['rule_emb'].T                        # (H, NUM_RULES)
    b_rs = params['b_rp'] @ params['rule_emb'].T + params['rule_bias']  # (1, NUM_RULES)
    W_rs = jnp.pad(W_rs, ((0, 0), (0, NRP - NUM_RULES)))                # (H, NRP)
    b_rs = jnp.pad(b_rs, ((0, 0), (0, NRP - NUM_RULES)))                # (1, NRP)
    pad_w = jnp.zeros((H, RULE_OFF - E - 1), f32)
    pad_b = jnp.zeros((1, RULE_OFF - E - 1), f32)
    W_heads = jnp.concatenate([params['w_tc'], params['w_cg'], pad_w, W_rs], axis=1)
    b_heads = jnp.concatenate([params['b_tc'], params['b_cg'], pad_b, b_rs], axis=1)

    # -- fused key/value projection --
    W_kv = jnp.concatenate([params['w_key'], params['w_val']], axis=1)  # (E, 2H)
    b_kv = jnp.concatenate([params['b_key'], params['b_val']], axis=1)  # (1, 2H)

    # -- copy table, copy_any and the per-step copy condition (hoisted) --
    copy_onehot = (jnp.sum(jax.nn.one_hot(source_token_copy_indices, NRP,
                                          dtype=f32), axis=2) > 0).astype(f32)  # (B,L,NRP)
    copy_any = (jnp.sum(copy_onehot, axis=1) > 0).astype(f32)           # (B, NRP)
    allow_all = target_allow_copy_mask[:, :T_OUT].T.astype(f32)         # (T_OUT, B)
    overlap_all = (jnp.sum(copy_any[None] * active_mask_all, axis=-1) > 0).astype(f32)
    cond_all = (allow_all * overlap_all)[..., None]                     # (T_OUT, B, 1)

    inputs = [
        gates_x_all.astype(f32), active_mask_all.astype(f32), cond_all.astype(f32),
        enc_f, src_mask_f, copy_onehot,
        W_kv, b_kv, w_gates,
        w_att_h, w_att_c, params['b_att'],
        W_heads, b_heads,
    ]

    out_flat = pl.pallas_call(
        _decode_kernel,
        out_shape=jax.ShapeDtypeStruct((T_OUT * B, NRP), f32),
        grid_spec=pltpu.PrefetchScalarGridSpec(
            num_scalar_prefetch=0,
            grid=(1,),
            in_specs=[_full_spec(x.shape) for x in inputs],
            out_specs=_full_spec((T_OUT * B, NRP)),
            scratch_shapes=[]),
        compiler_params=pltpu.CompilerParams(
            dimension_semantics=("arbitrary",)),
    )(*inputs)

    # Reshape / transpose / slice fuse under jit (no extra dispatches).
    rule_probs = (out_flat.reshape(T_OUT, B, NRP)
                  .transpose(1, 0, 2)[:, :, :NUM_RULES])                # (B, T-1, NR)
    loss = _get_loss(rule_probs, target_rules[:, 1:],
                     target_mask[:, 1:].astype(f32))
    predicted_rules = jnp.argmax(rule_probs, axis=-1)
    return {'loss': loss, 'predicted_rules': predicted_rules,
            'rule_probs': rule_probs}


# Jit the whole wrapper: wrapper-side gathers/pads/matmuls/loss fuse into one
# XLA program around the pallas_call instead of eager per-op dispatch.
train_decode = jax.jit(_train_decode)


# ---------------------------------------------------------------------------
# Pure-JAX reference (original formulation, no fusion) used for verification.
# ---------------------------------------------------------------------------
def reference_train_decode(params, encodings, source_mask, source_token_copy_indices,
                           target_rules, target_nonterminals, target_mask,
                           target_allow_copy_mask):
    f32 = jnp.float32
    enc = encodings.astype(f32)
    src_mask = source_mask.astype(f32)
    key = enc @ params['w_key'] + params['b_key']
    val = enc @ params['w_val'] + params['b_val']
    copy_onehot = (jnp.sum(jax.nn.one_hot(source_token_copy_indices, NUM_RULES,
                                          dtype=f32), axis=2) > 0).astype(f32)
    copy_any = (jnp.sum(copy_onehot, axis=1) > 0).astype(f32)
    h = jnp.zeros((B, H), f32)
    c = jnp.zeros((B, H), f32)
    attv = jnp.zeros((B, H), f32)
    probs_list = []
    for ts in range(T - 1):
        rule_oh = jax.nn.one_hot(target_rules[:, ts], NUM_RULES, dtype=f32)
        nt_oh = jax.nn.one_hot(target_nonterminals[:, ts], NUM_NT, dtype=f32)
        allow = target_allow_copy_mask[:, ts].astype(f32)[:, None]
        prev_rule_emb = rule_oh @ params['rule_emb']
        nt_emb = nt_oh @ params['nt_emb']
        active_mask = nt_oh @ params['nt_rule_mask']
        x = jnp.concatenate([prev_rule_emb, nt_emb, attv], axis=-1)
        gates = x @ params['w_ih'] + h @ params['w_hh'] + params['b_lstm']
        i_g = jax.nn.sigmoid(gates[:, :H])
        f_g = jax.nn.sigmoid(gates[:, H:2 * H])
        g_g = jnp.tanh(gates[:, 2 * H:3 * H])
        o_g = jax.nn.sigmoid(gates[:, 3 * H:])
        c = f_g * c + i_g * g_g
        h = o_g * jnp.tanh(c)
        attw = _masked_softmax(jnp.einsum('bh,blh->bl', h, key), src_mask)
        ctx = jnp.einsum('bl,blh->bh', attw, val)
        attv = jnp.tanh(jnp.concatenate([h, ctx], -1) @ params['w_att'] + params['b_att'])
        rp = attv @ params['w_rp'] + params['b_rp']
        rule_scores = rp @ params['rule_emb'].T + params['rule_bias']
        gate = jax.nn.sigmoid(attv @ params['w_cg'] + params['b_cg'])
        probs = _masked_softmax(rule_scores, active_mask)
        tv = attv @ params['w_tc'] + params['b_tc']
        cw = _masked_softmax(jnp.einsum('be,ble->bl', tv, enc), src_mask)
        copy_scores = jnp.einsum('bl,blr->br', cw, copy_onehot)
        norm_copy = _masked_softmax(copy_scores, active_mask)
        overlap = jnp.sum(copy_any * active_mask, -1, keepdims=True) > 0
        cond = jnp.logical_and(allow == 1, overlap)
        combined = gate * norm_copy + (1.0 - gate) * probs
        probs_list.append(jnp.where(cond, combined, probs))
    rule_probs = jnp.stack(probs_list, axis=1)
    loss = _get_loss(rule_probs, target_rules[:, 1:], target_mask[:, 1:].astype(f32))
    return {'loss': loss, 'predicted_rules': jnp.argmax(rule_probs, -1),
            'rule_probs': rule_probs}


# ---------------------------------------------------------------------------
# Deterministic parameter construction (shapes from __init__).
# ---------------------------------------------------------------------------
def make_params(key):
    ks = jax.random.split(key, 20)

    def w(k, shape, scale=0.1):
        return jax.random.normal(k, shape, jnp.float32) * scale

    params = dict(
        rule_emb=w(ks[0], (NUM_RULES, R)),
        nt_emb=w(ks[1], (NUM_NT, NTE)),
        w_key=w(ks[2], (E, H)), b_key=w(ks[3], (1, H), 0.01),
        w_val=w(ks[4], (E, H)), b_val=w(ks[5], (1, H), 0.01),
        w_ih=w(ks[6], (DIN, 4 * H)), w_hh=w(ks[7], (H, 4 * H)),
        b_lstm=w(ks[8], (1, 4 * H), 0.01),
        w_att=w(ks[9], (2 * H, H)), b_att=w(ks[10], (1, H), 0.01),
        w_rp=w(ks[11], (H, R)), b_rp=w(ks[12], (1, R), 0.01),
        rule_bias=jnp.zeros((1, NUM_RULES), jnp.float32),  # .zero_() init
        w_cg=w(ks[13], (H, 1)), b_cg=w(ks[14], (1, 1), 0.01),
        w_tc=w(ks[15], (H, E)), b_tc=w(ks[16], (1, E), 0.01),
    )
    # Synthetic grammar: nonterminal id -> allowed-rule mask.
    m = (jax.random.uniform(ks[17], (NUM_NT, NUM_RULES)) < 0.3).astype(jnp.float32)
    m = m.at[jnp.arange(NUM_NT), jnp.arange(NUM_NT) % NUM_RULES].set(1.0)
    onehot0 = jax.nn.one_hot(0, NUM_RULES, dtype=jnp.float32)
    m = m.at[NT_PAD].set(onehot0)   # pad nonterminal -> active_rule_ids = [0]
    m = m.at[NT_END].set(onehot0)   # end nonterminal -> active_rule_ids = [0]
    params['nt_rule_mask'] = m
    return params


if __name__ == "__main__":
    key = jax.random.PRNGKey(0)
    kp, k1, k2, k3, k4, k5 = jax.random.split(key, 6)
    params = make_params(kp)

    encodings = jax.random.normal(k1, (B, L, E), jnp.float32)
    lens = jnp.array([L, L - 4], jnp.int32)
    source_mask = (jnp.arange(L)[None, :] < lens[:, None]).astype(jnp.int32)
    source_token_copy_indices = jax.random.randint(k2, (B, L, MAX_LINK), 0, NUM_RULES)
    target_rules = jax.random.randint(k3, (B, T), 0, NUM_RULES)
    target_nonterminals = jax.random.randint(k4, (B, T), 0, NUM_NT)
    tlens = jnp.array([T, T - 2], jnp.int32)
    target_mask = (jnp.arange(T)[None, :] < tlens[:, None]).astype(jnp.int32)
    target_allow_copy_mask = jax.random.randint(k5, (B, T), 0, 2)

    out = train_decode(params, encodings, source_mask, source_token_copy_indices,
                       target_rules, target_nonterminals, target_mask,
                       target_allow_copy_mask)
    jax.block_until_ready(out['rule_probs'])

    ref = reference_train_decode(params, encodings, source_mask,
                                 source_token_copy_indices, target_rules,
                                 target_nonterminals, target_mask,
                                 target_allow_copy_mask)
    # Tolerance covers approx-reciprocal softmax (EUP vrcp, ~2^-12 rel err) and
    # the w_rp @ rule_emb.T fold; semantics are otherwise identical.
    np.testing.assert_allclose(np.asarray(out['rule_probs']),
                               np.asarray(ref['rule_probs']),
                               rtol=2e-3, atol=2e-3)
    np.testing.assert_allclose(float(out['loss']), float(ref['loss']),
                               rtol=2e-3, atol=2e-3)
    print("KERNEL_OK")
</pallas_src>

<mosaic_0001>
module attributes {stable_mosaic.version = 11 : i64} {
  func.func @_decode_kernel(%arg0: i32, %arg1: memref<7x2x128xf32, #tpu.memory_space<vmem>>, %arg2: memref<7x2x128xf32, #tpu.memory_space<vmem>>, %arg3: memref<7x2x1xf32, #tpu.memory_space<vmem>>, %arg4: memref<2x16x32xf32, #tpu.memory_space<vmem>>, %arg5: memref<2x16xf32, #tpu.memory_space<vmem>>, %arg6: memref<2x16x128xf32, #tpu.memory_space<vmem>>, %arg7: memref<32x64xf32, #tpu.memory_space<vmem>>, %arg8: memref<1x64xf32, #tpu.memory_space<vmem>>, %arg9: memref<64x128xf32, #tpu.memory_space<vmem>>, %arg10: memref<32x32xf32, #tpu.memory_space<vmem>>, %arg11: memref<32x32xf32, #tpu.memory_space<vmem>>, %arg12: memref<1x32xf32, #tpu.memory_space<vmem>>, %arg13: memref<32x256xf32, #tpu.memory_space<vmem>>, %arg14: memref<1x256xf32, #tpu.memory_space<vmem>>, %arg15: memref<14x128xf32, #tpu.memory_space<vmem>>) attributes {dimension_semantics = [#tpu.dimension_semantics<arbitrary>], iteration_bounds = array<i64: 1>, scalar_prefetch = 0 : i64, scratch_operands = 0 : i64, tpu.core_type = #tpu.core_type<tc>, window_params = [{pipeline_mode = #tpu.pipeline_mode<synchronous>, transform_indices = @transform_0, window_bounds = array<i64: 7, 2, 128>}, {pipeline_mode = #tpu.pipeline_mode<synchronous>, transform_indices = @transform_1, window_bounds = array<i64: 7, 2, 128>}, {pipeline_mode = #tpu.pipeline_mode<synchronous>, transform_indices = @transform_2, window_bounds = array<i64: 7, 2, 1>}, {pipeline_mode = #tpu.pipeline_mode<synchronous>, transform_indices = @transform_3, window_bounds = array<i64: 2, 16, 32>}, {pipeline_mode = #tpu.pipeline_mode<synchronous>, transform_indices = @transform_4, window_bounds = array<i64: 2, 16>}, {pipeline_mode = #tpu.pipeline_mode<synchronous>, transform_indices = @transform_5, window_bounds = array<i64: 2, 16, 128>}, {pipeline_mode = #tpu.pipeline_mode<synchronous>, transform_indices = @transform_6, window_bounds = array<i64: 32, 64>}, {pipeline_mode = #tpu.pipeline_mode<synchronous>, transform_indices = @transform_7, window_bounds = array<i64: 1, 64>}, {pipeline_mode = #tpu.pipeline_mode<synchronous>, transform_indices = @transform_8, window_bounds = array<i64: 64, 128>}, {pipeline_mode = #tpu.pipeline_mode<synchronous>, transform_indices = @transform_9, window_bounds = array<i64: 32, 32>}, {pipeline_mode = #tpu.pipeline_mode<synchronous>, transform_indices = @transform_10, window_bounds = array<i64: 32, 32>}, {pipeline_mode = #tpu.pipeline_mode<synchronous>, transform_indices = @transform_11, window_bounds = array<i64: 1, 32>}, {pipeline_mode = #tpu.pipeline_mode<synchronous>, transform_indices = @transform_12, window_bounds = array<i64: 32, 256>}, {pipeline_mode = #tpu.pipeline_mode<synchronous>, transform_indices = @transform_13, window_bounds = array<i64: 1, 256>}, {pipeline_mode = #tpu.pipeline_mode<synchronous>, transform_indices = @transform_14, window_bounds = array<i64: 14, 128>}]} {
    %c0 = arith.constant 0 : index
    %c0_0 = arith.constant 0 : index
    %c0_1 = arith.constant 0 : index
    %0 = vector.load %arg4[%c0, %c0_0, %c0_1] : memref<2x16x32xf32, #tpu.memory_space<vmem>>, vector<2x16x32xf32>
    %c0_2 = arith.constant 0 : index
    %c0_3 = arith.constant 0 : index
    %1 = vector.load %arg5[%c0_2, %c0_3] : memref<2x16xf32, #tpu.memory_space<vmem>>, vector<2x16xf32>
    %c0_4 = arith.constant 0 : index
    %c0_5 = arith.constant 0 : index
    %c0_6 = arith.constant 0 : index
    %2 = vector.load %arg6[%c0_4, %c0_5, %c0_6] : memref<2x16x128xf32, #tpu.memory_space<vmem>>, vector<2x16x128xf32>
    %3 = vector.shape_cast %0 : vector<2x16x32xf32> to vector<32x32xf32>
    %c0_7 = arith.constant 0 : index
    %c0_8 = arith.constant 0 : index
    %4 = vector.load %arg7[%c0_7, %c0_8] : memref<32x64xf32, #tpu.memory_space<vmem>>, vector<32x64xf32>
    %cst = arith.constant dense<0.000000e+00> : vector<32x64xf32>
    %5 = tpu.matmul %3, %4, %cst {dimension_numbers = #tpu.dot_dimension_numbers<[1], [0], [0], [1], [0, 0, 1, 1], [], []>} : vector<32x32xf32>, vector<32x64xf32>, vector<32x64xf32> -> vector<32x64xf32>
    %c0_9 = arith.constant 0 : index
    %c0_10 = arith.constant 0 : index
    %6 = vector.load %arg8[%c0_9, %c0_10] : memref<1x64xf32, #tpu.memory_space<vmem>>, vector<1x64xf32>
    %7 = vector.broadcast %6 : vector<1x64xf32> to vector<32x64xf32>
    %8 = arith.addf %5, %7 : vector<32x64xf32>
    %9 = vector.extract_strided_slice %8 {offsets = [0, 0], sizes = [32, 32], strides = [1, 1]} : vector<32x64xf32> to vector<32x32xf32>
    %10 = vector.shape_cast %9 : vector<32x32xf32> to vector<2x16x32xf32>
    %11 = vector.extract_strided_slice %8 {offsets = [0, 32], sizes = [32, 32], strides = [1, 1]} : vector<32x64xf32> to vector<32x32xf32>
    %12 = vector.shape_cast %11 : vector<32x32xf32> to vector<2x16x32xf32>
    %c0_11 = arith.constant 0 : index
    %c0_12 = arith.constant 0 : index
    %13 = vector.load %arg9[%c0_11, %c0_12] : memref<64x128xf32, #tpu.memory_space<vmem>>, vector<64x128xf32>
    %c0_13 = arith.constant 0 : index
    %c0_14 = arith.constant 0 : index
    %14 = vector.load %arg10[%c0_13, %c0_14] : memref<32x32xf32, #tpu.memory_space<vmem>>, vector<32x32xf32>
    %c0_15 = arith.constant 0 : index
    %c0_16 = arith.constant 0 : index
    %15 = vector.load %arg11[%c0_15, %c0_16] : memref<32x32xf32, #tpu.memory_space<vmem>>, vector<32x32xf32>
    %c0_17 = arith.constant 0 : index
    %c0_18 = arith.constant 0 : index
    %16 = vector.load %arg12[%c0_17, %c0_18] : memref<1x32xf32, #tpu.memory_space<vmem>>, vector<1x32xf32>
    %c0_19 = arith.constant 0 : index
    %c0_20 = arith.constant 0 : index
    %17 = vector.load %arg13[%c0_19, %c0_20] : memref<32x256xf32, #tpu.memory_space<vmem>>, vector<32x256xf32>
    %c0_21 = arith.constant 0 : index
    %c0_22 = arith.constant 0 : index
    %18 = vector.load %arg14[%c0_21, %c0_22] : memref<1x256xf32, #tpu.memory_space<vmem>>, vector<1x256xf32>
    %cst_23 = arith.constant 0.000000e+00 : f32
    %19 = vector.broadcast %cst_23 : f32 to vector<2x32xf32>
    %cst_24 = arith.constant 0.000000e+00 : f32
    %20 = vector.broadcast %cst_24 : f32 to vector<2x32xf32>
    %cst_25 = arith.constant 0.000000e+00 : f32
    %21 = vector.broadcast %cst_25 : f32 to vector<2x32xf32>
    %22 = tpu.concatenate %21, %19 in 1 : vector<2x32xf32>, vector<2x32xf32> -> vector<2x64xf32>
    %c0_26 = arith.constant 0 : index
    %c0_27 = arith.constant 0 : index
    %c0_28 = arith.constant 0 : index
    %23 = vector.load %arg1[%c0_26, %c0_27, %c0_28] : memref<7x2x128xf32, #tpu.memory_space<vmem>>, vector<1x2x128xf32>
    %24 = vector.shape_cast %23 : vector<1x2x128xf32> to vector<2x128xf32>
    %cst_29 = arith.constant dense<0.000000e+00> : vector<2x128xf32>
    %25 = tpu.matmul %22, %13, %cst_29 {dimension_numbers = #tpu.dot_dimension_numbers<[1], [0], [0], [1], [0, 0, 1, 1], [], []>} : vector<2x64xf32>, vector<64x128xf32>, vector<2x128xf32> -> vector<2x128xf32>
    %26 = arith.addf %24, %25 : vector<2x128xf32>
    %27 = arith.negf %26 : vector<2x128xf32>
    %28 = math.exp %27 : vector<2x128xf32>
    %cst_30 = arith.constant 1.000000e+00 : f32
    %29 = vector.broadcast %cst_30 : f32 to vector<2x128xf32>
    %30 = arith.addf %29, %28 : vector<2x128xf32>
    %31 = arith.divf %29, %30 : vector<2x128xf32>
    %32 = math.tanh %26 : vector<2x128xf32>
    %33 = vector.extract_strided_slice %31 {offsets = [0, 0], sizes = [2, 32], strides = [1, 1]} : vector<2x128xf32> to vector<2x32xf32>
    %34 = vector.extract_strided_slice %31 {offsets = [0, 32], sizes = [2, 32], strides = [1, 1]} : vector<2x128xf32> to vector<2x32xf32>
    %35 = vector.extract_strided_slice %31 {offsets = [0, 96], sizes = [2, 32], strides = [1, 1]} : vector<2x128xf32> to vector<2x32xf32>
    %36 = vector.extract_strided_slice %32 {offsets = [0, 64], sizes = [2, 32], strides = [1, 1]} : vector<2x128xf32> to vector<2x32xf32>
    %37 = arith.mulf %34, %20 : vector<2x32xf32>
    %38 = arith.mulf %33, %36 : vector<2x32xf32>
    %39 = arith.addf %37, %38 : vector<2x32xf32>
    %40 = math.tanh %39 : vector<2x32xf32>
    %41 = arith.mulf %35, %40 : vector<2x32xf32>
    %42 = vector.shape_cast %41 : vector<2x32xf32> to vector<2x1x32xf32>
    %43 = vector.broadcast %42 : vector<2x1x32xf32> to vector<2x16x32xf32>
    %44 = arith.mulf %43, %10 : vector<2x16x32xf32>
    %cst_31 = arith.constant dense<0.000000e+00> : vector<2x16xf32>
    %45 = vector.multi_reduction <add>, %44, %cst_31 [2] : vector<2x16x32xf32> to vector<2x16xf32>
    %cst_32 = arith.constant 0.000000e+00 : f32
    %46 = vector.broadcast %cst_32 : f32 to vector<2x16xf32>
    %47 = arith.cmpf ogt, %1, %46 : vector<2x16xf32>
    %cst_33 = arith.constant -1.000000e+30 : f32
    %48 = vector.broadcast %cst_33 : f32 to vector<2x16xf32>
    %49 = arith.select %47, %45, %48 : vector<2x16xi1>, vector<2x16xf32>
    %cst_34 = arith.constant dense<0xFF800000> : vector<2xf32>
    %50 = vector.multi_reduction <maximumf>, %49, %cst_34 [1] : vector<2x16xf32> to vector<2xf32>
    %51 = vector.shape_cast %50 : vector<2xf32> to vector<2x1xf32>
    %52 = vector.broadcast %51 : vector<2x1xf32> to vector<2x16xf32>
    %53 = arith.subf %49, %52 : vector<2x16xf32>
    %54 = math.exp %53 : vector<2x16xf32>
    %cst_35 = arith.constant dense<0.000000e+00> : vector<2xf32>
    %55 = vector.multi_reduction <add>, %54, %cst_35 [1] : vector<2x16xf32> to vector<2xf32>
    %56 = vector.shape_cast %55 : vector<2xf32> to vector<2x1xf32>
    %57 = tpu.reciprocal %56 {approx = true} : vector<2x1xf32> -> vector<2x1xf32>
    %58 = vector.broadcast %57 : vector<2x1xf32> to vector<2x16xf32>
    %59 = arith.mulf %54, %58 : vector<2x16xf32>
    %60 = vector.shape_cast %59 : vector<2x16xf32> to vector<2x16x1xf32>
    %61 = vector.broadcast %60 : vector<2x16x1xf32> to vector<2x16x32xf32>
    %62 = arith.mulf %61, %12 : vector<2x16x32xf32>
    %cst_36 = arith.constant dense<0.000000e+00> : vector<2x32xf32>
    %63 = vector.multi_reduction <add>, %62, %cst_36 [1] : vector<2x16x32xf32> to vector<2x32xf32>
    %cst_37 = arith.constant dense<0.000000e+00> : vector<2x32xf32>
    %64 = tpu.matmul %41, %14, %cst_37 {dimension_numbers = #tpu.dot_dimension_numbers<[1], [0], [0], [1], [0, 0, 1, 1], [], []>} : vector<2x32xf32>, vector<32x32xf32>, vector<2x32xf32> -> vector<2x32xf32>
    %cst_38 = arith.constant dense<0.000000e+00> : vector<2x32xf32>
    %65 = tpu.matmul %63, %15, %cst_38 {dimension_numbers = #tpu.dot_dimension_numbers<[1], [0], [0], [1], [0, 0, 1, 1], [], []>} : vector<2x32xf32>, vector<32x32xf32>, vector<2x32xf32> -> vector<2x32xf32>
    %66 = arith.addf %64, %65 : vector<2x32xf32>
    %67 = vector.broadcast %16 : vector<1x32xf32> to vector<2x32xf32>
    %68 = arith.addf %66, %67 : vector<2x32xf32>
    %69 = math.tanh %68 : vector<2x32xf32>
    %cst_39 = arith.constant dense<0.000000e+00> : vector<2x256xf32>
    %70 = tpu.matmul %69, %17, %cst_39 {dimension_numbers = #tpu.dot_dimension_numbers<[1], [0], [0], [1], [0, 0, 1, 1], [], []>} : vector<2x32xf32>, vector<32x256xf32>, vector<2x256xf32> -> vector<2x256xf32>
    %71 = vector.broadcast %18 : vector<1x256xf32> to vector<2x256xf32>
    %72 = arith.addf %70, %71 : vector<2x256xf32>
    %73 = vector.extract_strided_slice %72 {offsets = [0, 0], sizes = [2, 32], strides = [1, 1]} : vector<2x256xf32> to vector<2x32xf32>
    %74 = vector.extract_strided_slice %72 {offsets = [0, 32], sizes = [2, 1], strides = [1, 1]} : vector<2x256xf32> to vector<2x1xf32>
    %75 = arith.negf %74 : vector<2x1xf32>
    %76 = math.exp %75 : vector<2x1xf32>
    %cst_40 = arith.constant 1.000000e+00 : f32
    %77 = vector.broadcast %cst_40 : f32 to vector<2x1xf32>
    %78 = arith.addf %77, %76 : vector<2x1xf32>
    %79 = arith.divf %77, %78 : vector<2x1xf32>
    %80 = vector.extract_strided_slice %72 {offsets = [0, 128], sizes = [2, 128], strides = [1, 1]} : vector<2x256xf32> to vector<2x128xf32>
    %c0_41 = arith.constant 0 : index
    %c0_42 = arith.constant 0 : index
    %c0_43 = arith.constant 0 : index
    %81 = vector.load %arg2[%c0_41, %c0_42, %c0_43] : memref<7x2x128xf32, #tpu.memory_space<vmem>>, vector<1x2x128xf32>
    %82 = vector.shape_cast %81 : vector<1x2x128xf32> to vector<2x128xf32>
    %cst_44 = arith.constant 0.000000e+00 : f32
    %83 = vector.broadcast %cst_44 : f32 to vector<2x128xf32>
    %84 = arith.cmpf ogt, %82, %83 : vector<2x128xf32>
    %cst_45 = arith.constant -1.000000e+30 : f32
    %85 = vector.broadcast %cst_45 : f32 to vector<2x128xf32>
    %86 = arith.select %84, %80, %85 : vector<2x128xi1>, vector<2x128xf32>
    %cst_46 = arith.constant dense<0xFF800000> : vector<2xf32>
    %87 = vector.multi_reduction <maximumf>, %86, %cst_46 [1] : vector<2x128xf32> to vector<2xf32>
    %88 = vector.shape_cast %87 : vector<2xf32> to vector<2x1xf32>
    %89 = vector.broadcast %88 : vector<2x1xf32> to vector<2x128xf32>
    %90 = arith.subf %86, %89 : vector<2x128xf32>
    %91 = math.exp %90 : vector<2x128xf32>
    %cst_47 = arith.constant dense<0.000000e+00> : vector<2xf32>
    %92 = vector.multi_reduction <add>, %91, %cst_47 [1] : vector<2x128xf32> to vector<2xf32>
    %93 = vector.shape_cast %92 : vector<2xf32> to vector<2x1xf32>
    %94 = tpu.reciprocal %93 {approx = true} : vector<2x1xf32> -> vector<2x1xf32>
    %95 = vector.broadcast %94 : vector<2x1xf32> to vector<2x128xf32>
    %96 = arith.mulf %91, %95 : vector<2x128xf32>
    %97 = vector.shape_cast %73 : vector<2x32xf32> to vector<2x1x32xf32>
    %98 = vector.broadcast %97 : vector<2x1x32xf32> to vector<2x16x32xf32>
    %99 = arith.mulf %98, %0 : vector<2x16x32xf32>
    %cst_48 = arith.constant dense<0.000000e+00> : vector<2x16xf32>
    %100 = vector.multi_reduction <add>, %99, %cst_48 [2] : vector<2x16x32xf32> to vector<2x16xf32>
    %cst_49 = arith.constant 0.000000e+00 : f32
    %101 = vector.broadcast %cst_49 : f32 to vector<2x16xf32>
    %102 = arith.cmpf ogt, %1, %101 : vector<2x16xf32>
    %cst_50 = arith.constant -1.000000e+30 : f32
    %103 = vector.broadcast %cst_50 : f32 to vector<2x16xf32>
    %104 = arith.select %102, %100, %103 : vector<2x16xi1>, vector<2x16xf32>
    %cst_51 = arith.constant dense<0xFF800000> : vector<2xf32>
    %105 = vector.multi_reduction <maximumf>, %104, %cst_51 [1] : vector<2x16xf32> to vector<2xf32>
    %106 = vector.shape_cast %105 : vector<2xf32> to vector<2x1xf32>
    %107 = vector.broadcast %106 : vector<2x1xf32> to vector<2x16xf32>
    %108 = arith.subf %104, %107 : vector<2x16xf32>
    %109 = math.exp %108 : vector<2x16xf32>
    %cst_52 = arith.constant dense<0.000000e+00> : vector<2xf32>
    %110 = vector.multi_reduction <add>, %109, %cst_52 [1] : vector<2x16xf32> to vector<2xf32>
    %111 = vector.shape_cast %110 : vector<2xf32> to vector<2x1xf32>
    %112 = tpu.reciprocal %111 {approx = true} : vector<2x1xf32> -> vector<2x1xf32>
    %113 = vector.broadcast %112 : vector<2x1xf32> to vector<2x16xf32>
    %114 = arith.mulf %109, %113 : vector<2x16xf32>
    %115 = vector.shape_cast %114 : vector<2x16xf32> to vector<2x16x1xf32>
    %116 = vector.broadcast %115 : vector<2x16x1xf32> to vector<2x16x128xf32>
    %117 = arith.mulf %116, %2 : vector<2x16x128xf32>
    %cst_53 = arith.constant dense<0.000000e+00> : vector<2x128xf32>
    %118 = vector.multi_reduction <add>, %117, %cst_53 [1] : vector<2x16x128xf32> to vector<2x128xf32>
    %cst_54 = arith.constant 0.000000e+00 : f32
    %119 = vector.broadcast %cst_54 : f32 to vector<2x128xf32>
    %120 = arith.cmpf ogt, %82, %119 : vector<2x128xf32>
    %cst_55 = arith.constant -1.000000e+30 : f32
    %121 = vector.broadcast %cst_55 : f32 to vector<2x128xf32>
    %122 = arith.select %120, %118, %121 : vector<2x128xi1>, vector<2x128xf32>
    %cst_56 = arith.constant dense<0xFF800000> : vector<2xf32>
    %123 = vector.multi_reduction <maximumf>, %122, %cst_56 [1] : vector<2x128xf32> to vector<2xf32>
    %124 = vector.shape_cast %123 : vector<2xf32> to vector<2x1xf32>
    %125 = vector.broadcast %124 : vector<2x1xf32> to vector<2x128xf32>
    %126 = arith.subf %122, %125 : vector<2x128xf32>
    %127 = math.exp %126 : vector<2x128xf32>
    %cst_57 = arith.constant dense<0.000000e+00> : vector<2xf32>
    %128 = vector.multi_reduction <add>, %127, %cst_57 [1] : vector<2x128xf32> to vector<2xf32>
    %129 = vector.shape_cast %128 : vector<2xf32> to vector<2x1xf32>
    %130 = tpu.reciprocal %129 {approx = true} : vector<2x1xf32> -> vector<2x1xf32>
    %131 = vector.broadcast %130 : vector<2x1xf32> to vector<2x128xf32>
    %132 = arith.mulf %127, %131 : vector<2x128xf32>
    %c0_58 = arith.constant 0 : index
    %c0_59 = arith.constant 0 : index
    %c0_60 = arith.constant 0 : index
    %133 = vector.load %arg3[%c0_58, %c0_59, %c0_60] : memref<7x2x1xf32, #tpu.memory_space<vmem>>, vector<1x2x1xf32>
    %134 = vector.shape_cast %133 : vector<1x2x1xf32> to vector<2x1xf32>
    %135 = vector.broadcast %79 : vector<2x1xf32> to vector<2x128xf32>
    %136 = arith.mulf %135, %132 : vector<2x128xf32>
    %cst_61 = arith.constant 1.000000e+00 : f32
    %137 = vector.broadcast %cst_61 : f32 to vector<2x1xf32>
    %138 = arith.subf %137, %79 : vector<2x1xf32>
    %139 = vector.broadcast %138 : vector<2x1xf32> to vector<2x128xf32>
    %140 = arith.mulf %139, %96 : vector<2x128xf32>
    %141 = arith.addf %136, %140 : vector<2x128xf32>
    %cst_62 = arith.constant 0.000000e+00 : f32
    %142 = vector.broadcast %cst_62 : f32 to vector<2x1xf32>
    %143 = arith.cmpf ogt, %134, %142 : vector<2x1xf32>
    %144 = vector.shape_cast %143 : vector<2x1xi1> to vector<2x1xi1>
    %145 = vector.broadcast %144 : vector<2x1xi1> to vector<2x128xi1>
    %146 = arith.select %145, %141, %96 : vector<2x128xi1>, vector<2x128xf32>
    %147 = tpu.concatenate %69, %41 in 1 : vector<2x32xf32>, vector<2x32xf32> -> vector<2x64xf32>
    %c1 = arith.constant 1 : index
    %c0_63 = arith.constant 0 : index
    %c0_64 = arith.constant 0 : index
    %148 = vector.load %arg1[%c1, %c0_63, %c0_64] : memref<7x2x128xf32, #tpu.memory_space<vmem>>, vector<1x2x128xf32>
    %149 = vector.shape_cast %148 : vector<1x2x128xf32> to vector<2x128xf32>
    %cst_65 = arith.constant dense<0.000000e+00> : vector<2x128xf32>
    %150 = tpu.matmul %147, %13, %cst_65 {dimension_numbers = #tpu.dot_dimension_numbers<[1], [0], [0], [1], [0, 0, 1, 1], [], []>} : vector<2x64xf32>, vector<64x128xf32>, vector<2x128xf32> -> vector<2x128xf32>
    %151 = arith.addf %149, %150 : vector<2x128xf32>
    %152 = arith.negf %151 : vector<2x128xf32>
    %153 = math.exp %152 : vector<2x128xf32>
    %cst_66 = arith.constant 1.000000e+00 : f32
    %154 = vector.broadcast %cst_66 : f32 to vector<2x128xf32>
    %155 = arith.addf %154, %153 : vector<2x128xf32>
    %156 = arith.divf %154, %155 : vector<2x128xf32>
    %157 = math.tanh %151 : vector<2x128xf32>
    %158 = vector.extract_strided_slice %156 {offsets = [0, 0], sizes = [2, 32], strides = [1, 1]} : vector<2x128xf32> to vector<2x32xf32>
    %159 = vector.extract_strided_slice %156 {offsets = [0, 32], sizes = [2, 32], strides = [1, 1]} : vector<2x128xf32> to vector<2x32xf32>
    %160 = vector.extract_strided_slice %156 {offsets = [0, 96], sizes = [2, 32], strides = [1, 1]} : vector<2x128xf32> to vector<2x32xf32>
    %161 = vector.extract_strided_slice %157 {offsets = [0, 64], sizes = [2, 32], strides = [1, 1]} : vector<2x128xf32> to vector<2x32xf32>
    %162 = arith.mulf %159, %39 : vector<2x32xf32>
    %163 = arith.mulf %158, %161 : vector<2x32xf32>
    %164 = arith.addf %162, %163 : vector<2x32xf32>
    %165 = math.tanh %164 : vector<2x32xf32>
    %166 = arith.mulf %160, %165 : vector<2x32xf32>
    %167 = vector.shape_cast %166 : vector<2x32xf32> to vector<2x1x32xf32>
    %168 = vector.broadcast %167 : vector<2x1x32xf32> to vector<2x16x32xf32>
    %169 = arith.mulf %168, %10 : vector<2x16x32xf32>
    %cst_67 = arith.constant dense<0.000000e+00> : vector<2x16xf32>
    %170 = vector.multi_reduction <add>, %169, %cst_67 [2] : vector<2x16x32xf32> to vector<2x16xf32>
    %cst_68 = arith.constant 0.000000e+00 : f32
    %171 = vector.broadcast %cst_68 : f32 to vector<2x16xf32>
    %172 = arith.cmpf ogt, %1, %171 : vector<2x16xf32>
    %cst_69 = arith.constant -1.000000e+30 : f32
    %173 = vector.broadcast %cst_69 : f32 to vector<2x16xf32>
    %174 = arith.select %172, %170, %173 : vector<2x16xi1>, vector<2x16xf32>
    %cst_70 = arith.constant dense<0xFF800000> : vector<2xf32>
    %175 = vector.multi_reduction <maximumf>, %174, %cst_70 [1] : vector<2x16xf32> to vector<2xf32>
    %176 = vector.shape_cast %175 : vector<2xf32> to vector<2x1xf32>
    %177 = vector.broadcast %176 : vector<2x1xf32> to vector<2x16xf32>
    %178 = arith.subf %174, %177 : vector<2x16xf32>
    %179 = math.exp %178 : vector<2x16xf32>
    %cst_71 = arith.constant dense<0.000000e+00> : vector<2xf32>
    %180 = vector.multi_reduction <add>, %179, %cst_71 [1] : vector<2x16xf32> to vector<2xf32>
    %181 = vector.shape_cast %180 : vector<2xf32> to vector<2x1xf32>
    %182 = tpu.reciprocal %181 {approx = true} : vector<2x1xf32> -> vector<2x1xf32>
    %183 = vector.broadcast %182 : vector<2x1xf32> to vector<2x16xf32>
    %184 = arith.mulf %179, %183 : vector<2x16xf32>
    %185 = vector.shape_cast %184 : vector<2x16xf32> to vector<2x16x1xf32>
    %186 = vector.broadcast %185 : vector<2x16x1xf32> to vector<2x16x32xf32>
    %187 = arith.mulf %186, %12 : vector<2x16x32xf32>
    %cst_72 = arith.constant dense<0.000000e+00> : vector<2x32xf32>
    %188 = vector.multi_reduction <add>, %187, %cst_72 [1] : vector<2x16x32xf32> to vector<2x32xf32>
    %cst_73 = arith.constant dense<0.000000e+00> : vector<2x32xf32>
    %189 = tpu.matmul %166, %14, %cst_73 {dimension_numbers = #tpu.dot_dimension_numbers<[1], [0], [0], [1], [0, 0, 1, 1], [], []>} : vector<2x32xf32>, vector<32x32xf32>, vector<2x32xf32> -> vector<2x32xf32>
    %cst_74 = arith.constant dense<0.000000e+00> : vector<2x32xf32>
    %190 = tpu.matmul %188, %15, %cst_74 {dimension_numbers = #tpu.dot_dimension_numbers<[1], [0], [0], [1], [0, 0, 1, 1], [], []>} : vector<2x32xf32>, vector<32x32xf32>, vector<2x32xf32> -> vector<2x32xf32>
    %191 = arith.addf %189, %190 : vector<2x32xf32>
    %192 = vector.broadcast %16 : vector<1x32xf32> to vector<2x32xf32>
    %193 = arith.addf %191, %192 : vector<2x32xf32>
    %194 = math.tanh %193 : vector<2x32xf32>
    %cst_75 = arith.constant dense<0.000000e+00> : vector<2x256xf32>
    %195 = tpu.matmul %194, %17, %cst_75 {dimension_numbers = #tpu.dot_dimension_numbers<[1], [0], [0], [1], [0, 0, 1, 1], [], []>} : vector<2x32xf32>, vector<32x256xf32>, vector<2x256xf32> -> vector<2x256xf32>
    %196 = vector.broadcast %18 : vector<1x256xf32> to vector<2x256xf32>
    %197 = arith.addf %195, %196 : vector<2x256xf32>
    %198 = vector.extract_strided_slice %197 {offsets = [0, 0], sizes = [2, 32], strides = [1, 1]} : vector<2x256xf32> to vector<2x32xf32>
    %199 = vector.extract_strided_slice %197 {offsets = [0, 32], sizes = [2, 1], strides = [1, 1]} : vector<2x256xf32> to vector<2x1xf32>
    %200 = arith.negf %199 : vector<2x1xf32>
    %201 = math.exp %200 : vector<2x1xf32>
    %cst_76 = arith.constant 1.000000e+00 : f32
    %202 = vector.broadcast %cst_76 : f32 to vector<2x1xf32>
    %203 = arith.addf %202, %201 : vector<2x1xf32>
    %204 = arith.divf %202, %203 : vector<2x1xf32>
    %205 = vector.extract_strided_slice %197 {offsets = [0, 128], sizes = [2, 128], strides = [1, 1]} : vector<2x256xf32> to vector<2x128xf32>
    %c1_77 = arith.constant 1 : index
    %c0_78 = arith.constant 0 : index
    %c0_79 = arith.constant 0 : index
    %206 = vector.load %arg2[%c1_77, %c0_78, %c0_79] : memref<7x2x128xf32, #tpu.memory_space<vmem>>, vector<1x2x128xf32>
    %207 = vector.shape_cast %206 : vector<1x2x128xf32> to vector<2x128xf32>
    %cst_80 = arith.constant 0.000000e+00 : f32
    %208 = vector.broadcast %cst_80 : f32 to vector<2x128xf32>
    %209 = arith.cmpf ogt, %207, %208 : vector<2x128xf32>
    %cst_81 = arith.constant -1.000000e+30 : f32
    %210 = vector.broadcast %cst_81 : f32 to vector<2x128xf32>
    %211 = arith.select %209, %205, %210 : vector<2x128xi1>, vector<2x128xf32>
    %cst_82 = arith.constant dense<0xFF800000> : vector<2xf32>
    %212 = vector.multi_reduction <maximumf>, %211, %cst_82 [1] : vector<2x128xf32> to vector<2xf32>
    %213 = vector.shape_cast %212 : vector<2xf32> to vector<2x1xf32>
    %214 = vector.broadcast %213 : vector<2x1xf32> to vector<2x128xf32>
    %215 = arith.subf %211, %214 : vector<2x128xf32>
    %216 = math.exp %215 : vector<2x128xf32>
    %cst_83 = arith.constant dense<0.000000e+00> : vector<2xf32>
    %217 = vector.multi_reduction <add>, %216, %cst_83 [1] : vector<2x128xf32> to vector<2xf32>
    %218 = vector.shape_cast %217 : vector<2xf32> to vector<2x1xf32>
    %219 = tpu.reciprocal %218 {approx = true} : vector<2x1xf32> -> vector<2x1xf32>
    %220 = vector.broadcast %219 : vector<2x1xf32> to vector<2x128xf32>
    %221 = arith.mulf %216, %220 : vector<2x128xf32>
    %222 = vector.shape_cast %198 : vector<2x32xf32> to vector<2x1x32xf32>
    %223 = vector.broadcast %222 : vector<2x1x32xf32> to vector<2x16x32xf32>
    %224 = arith.mulf %223, %0 : vector<2x16x32xf32>
    %cst_84 = arith.constant dense<0.000000e+00> : vector<2x16xf32>
    %225 = vector.multi_reduction <add>, %224, %cst_84 [2] : vector<2x16x32xf32> to vector<2x16xf32>
    %cst_85 = arith.constant 0.000000e+00 : f32
    %226 = vector.broadcast %cst_85 : f32 to vector<2x16xf32>
    %227 = arith.cmpf ogt, %1, %226 : vector<2x16xf32>
    %cst_86 = arith.constant -1.000000e+30 : f32
    %228 = vector.broadcast %cst_86 : f32 to vector<2x16xf32>
    %229 = arith.select %227, %225, %228 : vector<2x16xi1>, vector<2x16xf32>
    %cst_87 = arith.constant dense<0xFF800000> : vector<2xf32>
    %230 = vector.multi_reduction <maximumf>, %229, %cst_87 [1] : vector<2x16xf32> to vector<2xf32>
    %231 = vector.shape_cast %230 : vector<2xf32> to vector<2x1xf32>
    %232 = vector.broadcast %231 : vector<2x1xf32> to vector<2x16xf32>
    %233 = arith.subf %229, %232 : vector<2x16xf32>
    %234 = math.exp %233 : vector<2x16xf32>
    %cst_88 = arith.constant dense<0.000000e+00> : vector<2xf32>
    %235 = vector.multi_reduction <add>, %234, %cst_88 [1] : vector<2x16xf32> to vector<2xf32>
    %236 = vector.shape_cast %235 : vector<2xf32> to vector<2x1xf32>
    %237 = tpu.reciprocal %236 {approx = true} : vector<2x1xf32> -> vector<2x1xf32>
    %238 = vector.broadcast %237 : vector<2x1xf32> to vector<2x16xf32>
    %239 = arith.mulf %234, %238 : vector<2x16xf32>
    %240 = vector.shape_cast %239 : vector<2x16xf32> to vector<2x16x1xf32>
    %241 = vector.broadcast %240 : vector<2x16x1xf32> to vector<2x16x128xf32>
    %242 = arith.mulf %241, %2 : vector<2x16x128xf32>
    %cst_89 = arith.constant dense<0.000000e+00> : vector<2x128xf32>
    %243 = vector.multi_reduction <add>, %242, %cst_89 [1] : vector<2x16x128xf32> to vector<2x128xf32>
    %cst_90 = arith.constant 0.000000e+00 : f32
    %244 = vector.broadcast %cst_90 : f32 to vector<2x128xf32>
    %245 = arith.cmpf ogt, %207, %244 : vector<2x128xf32>
    %cst_91 = arith.constant -1.000000e+30 : f32
    %246 = vector.broadcast %cst_91 : f32 to vector<2x128xf32>
    %247 = arith.select %245, %243, %246 : vector<2x128xi1>, vector<2x128xf32>
    %cst_92 = arith.constant dense<0xFF800000> : vector<2xf32>
    %248 = vector.multi_reduction <maximumf>, %247, %cst_92 [1] : vector<2x128xf32> to vector<2xf32>
    %249 = vector.shape_cast %248 : vector<2xf32> to vector<2x1xf32>
    %250 = vector.broadcast %249 : vector<2x1xf32> to vector<2x128xf32>
    %251 = arith.subf %247, %250 : vector<2x128xf32>
    %252 = math.exp %251 : vector<2x128xf32>
    %cst_93 = arith.constant dense<0.000000e+00> : vector<2xf32>
    %253 = vector.multi_reduction <add>, %252, %cst_93 [1] : vector<2x128xf32> to vector<2xf32>
    %254 = vector.shape_cast %253 : vector<2xf32> to vector<2x1xf32>
    %255 = tpu.reciprocal %254 {approx = true} : vector<2x1xf32> -> vector<2x1xf32>
    %256 = vector.broadcast %255 : vector<2x1xf32> to vector<2x128xf32>
    %257 = arith.mulf %252, %256 : vector<2x128xf32>
    %c1_94 = arith.constant 1 : index
    %c0_95 = arith.constant 0 : index
    %c0_96 = arith.constant 0 : index
    %258 = vector.load %arg3[%c1_94, %c0_95, %c0_96] : memref<7x2x1xf32, #tpu.memory_space<vmem>>, vector<1x2x1xf32>
    %259 = vector.shape_cast %258 : vector<1x2x1xf32> to vector<2x1xf32>
    %260 = vector.broadcast %204 : vector<2x1xf32> to vector<2x128xf32>
    %261 = arith.mulf %260, %257 : vector<2x128xf32>
    %cst_97 = arith.constant 1.000000e+00 : f32
    %262 = vector.broadcast %cst_97 : f32 to vector<2x1xf32>
    %263 = arith.subf %262, %204 : vector<2x1xf32>
    %264 = vector.broadcast %263 : vector<2x1xf32> to vector<2x128xf32>
    %265 = arith.mulf %264, %221 : vector<2x128xf32>
    %266 = arith.addf %261, %265 : vector<2x128xf32>
    %cst_98 = arith.constant 0.000000e+00 : f32
    %267 = vector.broadcast %cst_98 : f32 to vector<2x1xf32>
    %268 = arith.cmpf ogt, %259, %267 : vector<2x1xf32>
    %269 = vector.shape_cast %268 : vector<2x1xi1> to vector<2x1xi1>
    %270 = vector.broadcast %269 : vector<2x1xi1> to vector<2x128xi1>
    %271 = arith.select %270, %266, %221 : vector<2x128xi1>, vector<2x128xf32>
    %272 = tpu.concatenate %194, %166 in 1 : vector<2x32xf32>, vector<2x32xf32> -> vector<2x64xf32>
    %c2 = arith.constant 2 : index
    %c0_99 = arith.constant 0 : index
    %c0_100 = arith.constant 0 : index
    %273 = vector.load %arg1[%c2, %c0_99, %c0_100] : memref<7x2x128xf32, #tpu.memory_space<vmem>>, vector<1x2x128xf32>
    %274 = vector.shape_cast %273 : vector<1x2x128xf32> to vector<2x128xf32>
    %cst_101 = arith.constant dense<0.000000e+00> : vector<2x128xf32>
    %275 = tpu.matmul %272, %13, %cst_101 {dimension_numbers = #tpu.dot_dimension_numbers<[1], [0], [0], [1], [0, 0, 1, 1], [], []>} : vector<2x64xf32>, vector<64x128xf32>, vector<2x128xf32> -> vector<2x128xf32>
    %276 = arith.addf %274, %275 : vector<2x128xf32>
    %277 = arith.negf %276 : vector<2x128xf32>
    %278 = math.exp %277 : vector<2x128xf32>
    %cst_102 = arith.constant 1.000000e+00 : f32
    %279 = vector.broadcast %cst_102 : f32 to vector<2x128xf32>
    %280 = arith.addf %279, %278 : vector<2x128xf32>
    %281 = arith.divf %279, %280 : vector<2x128xf32>
    %282 = math.tanh %276 : vector<2x128xf32>
    %283 = vector.extract_strided_slice %281 {offsets = [0, 0], sizes = [2, 32], strides = [1, 1]} : vector<2x128xf32> to vector<2x32xf32>
    %284 = vector.extract_strided_slice %281 {offsets = [0, 32], sizes = [2, 32], strides = [1, 1]} : vector<2x128xf32> to vector<2x32xf32>
    %285 = vector.extract_strided_slice %281 {offsets = [0, 96], sizes = [2, 32], strides = [1, 1]} : vector<2x128xf32> to vector<2x32xf32>
    %286 = vector.extract_strided_slice %282 {offsets = [0, 64], sizes = [2, 32], strides = [1, 1]} : vector<2x128xf32> to vector<2x32xf32>
    %287 = arith.mulf %284, %164 : vector<2x32xf32>
    %288 = arith.mulf %283, %286 : vector<2x32xf32>
    %289 = arith.addf %287, %288 : vector<2x32xf32>
    %290 = math.tanh %289 : vector<2x32xf32>
    %291 = arith.mulf %285, %290 : vector<2x32xf32>
    %292 = vector.shape_cast %291 : vector<2x32xf32> to vector<2x1x32xf32>
    %293 = vector.broadcast %292 : vector<2x1x32xf32> to vector<2x16x32xf32>
    %294 = arith.mulf %293, %10 : vector<2x16x32xf32>
    %cst_103 = arith.constant dense<0.000000e+00> : vector<2x16xf32>
    %295 = vector.multi_reduction <add>, %294, %cst_103 [2] : vector<2x16x32xf32> to vector<2x16xf32>
    %cst_104 = arith.constant 0.000000e+00 : f32
    %296 = vector.broadcast %cst_104 : f32 to vector<2x16xf32>
    %297 = arith.cmpf ogt, %1, %296 : vector<2x16xf32>
    %cst_105 = arith.constant -1.000000e+30 : f32
    %298 = vector.broadcast %cst_105 : f32 to vector<2x16xf32>
    %299 = arith.select %297, %295, %298 : vector<2x16xi1>, vector<2x16xf32>
    %cst_106 = arith.constant dense<0xFF800000> : vector<2xf32>
    %300 = vector.multi_reduction <maximumf>, %299, %cst_106 [1] : vector<2x16xf32> to vector<2xf32>
    %301 = vector.shape_cast %300 : vector<2xf32> to vector<2x1xf32>
    %302 = vector.broadcast %301 : vector<2x1xf32> to vector<2x16xf32>
    %303 = arith.subf %299, %302 : vector<2x16xf32>
    %304 = math.exp %303 : vector<2x16xf32>
    %cst_107 = arith.constant dense<0.000000e+00> : vector<2xf32>
    %305 = vector.multi_reduction <add>, %304, %cst_107 [1] : vector<2x16xf32> to vector<2xf32>
    %306 = vector.shape_cast %305 : vector<2xf32> to vector<2x1xf32>
    %307 = tpu.reciprocal %306 {approx = true} : vector<2x1xf32> -> vector<2x1xf32>
    %308 = vector.broadcast %307 : vector<2x1xf32> to vector<2x16xf32>
    %309 = arith.mulf %304, %308 : vector<2x16xf32>
    %310 = vector.shape_cast %309 : vector<2x16xf32> to vector<2x16x1xf32>
    %311 = vector.broadcast %310 : vector<2x16x1xf32> to vector<2x16x32xf32>
    %312 = arith.mulf %311, %12 : vector<2x16x32xf32>
    %cst_108 = arith.constant dense<0.000000e+00> : vector<2x32xf32>
    %313 = vector.multi_reduction <add>, %312, %cst_108 [1] : vector<2x16x32xf32> to vector<2x32xf32>
    %cst_109 = arith.constant dense<0.000000e+00> : vector<2x32xf32>
    %314 = tpu.matmul %291, %14, %cst_109 {dimension_numbers = #tpu.dot_dimension_numbers<[1], [0], [0], [1], [0, 0, 1, 1], [], []>} : vector<2x32xf32>, vector<32x32xf32>, vector<2x32xf32> -> vector<2x32xf32>
    %cst_110 = arith.constant dense<0.000000e+00> : vector<2x32xf32>
    %315 = tpu.matmul %313, %15, %cst_110 {dimension_numbers = #tpu.dot_dimension_numbers<[1], [0], [0], [1], [0, 0, 1, 1], [], []>} : vector<2x32xf32>, vector<32x32xf32>, vector<2x32xf32> -> vector<2x32xf32>
    %316 = arith.addf %314, %315 : vector<2x32xf32>
    %317 = vector.broadcast %16 : vector<1x32xf32> to vector<2x32xf32>
    %318 = arith.addf %316, %317 : vector<2x32xf32>
    %319 = math.tanh %318 : vector<2x32xf32>
    %cst_111 = arith.constant dense<0.000000e+00> : vector<2x256xf32>
    %320 = tpu.matmul %319, %17, %cst_111 {dimension_numbers = #tpu.dot_dimension_numbers<[1], [0], [0], [1], [0, 0, 1, 1], [], []>} : vector<2x32xf32>, vector<32x256xf32>, vector<2x256xf32> -> vector<2x256xf32>
    %321 = vector.broadcast %18 : vector<1x256xf32> to vector<2x256xf32>
    %322 = arith.addf %320, %321 : vector<2x256xf32>
    %323 = vector.extract_strided_slice %322 {offsets = [0, 0], sizes = [2, 32], strides = [1, 1]} : vector<2x256xf32> to vector<2x32xf32>
    %324 = vector.extract_strided_slice %322 {offsets = [0, 32], sizes = [2, 1], strides = [1, 1]} : vector<2x256xf32> to vector<2x1xf32>
    %325 = arith.negf %324 : vector<2x1xf32>
    %326 = math.exp %325 : vector<2x1xf32>
    %cst_112 = arith.constant 1.000000e+00 : f32
    %327 = vector.broadcast %cst_112 : f32 to vector<2x1xf32>
    %328 = arith.addf %327, %326 : vector<2x1xf32>
    %329 = arith.divf %327, %328 : vector<2x1xf32>
    %330 = vector.extract_strided_slice %322 {offsets = [0, 128], sizes = [2, 128], strides = [1, 1]} : vector<2x256xf32> to vector<2x128xf32>
    %c2_113 = arith.constant 2 : index
    %c0_114 = arith.constant 0 : index
    %c0_115 = arith.constant 0 : index
    %331 = vector.load %arg2[%c2_113, %c0_114, %c0_115] : memref<7x2x128xf32, #tpu.memory_space<vmem>>, vector<1x2x128xf32>
    %332 = vector.shape_cast %331 : vector<1x2x128xf32> to vector<2x128xf32>
    %cst_116 = arith.constant 0.000000e+00 : f32
    %333 = vector.broadcast %cst_116 : f32 to vector<2x128xf32>
    %334 = arith.cmpf ogt, %332, %333 : vector<2x128xf32>
    %cst_117 = arith.constant -1.000000e+30 : f32
    %335 = vector.broadcast %cst_117 : f32 to vector<2x128xf32>
    %336 = arith.select %334, %330, %335 : vector<2x128xi1>, vector<2x128xf32>
    %cst_118 = arith.constant dense<0xFF800000> : vector<2xf32>
    %337 = vector.multi_reduction <maximumf>, %336, %cst_118 [1] : vector<2x128xf32> to vector<2xf32>
    %338 = vector.shape_cast %337 : vector<2xf32> to vector<2x1xf32>
    %339 = vector.broadcast %338 : vector<2x1xf32> to vector<2x128xf32>
    %340 = arith.subf %336, %339 : vector<2x128xf32>
    %341 = math.exp %340 : vector<2x128xf32>
    %cst_119 = arith.constant dense<0.000000e+00> : vector<2xf32>
    %342 = vector.multi_reduction <add>, %341, %cst_119 [1] : vector<2x128xf32> to vector<2xf32>
    %343 = vector.shape_cast %342 : vector<2xf32> to vector<2x1xf32>
    %344 = tpu.reciprocal %343 {approx = true} : vector<2x1xf32> -> vector<2x1xf32>
    %345 = vector.broadcast %344 : vector<2x1xf32> to vector<2x128xf32>
    %346 = arith.mulf %341, %345 : vector<2x128xf32>
    %347 = vector.shape_cast %323 : vector<2x32xf32> to vector<2x1x32xf32>
    %348 = vector.broadcast %347 : vector<2x1x32xf32> to vector<2x16x32xf32>
    %349 = arith.mulf %348, %0 : vector<2x16x32xf32>
    %cst_120 = arith.constant dense<0.000000e+00> : vector<2x16xf32>
    %350 = vector.multi_reduction <add>, %349, %cst_120 [2] : vector<2x16x32xf32> to vector<2x16xf32>
    %cst_121 = arith.constant 0.000000e+00 : f32
    %351 = vector.broadcast %cst_121 : f32 to vector<2x16xf32>
    %352 = arith.cmpf ogt, %1, %351 : vector<2x16xf32>
    %cst_122 = arith.constant -1.000000e+30 : f32
    %353 = vector.broadcast %cst_122 : f32 to vector<2x16xf32>
    %354 = arith.select %352, %350, %353 : vector<2x16xi1>, vector<2x16xf32>
    %cst_123 = arith.constant dense<0xFF800000> : vector<2xf32>
    %355 = vector.multi_reduction <maximumf>, %354, %cst_123 [1] : vector<2x16xf32> to vector<2xf32>
    %356 = vector.shape_cast %355 : vector<2xf32> to vector<2x1xf32>
    %357 = vector.broadcast %356 : vector<2x1xf32> to vector<2x16xf32>
    %358 = arith.subf %354, %357 : vector<2x16xf32>
    %359 = math.exp %358 : vector<2x16xf32>
    %cst_124 = arith.constant dense<0.000000e+00> : vector<2xf32>
    %360 = vector.multi_reduction <add>, %359, %cst_124 [1] : vector<2x16xf32> to vector<2xf32>
    %361 = vector.shape_cast %360 : vector<2xf32> to vector<2x1xf32>
    %362 = tpu.reciprocal %361 {approx = true} : vector<2x1xf32> -> vector<2x1xf32>
    %363 = vector.broadcast %362 : vector<2x1xf32> to vector<2x16xf32>
    %364 = arith.mulf %359, %363 : vector<2x16xf32>
    %365 = vector.shape_cast %364 : vector<2x16xf32> to vector<2x16x1xf32>
    %366 = vector.broadcast %365 : vector<2x16x1xf32> to vector<2x16x128xf32>
    %367 = arith.mulf %366, %2 : vector<2x16x128xf32>
    %cst_125 = arith.constant dense<0.000000e+00> : vector<2x128xf32>
    %368 = vector.multi_reduction <add>, %367, %cst_125 [1] : vector<2x16x128xf32> to vector<2x128xf32>
    %cst_126 = arith.constant 0.000000e+00 : f32
    %369 = vector.broadcast %cst_126 : f32 to vector<2x128xf32>
    %370 = arith.cmpf ogt, %332, %369 : vector<2x128xf32>
    %cst_127 = arith.constant -1.000000e+30 : f32
    %371 = vector.broadcast %cst_127 : f32 to vector<2x128xf32>
    %372 = arith.select %370, %368, %371 : vector<2x128xi1>, vector<2x128xf32>
    %cst_128 = arith.constant dense<0xFF800000> : vector<2xf32>
    %373 = vector.multi_reduction <maximumf>, %372, %cst_128 [1] : vector<2x128xf32> to vector<2xf32>
    %374 = vector.shape_cast %373 : vector<2xf32> to vector<2x1xf32>
    %375 = vector.broadcast %374 : vector<2x1xf32> to vector<2x128xf32>
    %376 = arith.subf %372, %375 : vector<2x128xf32>
    %377 = math.exp %376 : vector<2x128xf32>
    %cst_129 = arith.constant dense<0.000000e+00> : vector<2xf32>
    %378 = vector.multi_reduction <add>, %377, %cst_129 [1] : vector<2x128xf32> to vector<2xf32>
    %379 = vector.shape_cast %378 : vector<2xf32> to vector<2x1xf32>
    %380 = tpu.reciprocal %379 {approx = true} : vector<2x1xf32> -> vector<2x1xf32>
    %381 = vector.broadcast %380 : vector<2x1xf32> to vector<2x128xf32>
    %382 = arith.mulf %377, %381 : vector<2x128xf32>
    %c2_130 = arith.constant 2 : index
    %c0_131 = arith.constant 0 : index
    %c0_132 = arith.constant 0 : index
    %383 = vector.load %arg3[%c2_130, %c0_131, %c0_132] : memref<7x2x1xf32, #tpu.memory_space<vmem>>, vector<1x2x1xf32>
    %384 = vector.shape_cast %383 : vector<1x2x1xf32> to vector<2x1xf32>
    %385 = vector.broadcast %329 : vector<2x1xf32> to vector<2x128xf32>
    %386 = arith.mulf %385, %382 : vector<2x128xf32>
    %cst_133 = arith.constant 1.000000e+00 : f32
    %387 = vector.broadcast %cst_133 : f32 to vector<2x1xf32>
    %388 = arith.subf %387, %329 : vector<2x1xf32>
    %389 = vector.broadcast %388 : vector<2x1xf32> to vector<2x128xf32>
    %390 = arith.mulf %389, %346 : vector<2x128xf32>
    %391 = arith.addf %386, %390 : vector<2x128xf32>
    %cst_134 = arith.constant 0.000000e+00 : f32
    %392 = vector.broadcast %cst_134 : f32 to vector<2x1xf32>
    %393 = arith.cmpf ogt, %384, %392 : vector<2x1xf32>
    %394 = vector.shape_cast %393 : vector<2x1xi1> to vector<2x1xi1>
    %395 = vector.broadcast %394 : vector<2x1xi1> to vector<2x128xi1>
    %396 = arith.select %395, %391, %346 : vector<2x128xi1>, vector<2x128xf32>
    %397 = tpu.concatenate %319, %291 in 1 : vector<2x32xf32>, vector<2x32xf32> -> vector<2x64xf32>
    %c3 = arith.constant 3 : index
    %c0_135 = arith.constant 0 : index
    %c0_136 = arith.constant 0 : index
    %398 = vector.load %arg1[%c3, %c0_135, %c0_136] : memref<7x2x128xf32, #tpu.memory_space<vmem>>, vector<1x2x128xf32>
    %399 = vector.shape_cast %398 : vector<1x2x128xf32> to vector<2x128xf32>
    %cst_137 = arith.constant dense<0.000000e+00> : vector<2x128xf32>
    %400 = tpu.matmul %397, %13, %cst_137 {dimension_numbers = #tpu.dot_dimension_numbers<[1], [0], [0], [1], [0, 0, 1, 1], [], []>} : vector<2x64xf32>, vector<64x128xf32>, vector<2x128xf32> -> vector<2x128xf32>
    %401 = arith.addf %399, %400 : vector<2x128xf32>
    %402 = arith.negf %401 : vector<2x128xf32>
    %403 = math.exp %402 : vector<2x128xf32>
    %cst_138 = arith.constant 1.000000e+00 : f32
    %404 = vector.broadcast %cst_138 : f32 to vector<2x128xf32>
    %405 = arith.addf %404, %403 : vector<2x128xf32>
    %406 = arith.divf %404, %405 : vector<2x128xf32>
    %407 = math.tanh %401 : vector<2x128xf32>
    %408 = vector.extract_strided_slice %406 {offsets = [0, 0], sizes = [2, 32], strides = [1, 1]} : vector<2x128xf32> to vector<2x32xf32>
    %409 = vector.extract_strided_slice %406 {offsets = [0, 32], sizes = [2, 32], strides = [1, 1]} : vector<2x128xf32> to vector<2x32xf32>
    %410 = vector.extract_strided_slice %406 {offsets = [0, 96], sizes = [2, 32], strides = [1, 1]} : vector<2x128xf32> to vector<2x32xf32>
    %411 = vector.extract_strided_slice %407 {offsets = [0, 64], sizes = [2, 32], strides = [1, 1]} : vector<2x128xf32> to vector<2x32xf32>
    %412 = arith.mulf %409, %289 : vector<2x32xf32>
    %413 = arith.mulf %408, %411 : vector<2x32xf32>
    %414 = arith.addf %412, %413 : vector<2x32xf32>
    %415 = math.tanh %414 : vector<2x32xf32>
    %416 = arith.mulf %410, %415 : vector<2x32xf32>
    %417 = vector.shape_cast %416 : vector<2x32xf32> to vector<2x1x32xf32>
    %418 = vector.broadcast %417 : vector<2x1x32xf32> to vector<2x16x32xf32>
    %419 = arith.mulf %418, %10 : vector<2x16x32xf32>
    %cst_139 = arith.constant dense<0.000000e+00> : vector<2x16xf32>
    %420 = vector.multi_reduction <add>, %419, %cst_139 [2] : vector<2x16x32xf32> to vector<2x16xf32>
    %cst_140 = arith.constant 0.000000e+00 : f32
    %421 = vector.broadcast %cst_140 : f32 to vector<2x16xf32>
    %422 = arith.cmpf ogt, %1, %421 : vector<2x16xf32>
    %cst_141 = arith.constant -1.000000e+30 : f32
    %423 = vector.broadcast %cst_141 : f32 to vector<2x16xf32>
    %424 = arith.select %422, %420, %423 : vector<2x16xi1>, vector<2x16xf32>
    %cst_142 = arith.constant dense<0xFF800000> : vector<2xf32>
    %425 = vector.multi_reduction <maximumf>, %424, %cst_142 [1] : vector<2x16xf32> to vector<2xf32>
    %426 = vector.shape_cast %425 : vector<2xf32> to vector<2x1xf32>
    %427 = vector.broadcast %426 : vector<2x1xf32> to vector<2x16xf32>
    %428 = arith.subf %424, %427 : vector<2x16xf32>
    %429 = math.exp %428 : vector<2x16xf32>
    %cst_143 = arith.constant dense<0.000000e+00> : vector<2xf32>
    %430 = vector.multi_reduction <add>, %429, %cst_143 [1] : vector<2x16xf32> to vector<2xf32>
    %431 = vector.shape_cast %430 : vector<2xf32> to vector<2x1xf32>
    %432 = tpu.reciprocal %431 {approx = true} : vector<2x1xf32> -> vector<2x1xf32>
    %433 = vector.broadcast %432 : vector<2x1xf32> to vector<2x16xf32>
    %434 = arith.mulf %429, %433 : vector<2x16xf32>
    %435 = vector.shape_cast %434 : vector<2x16xf32> to vector<2x16x1xf32>
    %436 = vector.broadcast %435 : vector<2x16x1xf32> to vector<2x16x32xf32>
    %437 = arith.mulf %436, %12 : vector<2x16x32xf32>
    %cst_144 = arith.constant dense<0.000000e+00> : vector<2x32xf32>
    %438 = vector.multi_reduction <add>, %437, %cst_144 [1] : vector<2x16x32xf32> to vector<2x32xf32>
    %cst_145 = arith.constant dense<0.000000e+00> : vector<2x32xf32>
    %439 = tpu.matmul %416, %14, %cst_145 {dimension_numbers = #tpu.dot_dimension_numbers<[1], [0], [0], [1], [0, 0, 1, 1], [], []>} : vector<2x32xf32>, vector<32x32xf32>, vector<2x32xf32> -> vector<2x32xf32>
    %cst_146 = arith.constant dense<0.000000e+00> : vector<2x32xf32>
    %440 = tpu.matmul %438, %15, %cst_146 {dimension_numbers = #tpu.dot_dimension_numbers<[1], [0], [0], [1], [0, 0, 1, 1], [], []>} : vector<2x32xf32>, vector<32x32xf32>, vector<2x32xf32> -> vector<2x32xf32>
    %441 = arith.addf %439, %440 : vector<2x32xf32>
    %442 = vector.broadcast %16 : vector<1x32xf32> to vector<2x32xf32>
    %443 = arith.addf %441, %442 : vector<2x32xf32>
    %444 = math.tanh %443 : vector<2x32xf32>
    %cst_147 = arith.constant dense<0.000000e+00> : vector<2x256xf32>
    %445 = tpu.matmul %444, %17, %cst_147 {dimension_numbers = #tpu.dot_dimension_numbers<[1], [0], [0], [1], [0, 0, 1, 1], [], []>} : vector<2x32xf32>, vector<32x256xf32>, vector<2x256xf32> -> vector<2x256xf32>
    %446 = vector.broadcast %18 : vector<1x256xf32> to vector<2x256xf32>
    %447 = arith.addf %445, %446 : vector<2x256xf32>
    %448 = vector.extract_strided_slice %447 {offsets = [0, 0], sizes = [2, 32], strides = [1, 1]} : vector<2x256xf32> to vector<2x32xf32>
    %449 = vector.extract_strided_slice %447 {offsets = [0, 32], sizes = [2, 1], strides = [1, 1]} : vector<2x256xf32> to vector<2x1xf32>
    %450 = arith.negf %449 : vector<2x1xf32>
    %451 = math.exp %450 : vector<2x1xf32>
    %cst_148 = arith.constant 1.000000e+00 : f32
    %452 = vector.broadcast %cst_148 : f32 to vector<2x1xf32>
    %453 = arith.addf %452, %451 : vector<2x1xf32>
    %454 = arith.divf %452, %453 : vector<2x1xf32>
    %455 = vector.extract_strided_slice %447 {offsets = [0, 128], sizes = [2, 128], strides = [1, 1]} : vector<2x256xf32> to vector<2x128xf32>
    %c3_149 = arith.constant 3 : index
    %c0_150 = arith.constant 0 : index
    %c0_151 = arith.constant 0 : index
    %456 = vector.load %arg2[%c3_149, %c0_150, %c0_151] : memref<7x2x128xf32, #tpu.memory_space<vmem>>, vector<1x2x128xf32>
    %457 = vector.shape_cast %456 : vector<1x2x128xf32> to vector<2x128xf32>
    %cst_152 = arith.constant 0.000000e+00 : f32
    %458 = vector.broadcast %cst_152 : f32 to vector<2x128xf32>
    %459 = arith.cmpf ogt, %457, %458 : vector<2x128xf32>
    %cst_153 = arith.constant -1.000000e+30 : f32
    %460 = vector.broadcast %cst_153 : f32 to vector<2x128xf32>
    %461 = arith.select %459, %455, %460 : vector<2x128xi1>, vector<2x128xf32>
    %cst_154 = arith.constant dense<0xFF800000> : vector<2xf32>
    %462 = vector.multi_reduction <maximumf>, %461, %cst_154 [1] : vector<2x128xf32> to vector<2xf32>
    %463 = vector.shape_cast %462 : vector<2xf32> to vector<2x1xf32>
    %464 = vector.broadcast %463 : vector<2x1xf32> to vector<2x128xf32>
    %465 = arith.subf %461, %464 : vector<2x128xf32>
    %466 = math.exp %465 : vector<2x128xf32>
    %cst_155 = arith.constant dense<0.000000e+00> : vector<2xf32>
    %467 = vector.multi_reduction <add>, %466, %cst_155 [1] : vector<2x128xf32> to vector<2xf32>
    %468 = vector.shape_cast %467 : vector<2xf32> to vector<2x1xf32>
    %469 = tpu.reciprocal %468 {approx = true} : vector<2x1xf32> -> vector<2x1xf32>
    %470 = vector.broadcast %469 : vector<2x1xf32> to vector<2x128xf32>
    %471 = arith.mulf %466, %470 : vector<2x128xf32>
    %472 = vector.shape_cast %448 : vector<2x32xf32> to vector<2x1x32xf32>
    %473 = vector.broadcast %472 : vector<2x1x32xf32> to vector<2x16x32xf32>
    %474 = arith.mulf %473, %0 : vector<2x16x32xf32>
    %cst_156 = arith.constant dense<0.000000e+00> : vector<2x16xf32>
    %475 = vector.multi_reduction <add>, %474, %cst_156 [2] : vector<2x16x32xf32> to vector<2x16xf32>
    %cst_157 = arith.constant 0.000000e+00 : f32
    %476 = vector.broadcast %cst_157 : f32 to vector<2x16xf32>
    %477 = arith.cmpf ogt, %1, %476 : vector<2x16xf32>
    %cst_158 = arith.constant -1.000000e+30 : f32
    %478 = vector.broadcast %cst_158 : f32 to vector<2x16xf32>
    %479 = arith.select %477, %475, %478 : vector<2x16xi1>, vector<2x16xf32>
    %cst_159 = arith.constant dense<0xFF800000> : vector<2xf32>
    %480 = vector.multi_reduction <maximumf>, %479, %cst_159 [1] : vector<2x16xf32> to vector<2xf32>
    %481 = vector.shape_cast %480 : vector<2xf32> to vector<2x1xf32>
    %482 = vector.broadcast %481 : vector<2x1xf32> to vector<2x16xf32>
    %483 = arith.subf %479, %482 : vector<2x16xf32>
    %484 = math.exp %483 : vector<2x16xf32>
    %cst_160 = arith.constant dense<0.000000e+00> : vector<2xf32>
    %485 = vector.multi_reduction <add>, %484, %cst_160 [1] : vector<2x16xf32> to vector<2xf32>
    %486 = vector.shape_cast %485 : vector<2xf32> to vector<2x1xf32>
    %487 = tpu.reciprocal %486 {approx = true} : vector<2x1xf32> -> vector<2x1xf32>
    %488 = vector.broadcast %487 : vector<2x1xf32> to vector<2x16xf32>
    %489 = arith.mulf %484, %488 : vector<2x16xf32>
    %490 = vector.shape_cast %489 : vector<2x16xf32> to vector<2x16x1xf32>
    %491 = vector.broadcast %490 : vector<2x16x1xf32> to vector<2x16x128xf32>
    %492 = arith.mulf %491, %2 : vector<2x16x128xf32>
    %cst_161 = arith.constant dense<0.000000e+00> : vector<2x128xf32>
    %493 = vector.multi_reduction <add>, %492, %cst_161 [1] : vector<2x16x128xf32> to vector<2x128xf32>
    %cst_162 = arith.constant 0.000000e+00 : f32
    %494 = vector.broadcast %cst_162 : f32 to vector<2x128xf32>
    %495 = arith.cmpf ogt, %457, %494 : vector<2x128xf32>
    %cst_163 = arith.constant -1.000000e+30 : f32
    %496 = vector.broadcast %cst_163 : f32 to vector<2x128xf32>
    %497 = arith.select %495, %493, %496 : vector<2x128xi1>, vector<2x128xf32>
    %cst_164 = arith.constant dense<0xFF800000> : vector<2xf32>
    %498 = vector.multi_reduction <maximumf>, %497, %cst_164 [1] : vector<2x128xf32> to vector<2xf32>
    %499 = vector.shape_cast %498 : vector<2xf32> to vector<2x1xf32>
    %500 = vector.broadcast %499 : vector<2x1xf32> to vector<2x128xf32>
    %501 = arith.subf %497, %500 : vector<2x128xf32>
    %502 = math.exp %501 : vector<2x128xf32>
    %cst_165 = arith.constant dense<0.000000e+00> : vector<2xf32>
    %503 = vector.multi_reduction <add>, %502, %cst_165 [1] : vector<2x128xf32> to vector<2xf32>
    %504 = vector.shape_cast %503 : vector<2xf32> to vector<2x1xf32>
    %505 = tpu.reciprocal %504 {approx = true} : vector<2x1xf32> -> vector<2x1xf32>
    %506 = vector.broadcast %505 : vector<2x1xf32> to vector<2x128xf32>
    %507 = arith.mulf %502, %506 : vector<2x128xf32>
    %c3_166 = arith.constant 3 : index
    %c0_167 = arith.constant 0 : index
    %c0_168 = arith.constant 0 : index
    %508 = vector.load %arg3[%c3_166, %c0_167, %c0_168] : memref<7x2x1xf32, #tpu.memory_space<vmem>>, vector<1x2x1xf32>
    %509 = vector.shape_cast %508 : vector<1x2x1xf32> to vector<2x1xf32>
    %510 = vector.broadcast %454 : vector<2x1xf32> to vector<2x128xf32>
    %511 = arith.mulf %510, %507 : vector<2x128xf32>
    %cst_169 = arith.constant 1.000000e+00 : f32
    %512 = vector.broadcast %cst_169 : f32 to vector<2x1xf32>
    %513 = arith.subf %512, %454 : vector<2x1xf32>
    %514 = vector.broadcast %513 : vector<2x1xf32> to vector<2x128xf32>
    %515 = arith.mulf %514, %471 : vector<2x128xf32>
    %516 = arith.addf %511, %515 : vector<2x128xf32>
    %cst_170 = arith.constant 0.000000e+00 : f32
    %517 = vector.broadcast %cst_170 : f32 to vector<2x1xf32>
    %518 = arith.cmpf ogt, %509, %517 : vector<2x1xf32>
    %519 = vector.shape_cast %518 : vector<2x1xi1> to vector<2x1xi1>
    %520 = vector.broadcast %519 : vector<2x1xi1> to vector<2x128xi1>
    %521 = arith.select %520, %516, %471 : vector<2x128xi1>, vector<2x128xf32>
    %522 = tpu.concatenate %444, %416 in 1 : vector<2x32xf32>, vector<2x32xf32> -> vector<2x64xf32>
    %c4 = arith.constant 4 : index
    %c0_171 = arith.constant 0 : index
    %c0_172 = arith.constant 0 : index
    %523 = vector.load %arg1[%c4, %c0_171, %c0_172] : memref<7x2x128xf32, #tpu.memory_space<vmem>>, vector<1x2x128xf32>
    %524 = vector.shape_cast %523 : vector<1x2x128xf32> to vector<2x128xf32>
    %cst_173 = arith.constant dense<0.000000e+00> : vector<2x128xf32>
    %525 = tpu.matmul %522, %13, %cst_173 {dimension_numbers = #tpu.dot_dimension_numbers<[1], [0], [0], [1], [0, 0, 1, 1], [], []>} : vector<2x64xf32>, vector<64x128xf32>, vector<2x128xf32> -> vector<2x128xf32>
    %526 = arith.addf %524, %525 : vector<2x128xf32>
    %527 = arith.negf %526 : vector<2x128xf32>
    %528 = math.exp %527 : vector<2x128xf32>
    %cst_174 = arith.constant 1.000000e+00 : f32
    %529 = vector.broadcast %cst_174 : f32 to vector<2x128xf32>
    %530 = arith.addf %529, %528 : vector<2x128xf32>
    %531 = arith.divf %529, %530 : vector<2x128xf32>
    %532 = math.tanh %526 : vector<2x128xf32>
    %533 = vector.extract_strided_slice %531 {offsets = [0, 0], sizes = [2, 32], strides = [1, 1]} : vector<2x128xf32> to vector<2x32xf32>
    %534 = vector.extract_strided_slice %531 {offsets = [0, 32], sizes = [2, 32], strides = [1, 1]} : vector<2x128xf32> to vector<2x32xf32>
    %535 = vector.extract_strided_slice %531 {offsets = [0, 96], sizes = [2, 32], strides = [1, 1]} : vector<2x128xf32> to vector<2x32xf32>
    %536 = vector.extract_strided_slice %532 {offsets = [0, 64], sizes = [2, 32], strides = [1, 1]} : vector<2x128xf32> to vector<2x32xf32>
    %537 = arith.mulf %534, %414 : vector<2x32xf32>
    %538 = arith.mulf %533, %536 : vector<2x32xf32>
    %539 = arith.addf %537, %538 : vector<2x32xf32>
    %540 = math.tanh %539 : vector<2x32xf32>
    %541 = arith.mulf %535, %540 : vector<2x32xf32>
    %542 = vector.shape_cast %541 : vector<2x32xf32> to vector<2x1x32xf32>
    %543 = vector.broadcast %542 : vector<2x1x32xf32> to vector<2x16x32xf32>
    %544 = arith.mulf %543, %10 : vector<2x16x32xf32>
    %cst_175 = arith.constant dense<0.000000e+00> : vector<2x16xf32>
    %545 = vector.multi_reduction <add>, %544, %cst_175 [2] : vector<2x16x32xf32> to vector<2x16xf32>
    %cst_176 = arith.constant 0.000000e+00 : f32
    %546 = vector.broadcast %cst_176 : f32 to vector<2x16xf32>
    %547 = arith.cmpf ogt, %1, %546 : vector<2x16xf32>
    %cst_177 = arith.constant -1.000000e+30 : f32
    %548 = vector.broadcast %cst_177 : f32 to vector<2x16xf32>
    %549 = arith.select %547, %545, %548 : vector<2x16xi1>, vector<2x16xf32>
    %cst_178 = arith.constant dense<0xFF800000> : vector<2xf32>
    %550 = vector.multi_reduction <maximumf>, %549, %cst_178 [1] : vector<2x16xf32> to vector<2xf32>
    %551 = vector.shape_cast %550 : vector<2xf32> to vector<2x1xf32>
    %552 = vector.broadcast %551 : vector<2x1xf32> to vector<2x16xf32>
    %553 = arith.subf %549, %552 : vector<2x16xf32>
    %554 = math.exp %553 : vector<2x16xf32>
    %cst_179 = arith.constant dense<0.000000e+00> : vector<2xf32>
    %555 = vector.multi_reduction <add>, %554, %cst_179 [1] : vector<2x16xf32> to vector<2xf32>
    %556 = vector.shape_cast %555 : vector<2xf32> to vector<2x1xf32>
    %557 = tpu.reciprocal %556 {approx = true} : vector<2x1xf32> -> vector<2x1xf32>
    %558 = vector.broadcast %557 : vector<2x1xf32> to vector<2x16xf32>
    %559 = arith.mulf %554, %558 : vector<2x16xf32>
    %560 = vector.shape_cast %559 : vector<2x16xf32> to vector<2x16x1xf32>
    %561 = vector.broadcast %560 : vector<2x16x1xf32> to vector<2x16x32xf32>
    %562 = arith.mulf %561, %12 : vector<2x16x32xf32>
    %cst_180 = arith.constant dense<0.000000e+00> : vector<2x32xf32>
    %563 = vector.multi_reduction <add>, %562, %cst_180 [1] : vector<2x16x32xf32> to vector<2x32xf32>
    %cst_181 = arith.constant dense<0.000000e+00> : vector<2x32xf32>
    %564 = tpu.matmul %541, %14, %cst_181 {dimension_numbers = #tpu.dot_dimension_numbers<[1], [0], [0], [1], [0, 0, 1, 1], [], []>} : vector<2x32xf32>, vector<32x32xf32>, vector<2x32xf32> -> vector<2x32xf32>
    %cst_182 = arith.constant dense<0.000000e+00> : vector<2x32xf32>
    %565 = tpu.matmul %563, %15, %cst_182 {dimension_numbers = #tpu.dot_dimension_numbers<[1], [0], [0], [1], [0, 0, 1, 1], [], []>} : vector<2x32xf32>, vector<32x32xf32>, vector<2x32xf32> -> vector<2x32xf32>
    %566 = arith.addf %564, %565 : vector<2x32xf32>
    %567 = vector.broadcast %16 : vector<1x32xf32> to vector<2x32xf32>
    %568 = arith.addf %566, %567 : vector<2x32xf32>
    %569 = math.tanh %568 : vector<2x32xf32>
    %cst_183 = arith.constant dense<0.000000e+00> : vector<2x256xf32>
    %570 = tpu.matmul %569, %17, %cst_183 {dimension_numbers = #tpu.dot_dimension_numbers<[1], [0], [0], [1], [0, 0, 1, 1], [], []>} : vector<2x32xf32>, vector<32x256xf32>, vector<2x256xf32> -> vector<2x256xf32>
    %571 = vector.broadcast %18 : vector<1x256xf32> to vector<2x256xf32>
    %572 = arith.addf %570, %571 : vector<2x256xf32>
    %573 = vector.extract_strided_slice %572 {offsets = [0, 0], sizes = [2, 32], strides = [1, 1]} : vector<2x256xf32> to vector<2x32xf32>
    %574 = vector.extract_strided_slice %572 {offsets = [0, 32], sizes = [2, 1], strides = [1, 1]} : vector<2x256xf32> to vector<2x1xf32>
    %575 = arith.negf %574 : vector<2x1xf32>
    %576 = math.exp %575 : vector<2x1xf32>
    %cst_184 = arith.constant 1.000000e+00 : f32
    %577 = vector.broadcast %cst_184 : f32 to vector<2x1xf32>
    %578 = arith.addf %577, %576 : vector<2x1xf32>
    %579 = arith.divf %577, %578 : vector<2x1xf32>
    %580 = vector.extract_strided_slice %572 {offsets = [0, 128], sizes = [2, 128], strides = [1, 1]} : vector<2x256xf32> to vector<2x128xf32>
    %c4_185 = arith.constant 4 : index
    %c0_186 = arith.constant 0 : index
    %c0_187 = arith.constant 0 : index
    %581 = vector.load %arg2[%c4_185, %c0_186, %c0_187] : memref<7x2x128xf32, #tpu.memory_space<vmem>>, vector<1x2x128xf32>
    %582 = vector.shape_cast %581 : vector<1x2x128xf32> to vector<2x128xf32>
    %cst_188 = arith.constant 0.000000e+00 : f32
    %583 = vector.broadcast %cst_188 : f32 to vector<2x128xf32>
    %584 = arith.cmpf ogt, %582, %583 : vector<2x128xf32>
    %cst_189 = arith.constant -1.000000e+30 : f32
    %585 = vector.broadcast %cst_189 : f32 to vector<2x128xf32>
    %586 = arith.select %584, %580, %585 : vector<2x128xi1>, vector<2x128xf32>
    %cst_190 = arith.constant dense<0xFF800000> : vector<2xf32>
    %587 = vector.multi_reduction <maximumf>, %586, %cst_190 [1] : vector<2x128xf32> to vector<2xf32>
    %588 = vector.shape_cast %587 : vector<2xf32> to vector<2x1xf32>
    %589 = vector.broadcast %588 : vector<2x1xf32> to vector<2x128xf32>
    %590 = arith.subf %586, %589 : vector<2x128xf32>
    %591 = math.exp %590 : vector<2x128xf32>
    %cst_191 = arith.constant dense<0.000000e+00> : vector<2xf32>
    %592 = vector.multi_reduction <add>, %591, %cst_191 [1] : vector<2x128xf32> to vector<2xf32>
    %593 = vector.shape_cast %592 : vector<2xf32> to vector<2x1xf32>
    %594 = tpu.reciprocal %593 {approx = true} : vector<2x1xf32> -> vector<2x1xf32>
    %595 = vector.broadcast %594 : vector<2x1xf32> to vector<2x128xf32>
    %596 = arith.mulf %591, %595 : vector<2x128xf32>
    %597 = vector.shape_cast %573 : vector<2x32xf32> to vector<2x1x32xf32>
    %598 = vector.broadcast %597 : vector<2x1x32xf32> to vector<2x16x32xf32>
    %599 = arith.mulf %598, %0 : vector<2x16x32xf32>
    %cst_192 = arith.constant dense<0.000000e+00> : vector<2x16xf32>
    %600 = vector.multi_reduction <add>, %599, %cst_192 [2] : vector<2x16x32xf32> to vector<2x16xf32>
    %cst_193 = arith.constant 0.000000e+00 : f32
    %601 = vector.broadcast %cst_193 : f32 to vector<2x16xf32>
    %602 = arith.cmpf ogt, %1, %601 : vector<2x16xf32>
    %cst_194 = arith.constant -1.000000e+30 : f32
    %603 = vector.broadcast %cst_194 : f32 to vector<2x16xf32>
    %604 = arith.select %602, %600, %603 : vector<2x16xi1>, vector<2x16xf32>
    %cst_195 = arith.constant dense<0xFF800000> : vector<2xf32>
    %605 = vector.multi_reduction <maximumf>, %604, %cst_195 [1] : vector<2x16xf32> to vector<2xf32>
    %606 = vector.shape_cast %605 : vector<2xf32> to vector<2x1xf32>
    %607 = vector.broadcast %606 : vector<2x1xf32> to vector<2x16xf32>
    %608 = arith.subf %604, %607 : vector<2x16xf32>
    %609 = math.exp %608 : vector<2x16xf32>
    %cst_196 = arith.constant dense<0.000000e+00> : vector<2xf32>
    %610 = vector.multi_reduction <add>, %609, %cst_196 [1] : vector<2x16xf32> to vector<2xf32>
    %611 = vector.shape_cast %610 : vector<2xf32> to vector<2x1xf32>
    %612 = tpu.reciprocal %611 {approx = true} : vector<2x1xf32> -> vector<2x1xf32>
    %613 = vector.broadcast %612 : vector<2x1xf32> to vector<2x16xf32>
    %614 = arith.mulf %609, %613 : vector<2x16xf32>
    %615 = vector.shape_cast %614 : vector<2x16xf32> to vector<2x16x1xf32>
    %616 = vector.broadcast %615 : vector<2x16x1xf32> to vector<2x16x128xf32>
    %617 = arith.mulf %616, %2 : vector<2x16x128xf32>
    %cst_197 = arith.constant dense<0.000000e+00> : vector<2x128xf32>
    %618 = vector.multi_reduction <add>, %617, %cst_197 [1] : vector<2x16x128xf32> to vector<2x128xf32>
    %cst_198 = arith.constant 0.000000e+00 : f32
    %619 = vector.broadcast %cst_198 : f32 to vector<2x128xf32>
    %620 = arith.cmpf ogt, %582, %619 : vector<2x128xf32>
    %cst_199 = arith.constant -1.000000e+30 : f32
    %621 = vector.broadcast %cst_199 : f32 to vector<2x128xf32>
    %622 = arith.select %620, %618, %621 : vector<2x128xi1>, vector<2x128xf32>
    %cst_200 = arith.constant dense<0xFF800000> : vector<2xf32>
    %623 = vector.multi_reduction <maximumf>, %622, %cst_200 [1] : vector<2x128xf32> to vector<2xf32>
    %624 = vector.shape_cast %623 : vector<2xf32> to vector<2x1xf32>
    %625 = vector.broadcast %624 : vector<2x1xf32> to vector<2x128xf32>
    %626 = arith.subf %622, %625 : vector<2x128xf32>
    %627 = math.exp %626 : vector<2x128xf32>
    %cst_201 = arith.constant dense<0.000000e+00> : vector<2xf32>
    %628 = vector.multi_reduction <add>, %627, %cst_201 [1] : vector<2x128xf32> to vector<2xf32>
    %629 = vector.shape_cast %628 : vector<2xf32> to vector<2x1xf32>
    %630 = tpu.reciprocal %629 {approx = true} : vector<2x1xf32> -> vector<2x1xf32>
    %631 = vector.broadcast %630 : vector<2x1xf32> to vector<2x128xf32>
    %632 = arith.mulf %627, %631 : vector<2x128xf32>
    %c4_202 = arith.constant 4 : index
    %c0_203 = arith.constant 0 : index
    %c0_204 = arith.constant 0 : index
    %633 = vector.load %arg3[%c4_202, %c0_203, %c0_204] : memref<7x2x1xf32, #tpu.memory_space<vmem>>, vector<1x2x1xf32>
    %634 = vector.shape_cast %633 : vector<1x2x1xf32> to vector<2x1xf32>
    %635 = vector.broadcast %579 : vector<2x1xf32> to vector<2x128xf32>
    %636 = arith.mulf %635, %632 : vector<2x128xf32>
    %cst_205 = arith.constant 1.000000e+00 : f32
    %637 = vector.broadcast %cst_205 : f32 to vector<2x1xf32>
    %638 = arith.subf %637, %579 : vector<2x1xf32>
    %639 = vector.broadcast %638 : vector<2x1xf32> to vector<2x128xf32>
    %640 = arith.mulf %639, %596 : vector<2x128xf32>
    %641 = arith.addf %636, %640 : vector<2x128xf32>
    %cst_206 = arith.constant 0.000000e+00 : f32
    %642 = vector.broadcast %cst_206 : f32 to vector<2x1xf32>
    %643 = arith.cmpf ogt, %634, %642 : vector<2x1xf32>
    %644 = vector.shape_cast %643 : vector<2x1xi1> to vector<2x1xi1>
    %645 = vector.broadcast %644 : vector<2x1xi1> to vector<2x128xi1>
    %646 = arith.select %645, %641, %596 : vector<2x128xi1>, vector<2x128xf32>
    %647 = tpu.concatenate %569, %541 in 1 : vector<2x32xf32>, vector<2x32xf32> -> vector<2x64xf32>
    %c5 = arith.constant 5 : index
    %c0_207 = arith.constant 0 : index
    %c0_208 = arith.constant 0 : index
    %648 = vector.load %arg1[%c5, %c0_207, %c0_208] : memref<7x2x128xf32, #tpu.memory_space<vmem>>, vector<1x2x128xf32>
    %649 = vector.shape_cast %648 : vector<1x2x128xf32> to vector<2x128xf32>
    %cst_209 = arith.constant dense<0.000000e+00> : vector<2x128xf32>
    %650 = tpu.matmul %647, %13, %cst_209 {dimension_numbers = #tpu.dot_dimension_numbers<[1], [0], [0], [1], [0, 0, 1, 1], [], []>} : vector<2x64xf32>, vector<64x128xf32>, vector<2x128xf32> -> vector<2x128xf32>
    %651 = arith.addf %649, %650 : vector<2x128xf32>
    %652 = arith.negf %651 : vector<2x128xf32>
    %653 = math.exp %652 : vector<2x128xf32>
    %cst_210 = arith.constant 1.000000e+00 : f32
    %654 = vector.broadcast %cst_210 : f32 to vector<2x128xf32>
    %655 = arith.addf %654, %653 : vector<2x128xf32>
    %656 = arith.divf %654, %655 : vector<2x128xf32>
    %657 = math.tanh %651 : vector<2x128xf32>
    %658 = vector.extract_strided_slice %656 {offsets = [0, 0], sizes = [2, 32], strides = [1, 1]} : vector<2x128xf32> to vector<2x32xf32>
    %659 = vector.extract_strided_slice %656 {offsets = [0, 32], sizes = [2, 32], strides = [1, 1]} : vector<2x128xf32> to vector<2x32xf32>
    %660 = vector.extract_strided_slice %656 {offsets = [0, 96], sizes = [2, 32], strides = [1, 1]} : vector<2x128xf32> to vector<2x32xf32>
    %661 = vector.extract_strided_slice %657 {offsets = [0, 64], sizes = [2, 32], strides = [1, 1]} : vector<2x128xf32> to vector<2x32xf32>
    %662 = arith.mulf %659, %539 : vector<2x32xf32>
    %663 = arith.mulf %658, %661 : vector<2x32xf32>
    %664 = arith.addf %662, %663 : vector<2x32xf32>
    %665 = math.tanh %664 : vector<2x32xf32>
    %666 = arith.mulf %660, %665 : vector<2x32xf32>
    %667 = vector.shape_cast %666 : vector<2x32xf32> to vector<2x1x32xf32>
    %668 = vector.broadcast %667 : vector<2x1x32xf32> to vector<2x16x32xf32>
    %669 = arith.mulf %668, %10 : vector<2x16x32xf32>
    %cst_211 = arith.constant dense<0.000000e+00> : vector<2x16xf32>
    %670 = vector.multi_reduction <add>, %669, %cst_211 [2] : vector<2x16x32xf32> to vector<2x16xf32>
    %cst_212 = arith.constant 0.000000e+00 : f32
    %671 = vector.broadcast %cst_212 : f32 to vector<2x16xf32>
    %672 = arith.cmpf ogt, %1, %671 : vector<2x16xf32>
    %cst_213 = arith.constant -1.000000e+30 : f32
    %673 = vector.broadcast %cst_213 : f32 to vector<2x16xf32>
    %674 = arith.select %672, %670, %673 : vector<2x16xi1>, vector<2x16xf32>
    %cst_214 = arith.constant dense<0xFF800000> : vector<2xf32>
    %675 = vector.multi_reduction <maximumf>, %674, %cst_214 [1] : vector<2x16xf32> to vector<2xf32>
    %676 = vector.shape_cast %675 : vector<2xf32> to vector<2x1xf32>
    %677 = vector.broadcast %676 : vector<2x1xf32> to vector<2x16xf32>
    %678 = arith.subf %674, %677 : vector<2x16xf32>
    %679 = math.exp %678 : vector<2x16xf32>
    %cst_215 = arith.constant dense<0.000000e+00> : vector<2xf32>
    %680 = vector.multi_reduction <add>, %679, %cst_215 [1] : vector<2x16xf32> to vector<2xf32>
    %681 = vector.shape_cast %680 : vector<2xf32> to vector<2x1xf32>
    %682 = tpu.reciprocal %681 {approx = true} : vector<2x1xf32> -> vector<2x1xf32>
    %683 = vector.broadcast %682 : vector<2x1xf32> to vector<2x16xf32>
    %684 = arith.mulf %679, %683 : vector<2x16xf32>
    %685 = vector.shape_cast %684 : vector<2x16xf32> to vector<2x16x1xf32>
    %686 = vector.broadcast %685 : vector<2x16x1xf32> to vector<2x16x32xf32>
    %687 = arith.mulf %686, %12 : vector<2x16x32xf32>
    %cst_216 = arith.constant dense<0.000000e+00> : vector<2x32xf32>
    %688 = vector.multi_reduction <add>, %687, %cst_216 [1] : vector<2x16x32xf32> to vector<2x32xf32>
    %cst_217 = arith.constant dense<0.000000e+00> : vector<2x32xf32>
    %689 = tpu.matmul %666, %14, %cst_217 {dimension_numbers = #tpu.dot_dimension_numbers<[1], [0], [0], [1], [0, 0, 1, 1], [], []>} : vector<2x32xf32>, vector<32x32xf32>, vector<2x32xf32> -> vector<2x32xf32>
    %cst_218 = arith.constant dense<0.000000e+00> : vector<2x32xf32>
    %690 = tpu.matmul %688, %15, %cst_218 {dimension_numbers = #tpu.dot_dimension_numbers<[1], [0], [0], [1], [0, 0, 1, 1], [], []>} : vector<2x32xf32>, vector<32x32xf32>, vector<2x32xf32> -> vector<2x32xf32>
    %691 = arith.addf %689, %690 : vector<2x32xf32>
    %692 = vector.broadcast %16 : vector<1x32xf32> to vector<2x32xf32>
    %693 = arith.addf %691, %692 : vector<2x32xf32>
    %694 = math.tanh %693 : vector<2x32xf32>
    %cst_219 = arith.constant dense<0.000000e+00> : vector<2x256xf32>
    %695 = tpu.matmul %694, %17, %cst_219 {dimension_numbers = #tpu.dot_dimension_numbers<[1], [0], [0], [1], [0, 0, 1, 1], [], []>} : vector<2x32xf32>, vector<32x256xf32>, vector<2x256xf32> -> vector<2x256xf32>
    %696 = vector.broadcast %18 : vector<1x256xf32> to vector<2x256xf32>
    %697 = arith.addf %695, %696 : vector<2x256xf32>
    %698 = vector.extract_strided_slice %697 {offsets = [0, 0], sizes = [2, 32], strides = [1, 1]} : vector<2x256xf32> to vector<2x32xf32>
    %699 = vector.extract_strided_slice %697 {offsets = [0, 32], sizes = [2, 1], strides = [1, 1]} : vector<2x256xf32> to vector<2x1xf32>
    %700 = arith.negf %699 : vector<2x1xf32>
    %701 = math.exp %700 : vector<2x1xf32>
    %cst_220 = arith.constant 1.000000e+00 : f32
    %702 = vector.broadcast %cst_220 : f32 to vector<2x1xf32>
    %703 = arith.addf %702, %701 : vector<2x1xf32>
    %704 = arith.divf %702, %703 : vector<2x1xf32>
    %705 = vector.extract_strided_slice %697 {offsets = [0, 128], sizes = [2, 128], strides = [1, 1]} : vector<2x256xf32> to vector<2x128xf32>
    %c5_221 = arith.constant 5 : index
    %c0_222 = arith.constant 0 : index
    %c0_223 = arith.constant 0 : index
    %706 = vector.load %arg2[%c5_221, %c0_222, %c0_223] : memref<7x2x128xf32, #tpu.memory_space<vmem>>, vector<1x2x128xf32>
    %707 = vector.shape_cast %706 : vector<1x2x128xf32> to vector<2x128xf32>
    %cst_224 = arith.constant 0.000000e+00 : f32
    %708 = vector.broadcast %cst_224 : f32 to vector<2x128xf32>
    %709 = arith.cmpf ogt, %707, %708 : vector<2x128xf32>
    %cst_225 = arith.constant -1.000000e+30 : f32
    %710 = vector.broadcast %cst_225 : f32 to vector<2x128xf32>
    %711 = arith.select %709, %705, %710 : vector<2x128xi1>, vector<2x128xf32>
    %cst_226 = arith.constant dense<0xFF800000> : vector<2xf32>
    %712 = vector.multi_reduction <maximumf>, %711, %cst_226 [1] : vector<2x128xf32> to vector<2xf32>
    %713 = vector.shape_cast %712 : vector<2xf32> to vector<2x1xf32>
    %714 = vector.broadcast %713 : vector<2x1xf32> to vector<2x128xf32>
    %715 = arith.subf %711, %714 : vector<2x128xf32>
    %716 = math.exp %715 : vector<2x128xf32>
    %cst_227 = arith.constant dense<0.000000e+00> : vector<2xf32>
    %717 = vector.multi_reduction <add>, %716, %cst_227 [1] : vector<2x128xf32> to vector<2xf32>
    %718 = vector.shape_cast %717 : vector<2xf32> to vector<2x1xf32>
    %719 = tpu.reciprocal %718 {approx = true} : vector<2x1xf32> -> vector<2x1xf32>
    %720 = vector.broadcast %719 : vector<2x1xf32> to vector<2x128xf32>
    %721 = arith.mulf %716, %720 : vector<2x128xf32>
    %722 = vector.shape_cast %698 : vector<2x32xf32> to vector<2x1x32xf32>
    %723 = vector.broadcast %722 : vector<2x1x32xf32> to vector<2x16x32xf32>
    %724 = arith.mulf %723, %0 : vector<2x16x32xf32>
    %cst_228 = arith.constant dense<0.000000e+00> : vector<2x16xf32>
    %725 = vector.multi_reduction <add>, %724, %cst_228 [2] : vector<2x16x32xf32> to vector<2x16xf32>
    %cst_229 = arith.constant 0.000000e+00 : f32
    %726 = vector.broadcast %cst_229 : f32 to vector<2x16xf32>
    %727 = arith.cmpf ogt, %1, %726 : vector<2x16xf32>
    %cst_230 = arith.constant -1.000000e+30 : f32
    %728 = vector.broadcast %cst_230 : f32 to vector<2x16xf32>
    %729 = arith.select %727, %725, %728 : vector<2x16xi1>, vector<2x16xf32>
    %cst_231 = arith.constant dense<0xFF800000> : vector<2xf32>
    %730 = vector.multi_reduction <maximumf>, %729, %cst_231 [1] : vector<2x16xf32> to vector<2xf32>
    %731 = vector.shape_cast %730 : vector<2xf32> to vector<2x1xf32>
    %732 = vector.broadcast %731 : vector<2x1xf32> to vector<2x16xf32>
    %733 = arith.subf %729, %732 : vector<2x16xf32>
    %734 = math.exp %733 : vector<2x16xf32>
    %cst_232 = arith.constant dense<0.000000e+00> : vector<2xf32>
    %735 = vector.multi_reduction <add>, %734, %cst_232 [1] : vector<2x16xf32> to vector<2xf32>
    %736 = vector.shape_cast %735 : vector<2xf32> to vector<2x1xf32>
    %737 = tpu.reciprocal %736 {approx = true} : vector<2x1xf32> -> vector<2x1xf32>
    %738 = vector.broadcast %737 : vector<2x1xf32> to vector<2x16xf32>
    %739 = arith.mulf %734, %738 : vector<2x16xf32>
    %740 = vector.shape_cast %739 : vector<2x16xf32> to vector<2x16x1xf32>
    %741 = vector.broadcast %740 : vector<2x16x1xf32> to vector<2x16x128xf32>
    %742 = arith.mulf %741, %2 : vector<2x16x128xf32>
    %cst_233 = arith.constant dense<0.000000e+00> : vector<2x128xf32>
    %743 = vector.multi_reduction <add>, %742, %cst_233 [1] : vector<2x16x128xf32> to vector<2x128xf32>
    %cst_234 = arith.constant 0.000000e+00 : f32
    %744 = vector.broadcast %cst_234 : f32 to vector<2x128xf32>
    %745 = arith.cmpf ogt, %707, %744 : vector<2x128xf32>
    %cst_235 = arith.constant -1.000000e+30 : f32
    %746 = vector.broadcast %cst_235 : f32 to vector<2x128xf32>
    %747 = arith.select %745, %743, %746 : vector<2x128xi1>, vector<2x128xf32>
    %cst_236 = arith.constant dense<0xFF800000> : vector<2xf32>
    %748 = vector.multi_reduction <maximumf>, %747, %cst_236 [1] : vector<2x128xf32> to vector<2xf32>
    %749 = vector.shape_cast %748 : vector<2xf32> to vector<2x1xf32>
    %750 = vector.broadcast %749 : vector<2x1xf32> to vector<2x128xf32>
    %751 = arith.subf %747, %750 : vector<2x128xf32>
    %752 = math.exp %751 : vector<2x128xf32>
    %cst_237 = arith.constant dense<0.000000e+00> : vector<2xf32>
    %753 = vector.multi_reduction <add>, %752, %cst_237 [1] : vector<2x128xf32> to vector<2xf32>
    %754 = vector.shape_cast %753 : vector<2xf32> to vector<2x1xf32>
    %755 = tpu.reciprocal %754 {approx = true} : vector<2x1xf32> -> vector<2x1xf32>
    %756 = vector.broadcast %755 : vector<2x1xf32> to vector<2x128xf32>
    %757 = arith.mulf %752, %756 : vector<2x128xf32>
    %c5_238 = arith.constant 5 : index
    %c0_239 = arith.constant 0 : index
    %c0_240 = arith.constant 0 : index
    %758 = vector.load %arg3[%c5_238, %c0_239, %c0_240] : memref<7x2x1xf32, #tpu.memory_space<vmem>>, vector<1x2x1xf32>
    %759 = vector.shape_cast %758 : vector<1x2x1xf32> to vector<2x1xf32>
    %760 = vector.broadcast %704 : vector<2x1xf32> to vector<2x128xf32>
    %761 = arith.mulf %760, %757 : vector<2x128xf32>
    %cst_241 = arith.constant 1.000000e+00 : f32
    %762 = vector.broadcast %cst_241 : f32 to vector<2x1xf32>
    %763 = arith.subf %762, %704 : vector<2x1xf32>
    %764 = vector.broadcast %763 : vector<2x1xf32> to vector<2x128xf32>
    %765 = arith.mulf %764, %721 : vector<2x128xf32>
    %766 = arith.addf %761, %765 : vector<2x128xf32>
    %cst_242 = arith.constant 0.000000e+00 : f32
    %767 = vector.broadcast %cst_242 : f32 to vector<2x1xf32>
    %768 = arith.cmpf ogt, %759, %767 : vector<2x1xf32>
    %769 = vector.shape_cast %768 : vector<2x1xi1> to vector<2x1xi1>
    %770 = vector.broadcast %769 : vector<2x1xi1> to vector<2x128xi1>
    %771 = arith.select %770, %766, %721 : vector<2x128xi1>, vector<2x128xf32>
    %772 = tpu.concatenate %694, %666 in 1 : vector<2x32xf32>, vector<2x32xf32> -> vector<2x64xf32>
    %c6 = arith.constant 6 : index
    %c0_243 = arith.constant 0 : index
    %c0_244 = arith.constant 0 : index
    %773 = vector.load %arg1[%c6, %c0_243, %c0_244] : memref<7x2x128xf32, #tpu.memory_space<vmem>>, vector<1x2x128xf32>
    %774 = vector.shape_cast %773 : vector<1x2x128xf32> to vector<2x128xf32>
    %cst_245 = arith.constant dense<0.000000e+00> : vector<2x128xf32>
    %775 = tpu.matmul %772, %13, %cst_245 {dimension_numbers = #tpu.dot_dimension_numbers<[1], [0], [0], [1], [0, 0, 1, 1], [], []>} : vector<2x64xf32>, vector<64x128xf32>, vector<2x128xf32> -> vector<2x128xf32>
    %776 = arith.addf %774, %775 : vector<2x128xf32>
    %777 = arith.negf %776 : vector<2x128xf32>
    %778 = math.exp %777 : vector<2x128xf32>
    %cst_246 = arith.constant 1.000000e+00 : f32
    %779 = vector.broadcast %cst_246 : f32 to vector<2x128xf32>
    %780 = arith.addf %779, %778 : vector<2x128xf32>
    %781 = arith.divf %779, %780 : vector<2x128xf32>
    %782 = math.tanh %776 : vector<2x128xf32>
    %783 = vector.extract_strided_slice %781 {offsets = [0, 0], sizes = [2, 32], strides = [1, 1]} : vector<2x128xf32> to vector<2x32xf32>
    %784 = vector.extract_strided_slice %781 {offsets = [0, 32], sizes = [2, 32], strides = [1, 1]} : vector<2x128xf32> to vector<2x32xf32>
    %785 = vector.extract_strided_slice %781 {offsets = [0, 96], sizes = [2, 32], strides = [1, 1]} : vector<2x128xf32> to vector<2x32xf32>
    %786 = vector.extract_strided_slice %782 {offsets = [0, 64], sizes = [2, 32], strides = [1, 1]} : vector<2x128xf32> to vector<2x32xf32>
    %787 = arith.mulf %784, %664 : vector<2x32xf32>
    %788 = arith.mulf %783, %786 : vector<2x32xf32>
    %789 = arith.addf %787, %788 : vector<2x32xf32>
    %790 = math.tanh %789 : vector<2x32xf32>
    %791 = arith.mulf %785, %790 : vector<2x32xf32>
    %792 = vector.shape_cast %791 : vector<2x32xf32> to vector<2x1x32xf32>
    %793 = vector.broadcast %792 : vector<2x1x32xf32> to vector<2x16x32xf32>
    %794 = arith.mulf %793, %10 : vector<2x16x32xf32>
    %cst_247 = arith.constant dense<0.000000e+00> : vector<2x16xf32>
    %795 = vector.multi_reduction <add>, %794, %cst_247 [2] : vector<2x16x32xf32> to vector<2x16xf32>
    %cst_248 = arith.constant 0.000000e+00 : f32
    %796 = vector.broadcast %cst_248 : f32 to vector<2x16xf32>
    %797 = arith.cmpf ogt, %1, %796 : vector<2x16xf32>
    %cst_249 = arith.constant -1.000000e+30 : f32
    %798 = vector.broadcast %cst_249 : f32 to vector<2x16xf32>
    %799 = arith.select %797, %795, %798 : vector<2x16xi1>, vector<2x16xf32>
    %cst_250 = arith.constant dense<0xFF800000> : vector<2xf32>
    %800 = vector.multi_reduction <maximumf>, %799, %cst_250 [1] : vector<2x16xf32> to vector<2xf32>
    %801 = vector.shape_cast %800 : vector<2xf32> to vector<2x1xf32>
    %802 = vector.broadcast %801 : vector<2x1xf32> to vector<2x16xf32>
    %803 = arith.subf %799, %802 : vector<2x16xf32>
    %804 = math.exp %803 : vector<2x16xf32>
    %cst_251 = arith.constant dense<0.000000e+00> : vector<2xf32>
    %805 = vector.multi_reduction <add>, %804, %cst_251 [1] : vector<2x16xf32> to vector<2xf32>
    %806 = vector.shape_cast %805 : vector<2xf32> to vector<2x1xf32>
    %807 = tpu.reciprocal %806 {approx = true} : vector<2x1xf32> -> vector<2x1xf32>
    %808 = vector.broadcast %807 : vector<2x1xf32> to vector<2x16xf32>
    %809 = arith.mulf %804, %808 : vector<2x16xf32>
    %810 = vector.shape_cast %809 : vector<2x16xf32> to vector<2x16x1xf32>
    %811 = vector.broadcast %810 : vector<2x16x1xf32> to vector<2x16x32xf32>
    %812 = arith.mulf %811, %12 : vector<2x16x32xf32>
    %cst_252 = arith.constant dense<0.000000e+00> : vector<2x32xf32>
    %813 = vector.multi_reduction <add>, %812, %cst_252 [1] : vector<2x16x32xf32> to vector<2x32xf32>
    %cst_253 = arith.constant dense<0.000000e+00> : vector<2x32xf32>
    %814 = tpu.matmul %791, %14, %cst_253 {dimension_numbers = #tpu.dot_dimension_numbers<[1], [0], [0], [1], [0, 0, 1, 1], [], []>} : vector<2x32xf32>, vector<32x32xf32>, vector<2x32xf32> -> vector<2x32xf32>
    %cst_254 = arith.constant dense<0.000000e+00> : vector<2x32xf32>
    %815 = tpu.matmul %813, %15, %cst_254 {dimension_numbers = #tpu.dot_dimension_numbers<[1], [0], [0], [1], [0, 0, 1, 1], [], []>} : vector<2x32xf32>, vector<32x32xf32>, vector<2x32xf32> -> vector<2x32xf32>
    %816 = arith.addf %814, %815 : vector<2x32xf32>
    %817 = vector.broadcast %16 : vector<1x32xf32> to vector<2x32xf32>
    %818 = arith.addf %816, %817 : vector<2x32xf32>
    %819 = math.tanh %818 : vector<2x32xf32>
    %cst_255 = arith.constant dense<0.000000e+00> : vector<2x256xf32>
    %820 = tpu.matmul %819, %17, %cst_255 {dimension_numbers = #tpu.dot_dimension_numbers<[1], [0], [0], [1], [0, 0, 1, 1], [], []>} : vector<2x32xf32>, vector<32x256xf32>, vector<2x256xf32> -> vector<2x256xf32>
    %821 = vector.broadcast %18 : vector<1x256xf32> to vector<2x256xf32>
    %822 = arith.addf %820, %821 : vector<2x256xf32>
    %823 = vector.extract_strided_slice %822 {offsets = [0, 0], sizes = [2, 32], strides = [1, 1]} : vector<2x256xf32> to vector<2x32xf32>
    %824 = vector.extract_strided_slice %822 {offsets = [0, 32], sizes = [2, 1], strides = [1, 1]} : vector<2x256xf32> to vector<2x1xf32>
    %825 = arith.negf %824 : vector<2x1xf32>
    %826 = math.exp %825 : vector<2x1xf32>
    %cst_256 = arith.constant 1.000000e+00 : f32
    %827 = vector.broadcast %cst_256 : f32 to vector<2x1xf32>
    %828 = arith.addf %827, %826 : vector<2x1xf32>
    %829 = arith.divf %827, %828 : vector<2x1xf32>
    %830 = vector.extract_strided_slice %822 {offsets = [0, 128], sizes = [2, 128], strides = [1, 1]} : vector<2x256xf32> to vector<2x128xf32>
    %c6_257 = arith.constant 6 : index
    %c0_258 = arith.constant 0 : index
    %c0_259 = arith.constant 0 : index
    %831 = vector.load %arg2[%c6_257, %c0_258, %c0_259] : memref<7x2x128xf32, #tpu.memory_space<vmem>>, vector<1x2x128xf32>
    %832 = vector.shape_cast %831 : vector<1x2x128xf32> to vector<2x128xf32>
    %cst_260 = arith.constant 0.000000e+00 : f32
    %833 = vector.broadcast %cst_260 : f32 to vector<2x128xf32>
    %834 = arith.cmpf ogt, %832, %833 : vector<2x128xf32>
    %cst_261 = arith.constant -1.000000e+30 : f32
    %835 = vector.broadcast %cst_261 : f32 to vector<2x128xf32>
    %836 = arith.select %834, %830, %835 : vector<2x128xi1>, vector<2x128xf32>
    %cst_262 = arith.constant dense<0xFF800000> : vector<2xf32>
    %837 = vector.multi_reduction <maximumf>, %836, %cst_262 [1] : vector<2x128xf32> to vector<2xf32>
    %838 = vector.shape_cast %837 : vector<2xf32> to vector<2x1xf32>
    %839 = vector.broadcast %838 : vector<2x1xf32> to vector<2x128xf32>
    %840 = arith.subf %836, %839 : vector<2x128xf32>
    %841 = math.exp %840 : vector<2x128xf32>
    %cst_263 = arith.constant dense<0.000000e+00> : vector<2xf32>
    %842 = vector.multi_reduction <add>, %841, %cst_263 [1] : vector<2x128xf32> to vector<2xf32>
    %843 = vector.shape_cast %842 : vector<2xf32> to vector<2x1xf32>
    %844 = tpu.reciprocal %843 {approx = true} : vector<2x1xf32> -> vector<2x1xf32>
    %845 = vector.broadcast %844 : vector<2x1xf32> to vector<2x128xf32>
    %846 = arith.mulf %841, %845 : vector<2x128xf32>
    %847 = vector.shape_cast %823 : vector<2x32xf32> to vector<2x1x32xf32>
    %848 = vector.broadcast %847 : vector<2x1x32xf32> to vector<2x16x32xf32>
    %849 = arith.mulf %848, %0 : vector<2x16x32xf32>
    %cst_264 = arith.constant dense<0.000000e+00> : vector<2x16xf32>
    %850 = vector.multi_reduction <add>, %849, %cst_264 [2] : vector<2x16x32xf32> to vector<2x16xf32>
    %cst_265 = arith.constant 0.000000e+00 : f32
    %851 = vector.broadcast %cst_265 : f32 to vector<2x16xf32>
    %852 = arith.cmpf ogt, %1, %851 : vector<2x16xf32>
    %cst_266 = arith.constant -1.000000e+30 : f32
    %853 = vector.broadcast %cst_266 : f32 to vector<2x16xf32>
    %854 = arith.select %852, %850, %853 : vector<2x16xi1>, vector<2x16xf32>
    %cst_267 = arith.constant dense<0xFF800000> : vector<2xf32>
    %855 = vector.multi_reduction <maximumf>, %854, %cst_267 [1] : vector<2x16xf32> to vector<2xf32>
    %856 = vector.shape_cast %855 : vector<2xf32> to vector<2x1xf32>
    %857 = vector.broadcast %856 : vector<2x1xf32> to vector<2x16xf32>
    %858 = arith.subf %854, %857 : vector<2x16xf32>
    %859 = math.exp %858 : vector<2x16xf32>
    %cst_268 = arith.constant dense<0.000000e+00> : vector<2xf32>
    %860 = vector.multi_reduction <add>, %859, %cst_268 [1] : vector<2x16xf32> to vector<2xf32>
    %861 = vector.shape_cast %860 : vector<2xf32> to vector<2x1xf32>
    %862 = tpu.reciprocal %861 {approx = true} : vector<2x1xf32> -> vector<2x1xf32>
    %863 = vector.broadcast %862 : vector<2x1xf32> to vector<2x16xf32>
    %864 = arith.mulf %859, %863 : vector<2x16xf32>
    %865 = vector.shape_cast %864 : vector<2x16xf32> to vector<2x16x1xf32>
    %866 = vector.broadcast %865 : vector<2x16x1xf32> to vector<2x16x128xf32>
    %867 = arith.mulf %866, %2 : vector<2x16x128xf32>
    %cst_269 = arith.constant dense<0.000000e+00> : vector<2x128xf32>
    %868 = vector.multi_reduction <add>, %867, %cst_269 [1] : vector<2x16x128xf32> to vector<2x128xf32>
    %cst_270 = arith.constant 0.000000e+00 : f32
    %869 = vector.broadcast %cst_270 : f32 to vector<2x128xf32>
    %870 = arith.cmpf ogt, %832, %869 : vector<2x128xf32>
    %cst_271 = arith.constant -1.000000e+30 : f32
    %871 = vector.broadcast %cst_271 : f32 to vector<2x128xf32>
    %872 = arith.select %870, %868, %871 : vector<2x128xi1>, vector<2x128xf32>
    %cst_272 = arith.constant dense<0xFF800000> : vector<2xf32>
    %873 = vector.multi_reduction <maximumf>, %872, %cst_272 [1] : vector<2x128xf32> to vector<2xf32>
    %874 = vector.shape_cast %873 : vector<2xf32> to vector<2x1xf32>
    %875 = vector.broadcast %874 : vector<2x1xf32> to vector<2x128xf32>
    %876 = arith.subf %872, %875 : vector<2x128xf32>
    %877 = math.exp %876 : vector<2x128xf32>
    %cst_273 = arith.constant dense<0.000000e+00> : vector<2xf32>
    %878 = vector.multi_reduction <add>, %877, %cst_273 [1] : vector<2x128xf32> to vector<2xf32>
    %879 = vector.shape_cast %878 : vector<2xf32> to vector<2x1xf32>
    %880 = tpu.reciprocal %879 {approx = true} : vector<2x1xf32> -> vector<2x1xf32>
    %881 = vector.broadcast %880 : vector<2x1xf32> to vector<2x128xf32>
    %882 = arith.mulf %877, %881 : vector<2x128xf32>
    %c6_274 = arith.constant 6 : index
    %c0_275 = arith.constant 0 : index
    %c0_276 = arith.constant 0 : index
    %883 = vector.load %arg3[%c6_274, %c0_275, %c0_276] : memref<7x2x1xf32, #tpu.memory_space<vmem>>, vector<1x2x1xf32>
    %884 = vector.shape_cast %883 : vector<1x2x1xf32> to vector<2x1xf32>
    %885 = vector.broadcast %829 : vector<2x1xf32> to vector<2x128xf32>
    %886 = arith.mulf %885, %882 : vector<2x128xf32>
    %cst_277 = arith.constant 1.000000e+00 : f32
    %887 = vector.broadcast %cst_277 : f32 to vector<2x1xf32>
    %888 = arith.subf %887, %829 : vector<2x1xf32>
    %889 = vector.broadcast %888 : vector<2x1xf32> to vector<2x128xf32>
    %890 = arith.mulf %889, %846 : vector<2x128xf32>
    %891 = arith.addf %886, %890 : vector<2x128xf32>
    %cst_278 = arith.constant 0.000000e+00 : f32
    %892 = vector.broadcast %cst_278 : f32 to vector<2x1xf32>
    %893 = arith.cmpf ogt, %884, %892 : vector<2x1xf32>
    %894 = vector.shape_cast %893 : vector<2x1xi1> to vector<2x1xi1>
    %895 = vector.broadcast %894 : vector<2x1xi1> to vector<2x128xi1>
    %896 = arith.select %895, %891, %846 : vector<2x128xi1>, vector<2x128xf32>
    %897 = tpu.concatenate %146, %271, %396, %521, %646, %771, %896 in 0 : vector<2x128xf32>, vector<2x128xf32>, vector<2x128xf32>, vector<2x128xf32>, vector<2x128xf32>, vector<2x128xf32>, vector<2x128xf32> -> vector<14x128xf32>
    %c0_279 = arith.constant 0 : index
    %c0_280 = arith.constant 0 : index
    %898 = vector.load %arg15[%c0_279, %c0_280] : memref<14x128xf32, #tpu.memory_space<vmem>>, vector<14x128xf32>
    tpu.vector_store %arg15[%c0_279, %c0_280], %897 {strides = array<i32>} : memref<14x128xf32, #tpu.memory_space<vmem>>, vector<14x128xf32>,
    return
  }
  func.func @transform_0(%arg0: i32) -> (i32, i32, i32) {
    %c0_i32 = arith.constant 0 : i32
    %c0_i32_0 = arith.constant 0 : i32
    %c0_i32_1 = arith.constant 0 : i32
    %c0_i32_2 = arith.constant 0 : i32
    return %c0_i32, %c0_i32_0, %c0_i32_1 : i32, i32, i32
  }
  func.func @transform_1(%arg0: i32) -> (i32, i32, i32) {
    %c0_i32 = arith.constant 0 : i32
    %c0_i32_0 = arith.constant 0 : i32
    %c0_i32_1 = arith.constant 0 : i32
    %c0_i32_2 = arith.constant 0 : i32
    return %c0_i32, %c0_i32_0, %c0_i32_1 : i32, i32, i32
  }
  func.func @transform_2(%arg0: i32) -> (i32, i32, i32) {
    %c0_i32 = arith.constant 0 : i32
    %c0_i32_0 = arith.constant 0 : i32
    %c0_i32_1 = arith.constant 0 : i32
    %c0_i32_2 = arith.constant 0 : i32
    return %c0_i32, %c0_i32_0, %c0_i32_1 : i32, i32, i32
  }
  func.func @transform_3(%arg0: i32) -> (i32, i32, i32) {
    %c0_i32 = arith.constant 0 : i32
    %c0_i32_0 = arith.constant 0 : i32
    %c0_i32_1 = arith.constant 0 : i32
    %c0_i32_2 = arith.constant 0 : i32
    return %c0_i32, %c0_i32_0, %c0_i32_1 : i32, i32, i32
  }
  func.func @transform_4(%arg0: i32) -> (i32, i32) {
    %c0_i32 = arith.constant 0 : i32
    %c0_i32_0 = arith.constant 0 : i32
    %c0_i32_1 = arith.constant 0 : i32
    return %c0_i32, %c0_i32_0 : i32, i32
  }
  func.func @transform_5(%arg0: i32) -> (i32, i32, i32) {
    %c0_i32 = arith.constant 0 : i32
    %c0_i32_0 = arith.constant 0 : i32
    %c0_i32_1 = arith.constant 0 : i32
    %c0_i32_2 = arith.constant 0 : i32
    return %c0_i32, %c0_i32_0, %c0_i32_1 : i32, i32, i32
  }
  func.func @transform_6(%arg0: i32) -> (i32, i32) {
    %c0_i32 = arith.constant 0 : i32
    %c0_i32_0 = arith.constant 0 : i32
    %c0_i32_1 = arith.constant 0 : i32
    return %c0_i32, %c0_i32_0 : i32, i32
  }
  func.func @transform_7(%arg0: i32) -> (i32, i32) {
    %c0_i32 = arith.constant 0 : i32
    %c0_i32_0 = arith.constant 0 : i32
    %c0_i32_1 = arith.constant 0 : i32
    return %c0_i32, %c0_i32_0 : i32, i32
  }
  func.func @transform_8(%arg0: i32) -> (i32, i32) {
    %c0_i32 = arith.constant 0 : i32
    %c0_i32_0 = arith.constant 0 : i32
    %c0_i32_1 = arith.constant 0 : i32
    return %c0_i32, %c0_i32_0 : i32, i32
  }
  func.func @transform_9(%arg0: i32) -> (i32, i32) {
    %c0_i32 = arith.constant 0 : i32
    %c0_i32_0 = arith.constant 0 : i32
    %c0_i32_1 = arith.constant 0 : i32
    return %c0_i32, %c0_i32_0 : i32, i32
  }
  func.func @transform_10(%arg0: i32) -> (i32, i32) {
    %c0_i32 = arith.constant 0 : i32
    %c0_i32_0 = arith.constant 0 : i32
    %c0_i32_1 = arith.constant 0 : i32
    return %c0_i32, %c0_i32_0 : i32, i32
  }
  func.func @transform_11(%arg0: i32) -> (i32, i32) {
    %c0_i32 = arith.constant 0 : i32
    %c0_i32_0 = arith.constant 0 : i32
    %c0_i32_1 = arith.constant 0 : i32
    return %c0_i32, %c0_i32_0 : i32, i32
  }
  func.func @transform_12(%arg0: i32) -> (i32, i32) {
    %c0_i32 = arith.constant 0 : i32
    %c0_i32_0 = arith.constant 0 : i32
    %c0_i32_1 = arith.constant 0 : i32
    return %c0_i32, %c0_i32_0 : i32, i32
  }
  func.func @transform_13(%arg0: i32) -> (i32, i32) {
    %c0_i32 = arith.constant 0 : i32
    %c0_i32_0 = arith.constant 0 : i32
    %c0_i32_1 = arith.constant 0 : i32
    return %c0_i32, %c0_i32_0 : i32, i32
  }
  func.func @transform_14(%arg0: i32) -> (i32, i32) {
    %c0_i32 = arith.constant 0 : i32
    %c0_i32_0 = arith.constant 0 : i32
    %c0_i32_1 = arith.constant 0 : i32
    return %c0_i32, %c0_i32_0 : i32, i32
  }
}

</mosaic_0001>

<bundles_post_ra>
// kernel: _train_decode.1
= control target key start
LH: loop header
LB: loop body
LE: loop exit
PB: predicated region body
PF: predicated region fallthrough
CT: control target
= control target key end

     0   :  { %v7526_v0 = vmov 0.0   ;;  %vm5660_vm0 = vmmov 0   ;;  %vm67_vm1 = vcmask 261120   ;;  %s5661_s30 = smov 64   ;;  %s5662_s15 = smov 32   ;;  %v295_v43 = vlaneseq  ;;  %s7511_s8 = inlined_call_operand.vmem [shape: f32[64,128], index: 8, kind: input, shape index: {}]   ;;  %s7512_s6 = inlined_call_operand.vmem [shape: f32[32,64], index: 6, kind: input, shape index: {}]   ;;  %s7513_s3 = inlined_call_operand.vmem [shape: f32[2,16,32], index: 3, kind: input, shape index: {}]   ;;  %s7514_s0 = inlined_call_operand.vmem [shape: f32[7,2,128], index: 0, kind: input, shape index: {}]   ;;  %s7515_s7 = inlined_call_operand.vmem [shape: f32[1,64], index: 7, kind: input, shape index: {}]   ;;  %s7516_s4 = inlined_call_operand.vmem [shape: f32[2,16], index: 4, kind: input, shape index: {}]   ;;  %s7517_s10 = inlined_call_operand.vmem [shape: f32[32,32], index: 10, kind: input, shape index: {}]   ;;  %s7518_s9 = inlined_call_operand.vmem [shape: f32[32,32], index: 9, kind: input, shape index: {}]   ;;  %s7519_s12 = inlined_call_operand.vmem [shape: f32[32,256], index: 12, kind: input, shape index: {}]   ;;  %s7520_s11 = inlined_call_operand.vmem [shape: f32[1,32], index: 11, kind: input, shape index: {}]   ;;  %s7521_s13 = inlined_call_operand.vmem [shape: f32[1,256], index: 13, kind: input, shape index: {}]   ;;  %s7522_s1 = inlined_call_operand.vmem [shape: f32[7,2,128], index: 1, kind: input, shape index: {}]   ;;  %s7523_s5 = inlined_call_operand.vmem [shape: f32[2,16,128], index: 5, kind: input, shape index: {}]   ;;  %s7524_s2 = inlined_call_operand.vmem [shape: f32[7,2,1], index: 2, kind: input, shape index: {}]   ;;  %s7525_s14 = inlined_call_operand.vmem [shape: f32[14,128], index: 14, kind: output, shape index: {}]  }
   0x1   :  { %5102 = vmatprep.subr.mxu1 %v7526_v0  ;;  %v5746_v1 = vld [vmem:[%s7511_s8 + $0x38] sm:$0xff]  ;;  %v5751_v2 = vld [vmem:[%s7511_s8 + $0x30] sm:$0xff]  ;;  %5118 = vmatprep.mubr.msk.f32.mxu1 %vm5660_vm0, %v7526_v0  ;;  %v5760_v3 = vld [vmem:[%s7511_s8 + $0x28] sm:$0xff]  ;;  %s5663_s18 = smov 96   ;;  %v5664_v41 = vmov 1966171168  }
   0x2   :  { %5103 = vmatpush3.msra.mxu1 %v5746_v1  ;;  %v5767_v4 = vld [vmem:[%s7511_s8 + $0x20] sm:$0xff]  ;;  %v5774_v5 = vld [vmem:[%s7511_s8 + $0x18] sm:$0xff]  ;;  %v5781_v6 = vld [vmem:[%s7511_s8 + $0x10] sm:$0xff]  ;;  %v293_v42 = vunpack.c.l.s4 %v5664_v41  ;;  %v5861_v45 = vshrl.u32 %v295_v43, 7  ;;  %vm388_vm2 = vcmask 130112   ;;  %vm399_vm3 = vcmask 1041409  }
   0x3   :  { %5104 = vmatprep.subr.mxu1 %v7526_v0  ;;  %v5788_v7 = vld [vmem:[%s7511_s8 + $0x8] sm:$0xff]  ;;  %v5795_v8 = vld [vmem:[%s7511_s8] sm:$0xff]  ;;  %v59_v9 = vld [vmem:[%s7512_s6 + $0x18] sm:$0xff]  ;;  %vm403_vm5 = vcmask 123904   ;;  %vm441_vm6 = vcmask 523520   ;;  %vm192_vm7 = vcmask 523264  }
   0x4   :  { %5105 = vmatpush3.msra.mxu1 %v5751_v2  ;;  %v58_v10 = vld [vmem:[%s7512_s6 + $0x10] sm:$0xff]  ;;  %5088 = vmatprep.subr.mxu0 %v59_v9  ;;  %v47_v11 = vld [vmem:[%s7513_s3] sm:$0xff]  ;;  %v57_v12 = vld [vmem:[%s7512_s6 + $0x8] sm:$0xff]  ;;  %v294_v44 = vunpack.c.0.s8 %v293_v42  ;;  %v5871_v50 = vsub.s32 0, %v5861_v45  ;;  %vm713_vm9 = vcmask 1041408  }
   0x5   :  { %5106 = vmatprep.subr.mxu1 %v7526_v0  ;;  %5089 = vmatpush3.msra.mxu0 %v59_v9  ;;  %v56_v13 = vld [vmem:[%s7512_s6] sm:$0xff]  ;;  %v48_v14 = vld [vmem:[%s7513_s3 + $0x8] sm:$0xff]  ;;  %v49_v15 = vld [vmem:[%s7513_s3 + $0x10] sm:$0xff] }
   0x6   :  { %5107 = vmatpush3.msra.mxu1 %v5760_v3  ;;  %5096 = vmatprep.mubr.msk.f32.mxu0 %vm67_vm1, %v47_v11  ;;  %v50_v16 = vld [vmem:[%s7513_s3 + $0x18] sm:$0xff]  ;;  %v191_v17 = vld [vmem:[%s7514_s0] sm:$0x3]  ;;  %v5864_v46 = vsub.s32 %v294_v44, %v5861_v45 }
   0x7   :  { %5108 = vmatprep.subr.mxu1 %v7526_v0  ;;  %5090 = vmatprep.subr.mxu0 %v58_v10  ;;  %v4882_v29 = vld [vmem:[%s7515_s7] ss:$0 sm:$0xff] }
   0x8   :  { %5109 = vmatpush3.msra.mxu1 %v5767_v4  ;;  %5091 = vmatpush3.msra.mxu0 %v58_v10 }
   0x9   :  { %5110 = vmatprep.subr.mxu1 %v7526_v0  ;;  %5092 = vmatprep.subr.mxu0 %v57_v12 }
   0xa   :  { %5111 = vmatpush3.msra.mxu1 %v5774_v5  ;;  %5093 = vmatpush3.msra.mxu0 %v57_v12 }
   0xb   :  { %5112 = vmatprep.subr.mxu1 %v7526_v0  ;;  %5094 = vmatprep.subr.mxu0 %v56_v13 }
   0xc   :  { %5113 = vmatpush3.msra.mxu1 %v5781_v6  ;;  %5095 = vmatpush3.msra.mxu0 %v56_v13 }
   0xd   :  { %5114 = vmatprep.subr.mxu1 %v7526_v0  ;;  %5097 = vmatmul.mubr.msk.f32.vlgmr.msra.gmra.mxu0 %vm67_vm1, %v48_v14 }
   0xe   :  { %5115 = vmatpush3.msra.mxu1 %v5788_v7  ;;  %5121 = vmatprep.subr.mxu0 %v7526_v0 }
   0xf   :  { %5116 = vmatprep.subr.mxu1 %v7526_v0  ;;  %5099 = vmatprep.mubr.msk.f32.mxu0 %vm67_vm1, %v49_v15 }
  0x10   :  { %5117 = vmatpush3.msra.mxu1 %v5795_v8 }
  0x11   :  { %5119 = vmatmul.mubr.f32.vlgmr.msra.gmra.mxu1 %v7526_v0  ;;  %5100 = vmatmul.mubr.msk.f32.gmra.mxu0 %vm67_vm1, %v50_v16 }
  0x12   :  { %697 = vmatprep.mubr.f32.mxu1 %v7526_v0  ;;  %5129 = vmatprep.mubr.msk.f32.mxu0 %vm5660_vm0, %v7526_v0 }
  0xcd   :  { %v5098_v28 = vpop.f32.mrf.mxu0 }
  0xce   :  { %v5841_v30 = vadd.f32 %v5098_v28, %v4882_v29 }
  0xcf   :  { %v146_v31 = vpop.f32.mrf.mxu0 }
  0xd0   :  { %v5843_v32 = vadd.f32 %v4882_v29, %v146_v31 }
  0xd1   :  { %v262_v18 = vpop.f32.mrf.mxu1  ;;  %v5101_v33 = vpop.f32.mrf.mxu0 }
  0xd2   :  { %v266_v19 = vadd.f32 %v262_v18, %v191_v17  ;;  %v5847_v34 = vadd.f32 %v5101_v33, %v4882_v29  ;;  %v378_v17 = vand.u32 127, %v295_v43 }
  0xd3   :  { %v5120_v20 = vpop.f32.mrf.mxu1  ;;  %v156_v39 = vpop.f32.mrf.mxu0 }
  0xd4   :  { %5403 = vtanh.f32 %v266_v19  ;;  %v4887_v22 = vmul.f32 -1.442695, %v266_v19  ;;  %v5857_v40 = vadd.f32 %v4882_v29, %v156_v39  ;;  %v383_v18 = vadd.s32 4294967288, %v378_v17 }
  0xd5   :  { %v5901_v20 = vsub.s32 %v378_v17, %v5861_v45 }
  0xd6   :  { %5405 = vpow2.f32 %v4887_v22  ;;  %v5898_v19 = vsub.s32 %v383_v18, %v5861_v45 }
  0xe1   :  { %v5404_v21 = vpop.eup %5403 }
  0xe2   :  { %276 = vrot.lane.b32.xlu0 %v5404_v21, %s5661_s30 }
  0xe3   :  { %v5406_v23 = vpop.eup %5405 }
  0xe4   :  { %v270_v24 = vadd.f32 1.0, %v5406_v23 }
  0xe6   :  { %5407 = vrcp.f32 %v270_v24 }
  0xf3   :  { %v5408_v25 = vpop.eup %5407 }
  0xf4   :  { %v274_v35 = vmul.f32 0.0, %v5408_v25 }
 0x154   :  { %v277_v26 = vpop.permute.xlu0 %276 }
 0x155   :  { %v279_v27 = vmul.f32 %v5408_v25, %v277_v26 }
 0x157   :  { %281 = vrot.lane.b32.xlu0 %v279_v27, %s5662_s15 }
 0x15b   :  { %330 = vrot.lane.b32.xlu0 %v5841_v30, %s5663_s18 }
 0x15f   :  { %334 = vrot.lane.b32.xlu0 %v5847_v34, %s5663_s18 }
 0x1c9   :  { %v282_v36 = vpop.permute.xlu0 %281 }
 0x1ca   :  { %v5851_v37 = vadd.f32 %v282_v36, %v274_v35 }
 0x1cc   :  { %5409 = vtanh.f32 %v5851_v37 }
 0x1cd   :  { %v5873_v51 = vpop.permute.xlu0 %330 }
 0x1d1   :  { %v5883_v60 = vpop.permute.xlu0 %334 }
 0x1d9   :  { %v5410_v38 = vpop.eup %5409 }
 0x1da   :  { %287 = vrot.lane.b32.xlu1 %v5410_v38, %s5661_s30 }
 0x1de   :  { %328 = vrot.lane.b32.xlu1 %v5843_v32, %s5663_s18 }
 0x1e2   :  { %332 = vrot.lane.b32.xlu1 %v5857_v40, %s5663_s18 }
 0x24c   :  { %v288_v47 = vpop.permute.xlu1 %287 }
 0x24d   :  { %v5866_v48 = vmul.f32 %v5408_v25, %v288_v47  ;;  %v5908_v25 = vld [vmem:[%s7516_s4] sm:$0x3] }
 0x24e   :  { %vm372_vm4 = vcmp.gt.f32.partialorder %v5908_v25, 0.0 }
 0x24f   :  { %v298_v49 = vrot.slane %v5866_v48, %v5864_v46 }
 0x250   :  { %v5875_v52 = vpop.permute.xlu1 %328 }
 0x251   :  { %v299_v53 = vcombine.high %v298_v49, %v298_v49  ;;  %v306_v54 = vrot.slane %v298_v49, %v5864_v46 }
 0x253   :  { %v317_v55 = vrot.slane %v306_v54, %v5871_v50  ;;  %v313_v56 = vrot.slane %v299_v53, %v5864_v46 }
 0x254   :  { %v5885_v61 = vpop.permute.xlu1 %332 }
 0x255   :  { %v341_v57 = vmul.f32 %v5873_v51, %v317_v55  ;;  %v340_v58 = vmul.f32 %v5875_v52, %v317_v55  ;;  %v321_v59 = vrot.slane %v313_v56, %v5871_v50  ;;  %v5922_v55 = vsub.s32 1, %v5861_v45  ;;  %v5942_v45 = vld [vmem:[%s7517_s10 + $0x8] sm:$0xff] }
 0x257   :  { %350 = vrot.lane.b32.xlu0 %v341_v57, %s5662_s15  ;;  %348 = vrot.lane.b32.xlu1 %v340_v58, %s5662_s15  ;;  %v343_v62 = vmul.f32 %v5883_v60, %v321_v59  ;;  %v342_v63 = vmul.f32 %v5885_v61, %v321_v59  ;;  %v5930_v57 = vld [vmem:[%s7517_s10 + $0x18] sm:$0xff]  ;;  %v5935_v58 = vld [vmem:[%s7517_s10 + $0x10] sm:$0xff] }
 0x258   :  { %5122 = vmatpush3.msra.mxu0 %v5930_v57  ;;  %v5949_v59 = vld [vmem:[%s7517_s10] sm:$0xff] }
 0x259   :  { %5123 = vmatprep.subr.mxu0 %v7526_v0 }
 0x25a   :  { %5124 = vmatpush3.msra.mxu0 %v5935_v58 }
 0x25b   :  { %354 = vrot.lane.b32.xlu0 %v343_v62, %s5662_s15  ;;  %352 = vrot.lane.b32.xlu1 %v342_v63, %s5662_s15 }
 0x25c   :  { %5125 = vmatprep.subr.mxu0 %v7526_v0 }
 0x25d   :  { %5126 = vmatpush3.msra.mxu0 %v5942_v45 }
 0x25e   :  { %5127 = vmatprep.subr.mxu0 %v7526_v0 }
 0x25f   :  { %5128 = vmatpush3.msra.mxu0 %v5949_v59 }
 0x260   :  { %5132 = vmatprep.subr.mxu0 %v7526_v0 }
 0x2c9   :  { %v351_v9 = vpop.permute.xlu0 %350  ;;  %v349_v10 = vpop.permute.xlu1 %348 }
 0x2ca   :  { %v363_v11 = vsel %vm67_vm1, %v351_v9, 0.0  ;;  %v360_v12 = vsel %vm67_vm1, %v349_v10, 0.0 }
 0x2cb   :  { %364 = vadd.xlane.f32.xlu0 %v363_v11  ;;  %361 = vadd.xlane.f32.xlu1 %v360_v12 }
 0x2cd   :  { %v355_v13 = vpop.permute.xlu0 %354  ;;  %v353_v14 = vpop.permute.xlu1 %352 }
 0x2ce   :  { %v369_v15 = vsel %vm67_vm1, %v355_v13, 0.0  ;;  %v366_v16 = vsel %vm67_vm1, %v353_v14, 0.0 }
 0x2cf   :  { %370 = vadd.xlane.f32.xlu1 %v369_v15  ;;  %367 = vadd.xlane.f32.xlu0 %v366_v16 }
 0x354   :  { %v365_v21 = vpop.xlane.xlu0 %364  ;;  %v362_v22 = vpop.xlane.xlu1 %361 }
 0x355   :  { %v387_v23 = vrot.slane %v365_v21, %v5898_v19  ;;  %v382_v24 = vrot.slane %v362_v22, %v5901_v20 }
 0x357   :  { %v389_v31 = vsel %vm388_vm2, %v387_v23, %v382_v24 }
 0x358   :  { %v368_v26 = vpop.xlane.xlu0 %367  ;;  %v371_v27 = vpop.xlane.xlu1 %370 }
 0x359   :  { %v393_v28 = vrot.slane %v368_v26, %v5901_v20  ;;  %v397_v29 = vrot.slane %v371_v27, %v5898_v19 }
 0x35b   :  { %v398_v33 = vsel %vm388_vm2, %v397_v29, %v393_v28 }
 0x35c   :  { %v400_v35 = vsel %vm399_vm3, %v398_v33, %v389_v31 }
 0x35d   :  { %v402_v36 = vsel %vm372_vm4, %v400_v35, -1e+30 }
 0x35e   :  { %v404_v38 = vsel %vm403_vm5, %v402_v36, -inf }
 0x35f   :  { %405 = vmax.xlane.f32.xlu0 %v404_v38 }
 0x3e8   :  { %v406_v39 = vpop.xlane.xlu0 %405 }
 0x3e9   :  { %v407_v41 = vsub.f32 %v402_v36, %v406_v39 }
 0x3eb   :  { %v408_v42 = vmul.f32 1.442695, %v407_v41 }
 0x3ed   :  { %5411 = vpow2.f32 %v408_v42  ;;  %v5970_v42 = vld [vmem:[%s7518_s9 + $0x18] sm:$0xff] }
 0x3fa   :  { %v5412_v43 = vpop.eup %5411 }
 0x3fb   :  { %v410_v44 = vsel %vm403_vm5, %v5412_v43, 0.0 }
 0x3fc   :  { %411 = vadd.xlane.f32.xlu1 %v410_v44  ;;  %v5976_v44 = vld [vmem:[%s7518_s9 + $0x10] sm:$0xff] }
 0x485   :  { %v412_v47 = vpop.xlane.xlu1 %411 }
 0x486   :  { %5413 = vrcp.f32 %v412_v47  ;;  %v5992_v47 = vld [vmem:[%s7518_s9] sm:$0xff] }
 0x493   :  { %v5414_v49 = vpop.eup %5413 }
 0x494   :  { %v414_v53 = vmul.f32 %v5414_v49, %v5412_v43 }
 0x496   :  { %v418_v54 = vrot.slane %v414_v53, %v5871_v50  ;;  %v429_v56 = vrot.slane %v414_v53, %v5922_v55  ;;  %v6019_v53 = vld [vmem:[%s7519_s12 + $0x38] sm:$0xff] }
 0x497   :  { %657 = vmatprep.subr.mxu1 %v6019_v53 }
 0x498   :  { %424 = vbcast.lane.b32.xlu1 %v418_v54, 264  ;;  %420 = vbcast.lane.b32.xlu0 %v418_v54, 256  ;;  %v6024_v54 = vld [vmem:[%s7519_s12 + $0x30] sm:$0xff] }
 0x499   :  { %658 = vmatpush1.msra.mxu1 %v6024_v54 }
 0x49c   :  { %431 = vbcast.lane.b32.xlu1 %v429_v56, 256  ;;  %435 = vbcast.lane.b32.xlu0 %v429_v56, 264  ;;  %v6029_v56 = vld [vmem:[%s7519_s12 + $0x28] sm:$0xff] }
 0x49d   :  { %659 = vmatprep.subr.mxu1 %v6029_v56 }
 0x4a0   :  { %537 = vrot.lane.b32.xlu0 %v5866_v48, %s5662_s15 }
 0x50a   :  { %v425_v62 = vpop.permute.xlu1 %424  ;;  %v421_v63 = vpop.permute.xlu0 %420 }
 0x50b   :  { %v438_v9 = vmul.f32 %v425_v62, %v5841_v30  ;;  %v437_v10 = vmul.f32 %v421_v63, %v5843_v32  ;;  %v6035_v62 = vld [vmem:[%s7519_s12 + $0x20] sm:$0xff]  ;;  %v6042_v63 = vld [vmem:[%s7519_s12 + $0x18] sm:$0xff] }
 0x50c   :  { %660 = vmatpush1.msra.mxu1 %v6035_v62 }
 0x50d   :  { %v443_v11 = vsel %vm441_vm6, %v438_v9, 0.0  ;;  %v442_v12 = vsel %vm441_vm6, %v437_v10, 0.0  ;;  %v6048_v9 = vld [vmem:[%s7519_s12 + $0x10] sm:$0xff]  ;;  %v6054_v10 = vld [vmem:[%s7519_s12 + $0x8] sm:$0xff]  ;;  %661 = vmatprep.subr.mxu1 %v6042_v63 }
 0x50e   :  { %v444_v13 = vadd.f32 %v443_v11, %v442_v12  ;;  %v432_v14 = vpop.permute.xlu1 %431  ;;  %v436_v15 = vpop.permute.xlu0 %435  ;;  %v6060_v11 = vld [vmem:[%s7519_s12] sm:$0xff]  ;;  %662 = vmatpush1.msra.mxu1 %v6048_v9 }
 0x50f   :  { %v439_v16 = vmul.f32 %v432_v14, %v5857_v40  ;;  %v440_v17 = vmul.f32 %v436_v15, %v5847_v34  ;;  %663 = vmatprep.subr.mxu1 %v6054_v10  ;;  %v6069_v14 = vld [vmem:[%s7520_s11] ss:$0 sm:$0xff] }
 0x510   :  { %v445_v18 = vrot.slane %v444_v13, 4  ;;  %664 = vmatpush1.msra.mxu1 %v6060_v11 }
 0x511   :  { %v451_v21 = vsel %vm441_vm6, %v439_v16, 0.0  ;;  %v452_v22 = vsel %vm441_vm6, %v440_v17, 0.0  ;;  %5162 = vmatprep.subr.mxu1 %v7526_v0 }
 0x512   :  { %v446_v23 = vadd.f32 %v445_v18, %v444_v13  ;;  %v453_v24 = vadd.f32 %v452_v22, %v451_v21  ;;  %v538_v49 = vpop.permute.xlu0 %537 }
 0x514   :  { %v447_v26 = vrot.slane %v446_v23, 2  ;;  %v454_v27 = vrot.slane %v453_v24, 4 }
 0x516   :  { %v455_v28 = vadd.f32 %v454_v27, %v453_v24  ;;  %v448_v29 = vadd.f32 %v447_v26, %v446_v23  ;;  %v4893_v24 = vld [vmem:[%s7514_s0 + $0x2] sm:$0x3] }
 0x518   :  { %v456_v31 = vrot.slane %v455_v28, 2  ;;  %v449_v33 = vrot.slane %v448_v29, 1 }
 0x51a   :  { %v457_v35 = vadd.f32 %v456_v31, %v455_v28  ;;  %v450_v38 = vadd.f32 %v449_v33, %v448_v29 }
 0x51c   :  { %v458_v36 = vrot.slane %v457_v35, 1 }
 0x51e   :  { %v459_v39 = vadd.f32 %v458_v36, %v457_v35 }
 0x520   :  { %v462_v41 = vsel %vm399_vm3, %v459_v39, %v450_v38 }
 0x521   :  { %463 = vrot.lane.b32.xlu1 %v462_v41, %s5663_s18 }
 0x525   :  { %888 = vrot.lane.b32.xlu1 %v5866_v48, %s5661_s30  ;;  %v5985_v48 = vld [vmem:[%s7518_s9 + $0x8] sm:$0xff] }
 0x593   :  { %v464_v43 = vpop.permute.xlu1 %463 }
 0x594   :  { %5130 = vmatmul.mubr.msk.f32.vlgmr.msra.gmra.mxu0 %vm67_vm1, %v464_v43 }
 0x595   :  { %5133 = vmatpush3.msra.mxu0 %v5970_v42  ;;  %5140 = vmatprep.mubr.msk.f32.mxu0 %vm5660_vm0, %v7526_v0 }
 0x596   :  { %5134 = vmatprep.subr.mxu0 %v7526_v0 }
 0x597   :  { %5135 = vmatpush3.msra.mxu0 %v5976_v44  ;;  %v889_v22 = vpop.permute.xlu1 %888 }
 0x598   :  { %5136 = vmatprep.subr.mxu0 %v7526_v0 }
 0x599   :  { %5137 = vmatpush3.msra.mxu0 %v5985_v48 }
 0x59a   :  { %5138 = vmatprep.subr.mxu0 %v7526_v0 }
 0x59b   :  { %5139 = vmatpush3.msra.mxu0 %v5992_v47 }
 0x59c   :  { %5141 = vmatmul.mubr.msk.f32.vlgmr.msra.gmra.mxu0 %vm67_vm1, %v538_v49  ;;  %5143 = vmatprep.subr.mxu0 %v7526_v0 }
 0x59d   :  { %5144 = vmatpush3.msra.mxu0 %v5746_v1  ;;  %5159 = vmatprep.mubr.msk.f32.mxu0 %vm5660_vm0, %v7526_v0 }
 0x59e   :  { %5145 = vmatprep.subr.mxu0 %v7526_v0 }
 0x59f   :  { %5146 = vmatpush3.msra.mxu0 %v5751_v2 }
 0x5a0   :  { %5147 = vmatprep.subr.mxu0 %v7526_v0 }
 0x5a1   :  { %5148 = vmatpush3.msra.mxu0 %v5760_v3 }
 0x5a2   :  { %5149 = vmatprep.subr.mxu0 %v7526_v0 }
 0x5a3   :  { %5150 = vmatpush3.msra.mxu0 %v5767_v4 }
 0x5a4   :  { %5151 = vmatprep.subr.mxu0 %v7526_v0 }
 0x5a5   :  { %5152 = vmatpush3.msra.mxu0 %v5774_v5 }
 0x5a6   :  { %5153 = vmatprep.subr.mxu0 %v7526_v0 }
 0x5a7   :  { %5154 = vmatpush3.msra.mxu0 %v5781_v6 }
 0x5a8   :  { %5155 = vmatprep.subr.mxu0 %v7526_v0 }
 0x5a9   :  { %5156 = vmatpush3.msra.mxu0 %v5788_v7 }
 0x5aa   :  { %5157 = vmatprep.subr.mxu0 %v7526_v0 }
 0x5ab   :  { %5158 = vmatpush3.msra.mxu0 %v5795_v8 }
 0x5ac   :  { %1317 = vmatprep.subr.mxu0 %v6019_v53 }
 0x654   :  { %v533_v12 = vpop.f32.mrf.mxu0 }
 0x656   :  { %v5131_v13 = vpop.f32.mrf.mxu0 }
 0x65c   :  { %v607_v15 = vpop.f32.mrf.mxu0 }
 0x65d   :  { %v608_v16 = vadd.f32 %v607_v15, %v533_v12 }
 0x65e   :  { %v5142_v17 = vpop.f32.mrf.mxu0 }
 0x65f   :  { %v617_v18 = vadd.f32 %v6069_v14, %v608_v16 }
 0x661   :  { %5415 = vtanh.f32 %v617_v18 }
 0x66e   :  { %v5416_v21 = vpop.eup %5415 }
 0x66f   :  { %4891 = vmatmul.mubr.msk.f32.vlgmr.msra.gmra.mxu1 %vm67_vm1, %v5416_v21  ;;  %v891_v23 = vsel %vm67_vm1, %v5416_v21, %v889_v22 }
 0x670   :  { %5160 = vmatmul.mubr.msk.f32.vlgmr.msra.gmra.mxu0 %vm192_vm7, %v891_v23  ;;  %5163 = vmatpush3.msra.mxu1 %v5930_v57 }
 0x671   :  { %5164 = vmatprep.subr.mxu1 %v7526_v0  ;;  %5170 = vmatprep.mubr.msk.f32.mxu1 %vm5660_vm0, %v7526_v0 }
 0x672   :  { %5165 = vmatpush3.msra.mxu1 %v5935_v58  ;;  %1318 = vmatpush1.msra.mxu0 %v6024_v54 }
 0x673   :  { %5166 = vmatprep.subr.mxu1 %v7526_v0  ;;  %1319 = vmatprep.subr.mxu0 %v6029_v56 }
 0x674   :  { %5167 = vmatpush3.msra.mxu1 %v5942_v45  ;;  %1320 = vmatpush1.msra.mxu0 %v6035_v62 }
 0x675   :  { %5168 = vmatprep.subr.mxu1 %v7526_v0  ;;  %1321 = vmatprep.subr.mxu0 %v6042_v63 }
 0x676   :  { %5169 = vmatpush3.msra.mxu1 %v5949_v59  ;;  %1322 = vmatpush1.msra.mxu0 %v6048_v9 }
 0x677   :  { %5173 = vmatprep.subr.mxu1 %v7526_v0  ;;  %1323 = vmatprep.subr.mxu0 %v6054_v10 }
 0x678   :  { %1324 = vmatpush1.msra.mxu0 %v6060_v11  ;;  %1357 = vmatprep.mubr.f32.mxu0 %v7526_v0 }
 0x679   :  { %5203 = vmatprep.subr.mxu0 %v7526_v0 }
 0x730   :  { %v963_v26 = vpop.f32.mrf.mxu0 }
 0x731   :  { %v967_v27 = vadd.f32 %v4893_v24, %v963_v26 }
 0x732   :  { %v5161_v28 = vpop.f32.mrf.mxu0 }
 0x733   :  { %5417 = vtanh.f32 %v967_v27  ;;  %v4895_v31 = vmul.f32 -1.442695, %v967_v27 }
 0x735   :  { %5419 = vpow2.f32 %v4895_v31 }
 0x740   :  { %v5418_v29 = vpop.eup %5417 }
 0x741   :  { %977 = vrot.lane.b32.xlu0 %v5418_v29, %s5661_s30 }
 0x742   :  { %v5420_v33 = vpop.eup %5419 }
 0x743   :  { %v971_v35 = vadd.f32 1.0, %v5420_v33 }
 0x745   :  { %5421 = vrcp.f32 %v971_v35 }
 0x752   :  { %v5422_v36 = vpop.eup %5421 }
 0x753   :  { %v975_v41 = vmul.f32 %v5422_v36, %v5851_v37 }
 0x7b3   :  { %v978_v38 = vpop.permute.xlu0 %977 }
 0x7b4   :  { %v980_v39 = vmul.f32 %v5422_v36, %v978_v38 }
 0x7b6   :  { %982 = vrot.lane.b32.xlu1 %v980_v39, %s5662_s15 }
 0x828   :  { %v983_v43 = vpop.permute.xlu1 %982 }
 0x829   :  { %v6100_v49 = vadd.f32 %v983_v43, %v975_v41 }
 0x82b   :  { %5423 = vtanh.f32 %v6100_v49 }
 0x838   :  { %v5424_v12 = vpop.eup %5423 }
 0x839   :  { %988 = vrot.lane.b32.xlu0 %v5424_v12, %s5661_s30 }
 0x8ab   :  { %v989_v13 = vpop.permute.xlu0 %988 }
 0x8ac   :  { %v6104_v15 = vmul.f32 %v5422_v36, %v989_v13 }
 0x8ae   :  { %v999_v16 = vrot.slane %v6104_v15, %v5864_v46 }
 0x8b0   :  { %v1000_v17 = vcombine.high %v999_v16, %v999_v16  ;;  %v1007_v18 = vrot.slane %v999_v16, %v5864_v46 }
 0x8b2   :  { %v1018_v21 = vrot.slane %v1007_v18, %v5871_v50  ;;  %v1014_v37 = vrot.slane %v1000_v17, %v5864_v46 }
 0x8b4   :  { %v1026_v22 = vmul.f32 %v1018_v21, %v5873_v51  ;;  %v1025_v23 = vmul.f32 %v1018_v21, %v5875_v52  ;;  %v1022_v24 = vrot.slane %v1014_v37, %v5871_v50 }
 0x8b6   :  { %1035 = vrot.lane.b32.xlu0 %v1026_v22, %s5662_s15  ;;  %1033 = vrot.lane.b32.xlu1 %v1025_v23, %s5662_s15  ;;  %v1028_v26 = vmul.f32 %v1022_v24, %v5883_v60  ;;  %v1027_v27 = vmul.f32 %v1022_v24, %v5885_v61 }
 0x8ba   :  { %1039 = vrot.lane.b32.xlu0 %v1028_v26, %s5662_s15  ;;  %1037 = vrot.lane.b32.xlu1 %v1027_v27, %s5662_s15 }
 0x928   :  { %v1036_v28 = vpop.permute.xlu0 %1035  ;;  %v1034_v29 = vpop.permute.xlu1 %1033 }
 0x929   :  { %v1048_v31 = vsel %vm67_vm1, %v1036_v28, 0.0  ;;  %v1045_v33 = vsel %vm67_vm1, %v1034_v29, 0.0 }
 0x92a   :  { %1049 = vadd.xlane.f32.xlu0 %v1048_v31  ;;  %1046 = vadd.xlane.f32.xlu1 %v1045_v33 }
 0x92c   :  { %v1040_v35 = vpop.permute.xlu0 %1039  ;;  %v1038_v36 = vpop.permute.xlu1 %1037 }
 0x92d   :  { %v1054_v38 = vsel %vm67_vm1, %v1040_v35, 0.0  ;;  %v1051_v39 = vsel %vm67_vm1, %v1038_v36, 0.0 }
 0x92e   :  { %1055 = vadd.xlane.f32.xlu1 %v1054_v38  ;;  %1052 = vadd.xlane.f32.xlu0 %v1051_v39 }
 0x9b3   :  { %v1050_v41 = vpop.xlane.xlu0 %1049  ;;  %v1047_v43 = vpop.xlane.xlu1 %1046 }
 0x9b4   :  { %v1068_v12 = vrot.slane %v1050_v41, %v5898_v19  ;;  %v1064_v13 = vrot.slane %v1047_v43, %v5901_v20 }
 0x9b6   :  { %v1069_v37 = vsel %vm388_vm2, %v1068_v12, %v1064_v13 }
 0x9b7   :  { %v1053_v16 = vpop.xlane.xlu0 %1052  ;;  %v1056_v17 = vpop.xlane.xlu1 %1055 }
 0x9b8   :  { %v1073_v18 = vrot.slane %v1053_v16, %v5901_v20  ;;  %v1077_v21 = vrot.slane %v1056_v17, %v5898_v19 }
 0x9ba   :  { %v1078_v22 = vsel %vm388_vm2, %v1077_v21, %v1073_v18 }
 0x9bb   :  { %v1079_v23 = vsel %vm399_vm3, %v1078_v22, %v1069_v37 }
 0x9bc   :  { %v1081_v24 = vsel %vm372_vm4, %v1079_v23, -1e+30 }
 0x9bd   :  { %v1082_v26 = vsel %vm403_vm5, %v1081_v24, -inf }
 0x9be   :  { %1083 = vmax.xlane.f32.xlu0 %v1082_v26 }
 0xa47   :  { %v1084_v27 = vpop.xlane.xlu0 %1083 }
 0xa48   :  { %v1085_v28 = vsub.f32 %v1081_v24, %v1084_v27 }
 0xa4a   :  { %v1086_v29 = vmul.f32 1.442695, %v1085_v28 }
 0xa4c   :  { %5425 = vpow2.f32 %v1086_v29 }
 0xa59   :  { %v5426_v31 = vpop.eup %5425 }
 0xa5a   :  { %v1088_v33 = vsel %vm403_vm5, %v5426_v31, 0.0 }
 0xa5b   :  { %1089 = vadd.xlane.f32.xlu1 %v1088_v33 }
 0xae4   :  { %v1090_v35 = vpop.xlane.xlu1 %1089 }
 0xae5   :  { %5427 = vrcp.f32 %v1090_v35 }
 0xaf2   :  { %v5428_v36 = vpop.eup %5427 }
 0xaf3   :  { %v1092_v38 = vmul.f32 %v5428_v36, %v5426_v31 }
 0xaf5   :  { %v1096_v39 = vrot.slane %v1092_v38, %v5871_v50  ;;  %v1107_v41 = vrot.slane %v1092_v38, %v5922_v55 }
 0xaf7   :  { %1102 = vbcast.lane.b32.xlu1 %v1096_v39, 264  ;;  %1098 = vbcast.lane.b32.xlu0 %v1096_v39, 256 }
 0xafb   :  { %1109 = vbcast.lane.b32.xlu1 %v1107_v41, 256  ;;  %1113 = vbcast.lane.b32.xlu0 %v1107_v41, 264 }
 0xaff   :  { %1214 = vrot.lane.b32.xlu0 %v6104_v15, %s5662_s15 }
 0xb69   :  { %v1103_v43 = vpop.permute.xlu1 %1102  ;;  %v1099_v12 = vpop.permute.xlu0 %1098 }
 0xb6a   :  { %v1116_v13 = vmul.f32 %v1103_v43, %v5841_v30  ;;  %v1115_v16 = vmul.f32 %v1099_v12, %v5843_v32 }
 0xb6c   :  { %v1120_v17 = vsel %vm441_vm6, %v1116_v13, 0.0  ;;  %v1119_v18 = vsel %vm441_vm6, %v1115_v16, 0.0 }
 0xb6d   :  { %v1121_v21 = vadd.f32 %v1120_v17, %v1119_v18  ;;  %v1110_v37 = vpop.permute.xlu1 %1109  ;;  %v1114_v22 = vpop.permute.xlu0 %1113 }
 0xb6e   :  { %v1117_v23 = vmul.f32 %v1110_v37, %v5857_v40  ;;  %v1118_v24 = vmul.f32 %v1114_v22, %v5847_v34 }
 0xb6f   :  { %v1122_v26 = vrot.slane %v1121_v21, 4 }
 0xb70   :  { %v1128_v27 = vsel %vm441_vm6, %v1117_v23, 0.0  ;;  %v1129_v28 = vsel %vm441_vm6, %v1118_v24, 0.0  ;;  %v4902_v23 = vld [vmem:[%s7514_s0 + $0x4] sm:$0x3] }
 0xb71   :  { %v1123_v29 = vadd.f32 %v1122_v26, %v1121_v21  ;;  %v1130_v31 = vadd.f32 %v1129_v28, %v1128_v27  ;;  %v1215_v21 = vpop.permute.xlu0 %1214 }
 0xb73   :  { %v1124_v33 = vrot.slane %v1123_v29, 2  ;;  %v1131_v35 = vrot.slane %v1130_v31, 4 }
 0xb75   :  { %v1132_v36 = vadd.f32 %v1131_v35, %v1130_v31  ;;  %v1125_v38 = vadd.f32 %v1124_v33, %v1123_v29 }
 0xb77   :  { %v1133_v39 = vrot.slane %v1132_v36, 2  ;;  %v1126_v41 = vrot.slane %v1125_v38, 1 }
 0xb79   :  { %v1134_v43 = vadd.f32 %v1133_v39, %v1132_v36  ;;  %v1127_v13 = vadd.f32 %v1126_v41, %v1125_v38 }
 0xb7b   :  { %v1135_v12 = vrot.slane %v1134_v43, 1 }
 0xb7d   :  { %v1136_v16 = vadd.f32 %v1135_v12, %v1134_v43 }
 0xb7f   :  { %v1139_v17 = vsel %vm399_vm3, %v1136_v16, %v1127_v13 }
 0xb80   :  { %1140 = vrot.lane.b32.xlu1 %v1139_v17, %s5663_s18 }
 0xb84   :  { %1549 = vrot.lane.b32.xlu1 %v6104_v15, %s5661_s30 }
 0xbf2   :  { %v1141_v18 = vpop.permute.xlu1 %1140 }
 0xbf3   :  { %5171 = vmatmul.mubr.msk.f32.vlgmr.msra.gmra.mxu1 %vm67_vm1, %v1141_v18 }
 0xbf4   :  { %5174 = vmatpush3.msra.mxu1 %v5970_v42  ;;  %5181 = vmatprep.mubr.msk.f32.mxu1 %vm5660_vm0, %v7526_v0 }
 0xbf5   :  { %5175 = vmatprep.subr.mxu1 %v7526_v0 }
 0xbf6   :  { %5176 = vmatpush3.msra.mxu1 %v5976_v44 }
 0xbf7   :  { %5177 = vmatprep.subr.mxu1 %v7526_v0 }
 0xbf8   :  { %5178 = vmatpush3.msra.mxu1 %v5985_v48 }
 0xbf9   :  { %5179 = vmatprep.subr.mxu1 %v7526_v0 }
 0xbfa   :  { %5180 = vmatpush3.msra.mxu1 %v5992_v47 }
 0xbfb   :  { %5182 = vmatmul.mubr.msk.f32.vlgmr.msra.gmra.mxu1 %vm67_vm1, %v1215_v21  ;;  %5184 = vmatprep.subr.mxu1 %v7526_v0 }
 0xbfc   :  { %5185 = vmatpush3.msra.mxu1 %v5746_v1  ;;  %5200 = vmatprep.mubr.msk.f32.mxu1 %vm5660_vm0, %v7526_v0  ;;  %v6181_v1 = vpop.f32.mrf.mxu1 }
 0xbfd   :  { %5186 = vmatprep.subr.mxu1 %v7526_v0 }
 0xbfe   :  { %5187 = vmatpush3.msra.mxu1 %v5751_v2  ;;  %v6183_v2 = vpop.f32.mrf.mxu1 }
 0xbff   :  { %5188 = vmatprep.subr.mxu1 %v7526_v0 }
 0xc00   :  { %5189 = vmatpush3.msra.mxu1 %v5760_v3 }
 0xc01   :  { %5190 = vmatprep.subr.mxu1 %v7526_v0 }
 0xc02   :  { %5191 = vmatpush3.msra.mxu1 %v5767_v4 }
 0xc03   :  { %5192 = vmatprep.subr.mxu1 %v7526_v0 }
 0xc04   :  { %5193 = vmatpush3.msra.mxu1 %v5774_v5 }
 0xc05   :  { %5194 = vmatprep.subr.mxu1 %v7526_v0 }
 0xc06   :  { %5195 = vmatpush3.msra.mxu1 %v5781_v6 }
 0xc07   :  { %5196 = vmatprep.subr.mxu1 %v7526_v0 }
 0xc08   :  { %5197 = vmatpush3.msra.mxu1 %v5788_v7  ;;  %v1550_v7 = vpop.permute.xlu1 %1549 }
 0xc09   :  { %5198 = vmatprep.subr.mxu1 %v7526_v0 }
 0xc0a   :  { %5199 = vmatpush3.msra.mxu1 %v5795_v8 }
 0xc0b   :  { %1978 = vmatprep.subr.mxu1 %v6019_v53 }
 0xcb3   :  { %v1210_v3 = vpop.f32.mrf.mxu1 }
 0xcb5   :  { %v5172_v4 = vpop.f32.mrf.mxu1 }
 0xcbb   :  { %v1284_v5 = vpop.f32.mrf.mxu1 }
 0xcbc   :  { %v1285_v15 = vadd.f32 %v1284_v5, %v1210_v3 }
 0xcbd   :  { %v5183_v37 = vpop.f32.mrf.mxu1 }
 0xcbe   :  { %v1288_v6 = vadd.f32 %v6069_v14, %v1285_v15 }
 0xcc0   :  { %5429 = vtanh.f32 %v1288_v6 }
 0xccd   :  { %v5430_v22 = vpop.eup %5429 }
 0xcce   :  { %4898 = vmatmul.mubr.msk.f32.vlgmr.msra.gmra.mxu0 %vm67_vm1, %v5430_v22  ;;  %v1552_v8 = vsel %vm67_vm1, %v5430_v22, %v1550_v7 }
 0xccf   :  { %5201 = vmatmul.mubr.msk.f32.vlgmr.msra.gmra.mxu1 %vm192_vm7, %v1552_v8  ;;  %5204 = vmatpush3.msra.mxu0 %v5930_v57 }
 0xcd0   :  { %5205 = vmatprep.subr.mxu0 %v7526_v0  ;;  %5211 = vmatprep.mubr.msk.f32.mxu0 %vm5660_vm0, %v7526_v0 }
 0xcd1   :  { %5206 = vmatpush3.msra.mxu0 %v5935_v58  ;;  %1979 = vmatpush1.msra.mxu1 %v6024_v54 }
 0xcd2   :  { %5207 = vmatprep.subr.mxu0 %v7526_v0  ;;  %1980 = vmatprep.subr.mxu1 %v6029_v56 }
 0xcd3   :  { %5208 = vmatpush3.msra.mxu0 %v5942_v45  ;;  %1981 = vmatpush1.msra.mxu1 %v6035_v62 }
 0xcd4   :  { %5209 = vmatprep.subr.mxu0 %v7526_v0  ;;  %1982 = vmatprep.subr.mxu1 %v6042_v63 }
 0xcd5   :  { %5210 = vmatpush3.msra.mxu0 %v5949_v59  ;;  %1983 = vmatpush1.msra.mxu1 %v6048_v9 }
 0xcd6   :  { %5214 = vmatprep.subr.mxu0 %v7526_v0  ;;  %1984 = vmatprep.subr.mxu1 %v6054_v10 }
 0xcd7   :  { %1985 = vmatpush1.msra.mxu1 %v6060_v11  ;;  %2018 = vmatprep.mubr.f32.mxu1 %v7526_v0 }
 0xcd8   :  { %5244 = vmatprep.subr.mxu1 %v7526_v0 }
 0xd8f   :  { %v1624_v24 = vpop.f32.mrf.mxu1 }
 0xd90   :  { %v1628_v26 = vadd.f32 %v4902_v23, %v1624_v24 }
 0xd91   :  { %v5202_v27 = vpop.f32.mrf.mxu1 }
 0xd92   :  { %5431 = vtanh.f32 %v1628_v26  ;;  %v4904_v29 = vmul.f32 -1.442695, %v1628_v26 }
 0xd94   :  { %5433 = vpow2.f32 %v4904_v29 }
 0xd9f   :  { %v5432_v28 = vpop.eup %5431 }
 0xda0   :  { %1638 = vrot.lane.b32.xlu0 %v5432_v28, %s5661_s30 }
 0xda1   :  { %v5434_v31 = vpop.eup %5433 }
 0xda2   :  { %v1632_v33 = vadd.f32 1.0, %v5434_v31 }
 0xda4   :  { %5435 = vrcp.f32 %v1632_v33 }
 0xdb1   :  { %v5436_v35 = vpop.eup %5435 }
 0xdb2   :  { %v1636_v39 = vmul.f32 %v5436_v35, %v6100_v49 }
 0xe12   :  { %v1639_v36 = vpop.permute.xlu0 %1638 }
 0xe13   :  { %v1641_v38 = vmul.f32 %v5436_v35, %v1639_v36 }
 0xe15   :  { %1643 = vrot.lane.b32.xlu1 %v1641_v38, %s5662_s15 }
 0xe87   :  { %v1644_v41 = vpop.permute.xlu1 %1643 }
 0xe88   :  { %v6214_v43 = vadd.f32 %v1644_v41, %v1636_v39 }
 0xe8a   :  { %5437 = vtanh.f32 %v6214_v43 }
 0xe97   :  { %v5438_v12 = vpop.eup %5437 }
 0xe98   :  { %1649 = vrot.lane.b32.xlu0 %v5438_v12, %s5661_s30 }
 0xf0a   :  { %v1650_v13 = vpop.permute.xlu0 %1649 }
 0xf0b   :  { %v6218_v16 = vmul.f32 %v5436_v35, %v1650_v13 }
 0xf0d   :  { %v1660_v17 = vrot.slane %v6218_v16, %v5864_v46 }
 0xf0f   :  { %v1661_v18 = vcombine.high %v1660_v17, %v1660_v17  ;;  %v1668_v21 = vrot.slane %v1660_v17, %v5864_v46 }
 0xf11   :  { %v1679_v3 = vrot.slane %v1668_v21, %v5871_v50  ;;  %v1675_v49 = vrot.slane %v1661_v18, %v5864_v46 }
 0xf13   :  { %v1687_v4 = vmul.f32 %v1679_v3, %v5873_v51  ;;  %v1686_v5 = vmul.f32 %v1679_v3, %v5875_v52  ;;  %v1683_v15 = vrot.slane %v1675_v49, %v5871_v50 }
 0xf15   :  { %1696 = vrot.lane.b32.xlu0 %v1687_v4, %s5662_s15  ;;  %1694 = vrot.lane.b32.xlu1 %v1686_v5, %s5662_s15  ;;  %v1689_v37 = vmul.f32 %v1683_v15, %v5883_v60  ;;  %v1688_v6 = vmul.f32 %v1683_v15, %v5885_v61 }
 0xf19   :  { %1700 = vrot.lane.b32.xlu0 %v1689_v37, %s5662_s15  ;;  %1698 = vrot.lane.b32.xlu1 %v1688_v6, %s5662_s15 }
 0xf87   :  { %v1697_v22 = vpop.permute.xlu0 %1696  ;;  %v1695_v7 = vpop.permute.xlu1 %1694 }
 0xf88   :  { %v1709_v8 = vsel %vm67_vm1, %v1697_v22, 0.0  ;;  %v1706_v23 = vsel %vm67_vm1, %v1695_v7, 0.0 }
 0xf89   :  { %1710 = vadd.xlane.f32.xlu0 %v1709_v8  ;;  %1707 = vadd.xlane.f32.xlu1 %v1706_v23 }
 0xf8b   :  { %v1701_v24 = vpop.permute.xlu0 %1700  ;;  %v1699_v26 = vpop.permute.xlu1 %1698 }
 0xf8c   :  { %v1715_v27 = vsel %vm67_vm1, %v1701_v24, 0.0  ;;  %v1712_v28 = vsel %vm67_vm1, %v1699_v26, 0.0 }
 0xf8d   :  { %1716 = vadd.xlane.f32.xlu1 %v1715_v27  ;;  %1713 = vadd.xlane.f32.xlu0 %v1712_v28 }
0x1012   :  { %v1711_v29 = vpop.xlane.xlu0 %1710  ;;  %v1708_v31 = vpop.xlane.xlu1 %1707 }
0x1013   :  { %v1729_v33 = vrot.slane %v1711_v29, %v5898_v19  ;;  %v1725_v35 = vrot.slane %v1708_v31, %v5901_v20 }
0x1015   :  { %v1730_v12 = vsel %vm388_vm2, %v1729_v33, %v1725_v35 }
0x1016   :  { %v1714_v36 = vpop.xlane.xlu0 %1713  ;;  %v1717_v38 = vpop.xlane.xlu1 %1716 }
0x1017   :  { %v1734_v39 = vrot.slane %v1714_v36, %v5901_v20  ;;  %v1738_v41 = vrot.slane %v1717_v38, %v5898_v19 }
0x1019   :  { %v1739_v13 = vsel %vm388_vm2, %v1738_v41, %v1734_v39 }
0x101a   :  { %v1740_v17 = vsel %vm399_vm3, %v1739_v13, %v1730_v12 }
0x101b   :  { %v1742_v18 = vsel %vm372_vm4, %v1740_v17, -1e+30 }
0x101c   :  { %v1743_v21 = vsel %vm403_vm5, %v1742_v18, -inf }
0x101d   :  { %1744 = vmax.xlane.f32.xlu0 %v1743_v21 }
0x10a6   :  { %v1745_v3 = vpop.xlane.xlu0 %1744 }
0x10a7   :  { %v1746_v49 = vsub.f32 %v1742_v18, %v1745_v3 }
0x10a9   :  { %v1747_v4 = vmul.f32 1.442695, %v1746_v49 }
0x10ab   :  { %5439 = vpow2.f32 %v1747_v4 }
0x10b8   :  { %v5440_v5 = vpop.eup %5439 }
0x10b9   :  { %v1749_v15 = vsel %vm403_vm5, %v5440_v5, 0.0 }
0x10ba   :  { %1750 = vadd.xlane.f32.xlu1 %v1749_v15 }
0x1143   :  { %v1751_v37 = vpop.xlane.xlu1 %1750 }
0x1144   :  { %5441 = vrcp.f32 %v1751_v37 }
0x1151   :  { %v5442_v6 = vpop.eup %5441 }
0x1152   :  { %v1753_v22 = vmul.f32 %v5442_v6, %v5440_v5 }
0x1154   :  { %v1757_v7 = vrot.slane %v1753_v22, %v5871_v50  ;;  %v1768_v8 = vrot.slane %v1753_v22, %v5922_v55 }
0x1156   :  { %1763 = vbcast.lane.b32.xlu1 %v1757_v7, 264  ;;  %1759 = vbcast.lane.b32.xlu0 %v1757_v7, 256 }
0x115a   :  { %1770 = vbcast.lane.b32.xlu1 %v1768_v8, 256  ;;  %1774 = vbcast.lane.b32.xlu0 %v1768_v8, 264 }
0x115e   :  { %1875 = vrot.lane.b32.xlu0 %v6218_v16, %s5662_s15 }
0x11c8   :  { %v1764_v23 = vpop.permute.xlu1 %1763  ;;  %v1760_v24 = vpop.permute.xlu0 %1759 }
0x11c9   :  { %v1777_v26 = vmul.f32 %v1764_v23, %v5841_v30  ;;  %v1776_v27 = vmul.f32 %v1760_v24, %v5843_v32  ;;  %v6317_v24 = vld [vmem:[%s7511_s8 + $0x10] sm:$0xff] }
0x11cb   :  { %v1781_v28 = vsel %vm441_vm6, %v1777_v26, 0.0  ;;  %v1780_v29 = vsel %vm441_vm6, %v1776_v27, 0.0  ;;  %v6324_v26 = vld [vmem:[%s7511_s8 + $0x8] sm:$0xff]  ;;  %v6331_v27 = vld [vmem:[%s7511_s8] sm:$0xff] }
0x11cc   :  { %v1782_v31 = vadd.f32 %v1781_v28, %v1780_v29  ;;  %v1771_v33 = vpop.permute.xlu1 %1770  ;;  %v1775_v35 = vpop.permute.xlu0 %1774 }
0x11cd   :  { %v1778_v36 = vmul.f32 %v1771_v33, %v5857_v40  ;;  %v1779_v38 = vmul.f32 %v1775_v35, %v5847_v34  ;;  %v6335_v28 = vpop.f32.mrf.mxu0 }
0x11ce   :  { %v1783_v39 = vrot.slane %v1782_v31, 4 }
0x11cf   :  { %v1789_v41 = vsel %vm441_vm6, %v1778_v36, 0.0  ;;  %v1790_v12 = vsel %vm441_vm6, %v1779_v38, 0.0  ;;  %v6337_v29 = vpop.f32.mrf.mxu0 }
0x11d0   :  { %v1784_v13 = vadd.f32 %v1783_v39, %v1782_v31  ;;  %v1791_v17 = vadd.f32 %v1790_v12, %v1789_v41  ;;  %v1876_v23 = vpop.permute.xlu0 %1875  ;;  %7529 = vst [vmem:[#allocation2_spill] sm:$0xff] %v6337_v29 }
0x11d2   :  { %v1785_v18 = vrot.slane %v1784_v13, 2  ;;  %v1792_v21 = vrot.slane %v1791_v17, 4 }
0x11d4   :  { %v1793_v3 = vadd.f32 %v1792_v21, %v1791_v17  ;;  %v1786_v49 = vadd.f32 %v1785_v18, %v1784_v13 }
0x11d6   :  { %v1794_v4 = vrot.slane %v1793_v3, 2  ;;  %v1787_v5 = vrot.slane %v1786_v49, 1 }
0x11d8   :  { %v1795_v15 = vadd.f32 %v1794_v4, %v1793_v3  ;;  %v1788_v6 = vadd.f32 %v1787_v5, %v1786_v49 }
0x11da   :  { %v1796_v37 = vrot.slane %v1795_v15, 1 }
0x11dc   :  { %v1797_v22 = vadd.f32 %v1796_v37, %v1795_v15 }
0x11de   :  { %v1800_v7 = vsel %vm399_vm3, %v1797_v22, %v1788_v6 }
0x11df   :  { %1801 = vrot.lane.b32.xlu1 %v1800_v7, %s5663_s18 }
0x11e3   :  { %2210 = vrot.lane.b32.xlu1 %v6218_v16, %s5661_s30  ;;  %v6310_v16 = vld [vmem:[%s7511_s8 + $0x18] sm:$0xff] }
0x1251   :  { %v1802_v8 = vpop.permute.xlu1 %1801 }
0x1252   :  { %5212 = vmatmul.mubr.msk.f32.vlgmr.msra.gmra.mxu0 %vm67_vm1, %v1802_v8 }
0x1253   :  { %5215 = vmatpush3.msra.mxu0 %v5970_v42  ;;  %5222 = vmatprep.mubr.msk.f32.mxu0 %vm5660_vm0, %v7526_v0  ;;  %v6280_v42 = vld [vmem:[%s7511_s8 + $0x38] sm:$0xff] }
0x1254   :  { %5216 = vmatprep.subr.mxu0 %v7526_v0 }
0x1255   :  { %5217 = vmatpush3.msra.mxu0 %v5976_v44  ;;  %v6289_v44 = vld [vmem:[%s7511_s8 + $0x30] sm:$0xff]  ;;  %v2211_v12 = vpop.permute.xlu1 %2210 }
0x1256   :  { %5218 = vmatprep.subr.mxu0 %v7526_v0 }
0x1257   :  { %5219 = vmatpush3.msra.mxu0 %v5985_v48  ;;  %v6296_v48 = vld [vmem:[%s7511_s8 + $0x28] sm:$0xff] }
0x1258   :  { %5220 = vmatprep.subr.mxu0 %v7526_v0 }
0x1259   :  { %5221 = vmatpush3.msra.mxu0 %v5992_v47  ;;  %v6303_v47 = vld [vmem:[%s7511_s8 + $0x20] sm:$0xff] }
0x125a   :  { %5223 = vmatmul.mubr.msk.f32.vlgmr.msra.gmra.mxu0 %vm67_vm1, %v1876_v23  ;;  %5225 = vmatprep.subr.mxu0 %v7526_v0 }
0x125b   :  { %5226 = vmatpush3.msra.mxu0 %v6280_v42  ;;  %5241 = vmatprep.mubr.msk.f32.mxu0 %vm5660_vm0, %v7526_v0 }
0x125c   :  { %5227 = vmatprep.subr.mxu0 %v7526_v0 }
0x125d   :  { %5228 = vmatpush3.msra.mxu0 %v6289_v44 }
0x125e   :  { %5229 = vmatprep.subr.mxu0 %v7526_v0 }
0x125f   :  { %5230 = vmatpush3.msra.mxu0 %v6296_v48 }
0x1260   :  { %5231 = vmatprep.subr.mxu0 %v7526_v0 }
0x1261   :  { %5232 = vmatpush3.msra.mxu0 %v6303_v47 }
0x1262   :  { %5233 = vmatprep.subr.mxu0 %v7526_v0 }
0x1263   :  { %5234 = vmatpush3.msra.mxu0 %v6310_v16 }
0x1264   :  { %5235 = vmatprep.subr.mxu0 %v7526_v0 }
0x1265   :  { %5236 = vmatpush3.msra.mxu0 %v6317_v24 }
0x1266   :  { %5237 = vmatprep.subr.mxu0 %v7526_v0 }
0x1267   :  { %5238 = vmatpush3.msra.mxu0 %v6324_v26 }
0x1268   :  { %5239 = vmatprep.subr.mxu0 %v7526_v0 }
0x1269   :  { %5240 = vmatpush3.msra.mxu0 %v6331_v27 }
0x126a   :  { %2639 = vmatprep.subr.mxu0 %v6019_v53 }
0x1312   :  { %v1871_v31 = vpop.f32.mrf.mxu0 }
0x1314   :  { %v5213_v33 = vpop.f32.mrf.mxu0 }
0x131a   :  { %v1945_v35 = vpop.f32.mrf.mxu0 }
0x131b   :  { %v1946_v36 = vadd.f32 %v1945_v35, %v1871_v31 }
0x131c   :  { %v5224_v38 = vpop.f32.mrf.mxu0 }
0x131d   :  { %v1949_v39 = vadd.f32 %v6069_v14, %v1946_v36 }
0x131f   :  { %5443 = vtanh.f32 %v1949_v39 }
0x132c   :  { %v5444_v41 = vpop.eup %5443 }
0x132d   :  { %4907 = vmatmul.mubr.msk.f32.vlgmr.msra.gmra.mxu1 %vm67_vm1, %v5444_v41  ;;  %v2213_v13 = vsel %vm67_vm1, %v5444_v41, %v2211_v12 }
0x132e   :  { %5242 = vmatmul.mubr.msk.f32.vlgmr.msra.gmra.mxu0 %vm192_vm7, %v2213_v13  ;;  %5245 = vmatpush3.msra.mxu1 %v5930_v57  ;;  %v4911_v57 = vld [vmem:[%s7514_s0 + $0x6] sm:$0x3] }
0x132f   :  { %5246 = vmatprep.subr.mxu1 %v7526_v0  ;;  %5252 = vmatprep.mubr.msk.f32.mxu1 %vm5660_vm0, %v7526_v0 }
0x1330   :  { %5247 = vmatpush3.msra.mxu1 %v5935_v58  ;;  %2640 = vmatpush1.msra.mxu0 %v6024_v54 }
0x1331   :  { %5248 = vmatprep.subr.mxu1 %v7526_v0  ;;  %2641 = vmatprep.subr.mxu0 %v6029_v56 }
0x1332   :  { %5249 = vmatpush3.msra.mxu1 %v5942_v45  ;;  %2642 = vmatpush1.msra.mxu0 %v6035_v62 }
0x1333   :  { %5250 = vmatprep.subr.mxu1 %v7526_v0  ;;  %2643 = vmatprep.subr.mxu0 %v6042_v63 }
0x1334   :  { %5251 = vmatpush3.msra.mxu1 %v5949_v59  ;;  %2644 = vmatpush1.msra.mxu0 %v6048_v9 }
0x1335   :  { %5255 = vmatprep.subr.mxu1 %v7526_v0  ;;  %2645 = vmatprep.subr.mxu0 %v6054_v10 }
0x1336   :  { %2646 = vmatpush1.msra.mxu0 %v6060_v11  ;;  %2679 = vmatprep.mubr.f32.mxu0 %v7526_v0 }
0x1337   :  { %5285 = vmatprep.subr.mxu0 %v7526_v0 }
0x13ee   :  { %v2285_v58 = vpop.f32.mrf.mxu0 }
0x13ef   :  { %v2289_v45 = vadd.f32 %v4911_v57, %v2285_v58 }
0x13f0   :  { %v5243_v53 = vpop.f32.mrf.mxu0 }
0x13f1   :  { %5445 = vtanh.f32 %v2289_v45  ;;  %v4913_v54 = vmul.f32 -1.442695, %v2289_v45 }
0x13f3   :  { %5447 = vpow2.f32 %v4913_v54 }
0x13fe   :  { %v5446_v59 = vpop.eup %5445 }
0x13ff   :  { %2299 = vrot.lane.b32.xlu0 %v5446_v59, %s5661_s30 }
0x1400   :  { %v5448_v56 = vpop.eup %5447 }
0x1401   :  { %v2293_v62 = vadd.f32 1.0, %v5448_v56 }
0x1403   :  { %5449 = vrcp.f32 %v2293_v62 }
0x1410   :  { %v5450_v63 = vpop.eup %5449 }
0x1411   :  { %v2297_v11 = vmul.f32 %v5450_v63, %v6214_v43 }
0x1471   :  { %v2300_v9 = vpop.permute.xlu0 %2299 }
0x1472   :  { %v2302_v10 = vmul.f32 %v5450_v63, %v2300_v9 }
0x1474   :  { %2304 = vrot.lane.b32.xlu1 %v2302_v10, %s5662_s15 }
0x14e6   :  { %v2305_v14 = vpop.permute.xlu1 %2304 }
0x14e7   :  { %v6368_v17 = vadd.f32 %v2305_v14, %v2297_v11 }
0x14e9   :  { %5451 = vtanh.f32 %v6368_v17 }
0x14f6   :  { %v5452_v18 = vpop.eup %5451 }
0x14f7   :  { %2310 = vrot.lane.b32.xlu0 %v5452_v18, %s5661_s30 }
0x1569   :  { %v2311_v21 = vpop.permute.xlu0 %2310 }
0x156a   :  { %v6372_v3 = vmul.f32 %v5450_v63, %v2311_v21 }
0x156c   :  { %v2321_v49 = vrot.slane %v6372_v3, %v5864_v46 }
0x156e   :  { %v2322_v4 = vcombine.high %v2321_v49, %v2321_v49  ;;  %v2329_v5 = vrot.slane %v2321_v49, %v5864_v46 }
0x1570   :  { %v2340_v15 = vrot.slane %v2329_v5, %v5871_v50  ;;  %v2336_v43 = vrot.slane %v2322_v4, %v5864_v46 }
0x1572   :  { %v2348_v37 = vmul.f32 %v2340_v15, %v5873_v51  ;;  %v2347_v6 = vmul.f32 %v2340_v15, %v5875_v52  ;;  %v2344_v22 = vrot.slane %v2336_v43, %v5871_v50 }
0x1574   :  { %2357 = vrot.lane.b32.xlu0 %v2348_v37, %s5662_s15  ;;  %2355 = vrot.lane.b32.xlu1 %v2347_v6, %s5662_s15  ;;  %v2350_v7 = vmul.f32 %v2344_v22, %v5883_v60  ;;  %v2349_v8 = vmul.f32 %v2344_v22, %v5885_v61 }
0x1578   :  { %2361 = vrot.lane.b32.xlu0 %v2350_v7, %s5662_s15  ;;  %2359 = vrot.lane.b32.xlu1 %v2349_v8, %s5662_s15 }
0x15e6   :  { %v2358_v23 = vpop.permute.xlu0 %2357  ;;  %v2356_v31 = vpop.permute.xlu1 %2355 }
0x15e7   :  { %v2370_v33 = vsel %vm67_vm1, %v2358_v23, 0.0  ;;  %v2367_v35 = vsel %vm67_vm1, %v2356_v31, 0.0 }
0x15e8   :  { %2371 = vadd.xlane.f32.xlu0 %v2370_v33  ;;  %2368 = vadd.xlane.f32.xlu1 %v2367_v35 }
0x15ea   :  { %v2362_v36 = vpop.permute.xlu0 %2361  ;;  %v2360_v38 = vpop.permute.xlu1 %2359 }
0x15eb   :  { %v2376_v39 = vsel %vm67_vm1, %v2362_v36, 0.0  ;;  %v2373_v41 = vsel %vm67_vm1, %v2360_v38, 0.0 }
0x15ec   :  { %2377 = vadd.xlane.f32.xlu1 %v2376_v39  ;;  %2374 = vadd.xlane.f32.xlu0 %v2373_v41 }
0x1671   :  { %v2372_v12 = vpop.xlane.xlu0 %2371  ;;  %v2369_v13 = vpop.xlane.xlu1 %2368 }
0x1672   :  { %v2390_v57 = vrot.slane %v2372_v12, %v5898_v19  ;;  %v2386_v58 = vrot.slane %v2369_v13, %v5901_v20 }
0x1674   :  { %v2391_v56 = vsel %vm388_vm2, %v2390_v57, %v2386_v58 }
0x1675   :  { %v2375_v45 = vpop.xlane.xlu0 %2374  ;;  %v2378_v53 = vpop.xlane.xlu1 %2377 }
0x1676   :  { %v2395_v59 = vrot.slane %v2375_v45, %v5901_v20  ;;  %v2399_v54 = vrot.slane %v2378_v53, %v5898_v19 }
0x1678   :  { %v2400_v62 = vsel %vm388_vm2, %v2399_v54, %v2395_v59 }
0x1679   :  { %v2401_v63 = vsel %vm399_vm3, %v2400_v62, %v2391_v56 }
0x167a   :  { %v2403_v9 = vsel %vm372_vm4, %v2401_v63, -1e+30 }
0x167b   :  { %v2404_v10 = vsel %vm403_vm5, %v2403_v9, -inf }
0x167c   :  { %2405 = vmax.xlane.f32.xlu0 %v2404_v10 }
0x1705   :  { %v2406_v11 = vpop.xlane.xlu0 %2405 }
0x1706   :  { %v2407_v14 = vsub.f32 %v2403_v9, %v2406_v11 }
0x1708   :  { %v2408_v18 = vmul.f32 1.442695, %v2407_v14 }
0x170a   :  { %5453 = vpow2.f32 %v2408_v18 }
0x1717   :  { %v5454_v21 = vpop.eup %5453 }
0x1718   :  { %v2410_v49 = vsel %vm403_vm5, %v5454_v21, 0.0 }
0x1719   :  { %2411 = vadd.xlane.f32.xlu1 %v2410_v49  ;;  %v6432_v49 = vld [vmem:[%s7518_s9 + $0x10] sm:$0xff] }
0x17a2   :  { %v2412_v4 = vpop.xlane.xlu1 %2411 }
0x17a3   :  { %5455 = vrcp.f32 %v2412_v4 }
0x17b0   :  { %v5456_v5 = vpop.eup %5455 }
0x17b1   :  { %v2414_v15 = vmul.f32 %v5456_v5, %v5454_v21  ;;  %v6423_v21 = vld [vmem:[%s7518_s9 + $0x18] sm:$0xff]  ;;  %v6446_v5 = vld [vmem:[%s7518_s9] sm:$0xff] }
0x17b3   :  { %v2418_v43 = vrot.slane %v2414_v15, %v5871_v50  ;;  %v2429_v37 = vrot.slane %v2414_v15, %v5922_v55  ;;  %v6471_v15 = vld [vmem:[%s7519_s12 + $0x38] sm:$0xff] }
0x17b5   :  { %2424 = vbcast.lane.b32.xlu1 %v2418_v43, 264  ;;  %2420 = vbcast.lane.b32.xlu0 %v2418_v43, 256  ;;  %v6474_v43 = vpop.f32.mrf.mxu1 }
0x17b6   :  { %7530 = vst [vmem:[#allocation3_spill] sm:$0xff] %v6474_v43 }
0x17b9   :  { %2431 = vbcast.lane.b32.xlu1 %v2429_v37, 256  ;;  %2435 = vbcast.lane.b32.xlu0 %v2429_v37, 264  ;;  %v6476_v37 = vpop.f32.mrf.mxu1 }
0x17ba   :  { %7531 = vst [vmem:[#allocation4_spill] sm:$0xff] %v6476_v37 }
0x17bd   :  { %2536 = vrot.lane.b32.xlu0 %v6372_v3, %s5662_s15 }
0x1827   :  { %v2425_v6 = vpop.permute.xlu1 %2424  ;;  %v2421_v22 = vpop.permute.xlu0 %2420 }
0x1828   :  { %v2438_v7 = vmul.f32 %v2425_v6, %v5841_v30  ;;  %v2437_v8 = vmul.f32 %v2421_v22, %v5843_v32 }
0x182a   :  { %v2442_v23 = vsel %vm441_vm6, %v2438_v7, 0.0  ;;  %v2441_v31 = vsel %vm441_vm6, %v2437_v8, 0.0 }
0x182b   :  { %v2443_v33 = vadd.f32 %v2442_v23, %v2441_v31  ;;  %v2432_v35 = vpop.permute.xlu1 %2431  ;;  %v2436_v36 = vpop.permute.xlu0 %2435  ;;  %v6481_v31 = vld [vmem:[%s7520_s11] ss:$0 sm:$0xff] }
0x182c   :  { %v2439_v38 = vmul.f32 %v2432_v35, %v5857_v40  ;;  %v2440_v39 = vmul.f32 %v2436_v36, %v5847_v34 }
0x182d   :  { %v2444_v41 = vrot.slane %v2443_v33, 4 }
0x182e   :  { %v2450_v12 = vsel %vm441_vm6, %v2439_v38, 0.0  ;;  %v2451_v13 = vsel %vm441_vm6, %v2440_v39, 0.0  ;;  %v6490_v39 = vld [vmem:[%s7517_s10 + $0x18] sm:$0xff] }
0x182f   :  { %v2445_v57 = vadd.f32 %v2444_v41, %v2443_v33  ;;  %v2452_v58 = vadd.f32 %v2451_v13, %v2450_v12  ;;  %v2537_v4 = vpop.permute.xlu0 %2536  ;;  %v6499_v41 = vld [vmem:[%s7517_s10 + $0x10] sm:$0xff]  ;;  %v6512_v13 = vld [vmem:[%s7519_s12 + $0x28] sm:$0xff] }
0x1830   :  { %v6505_v12 = vld [vmem:[%s7519_s12 + $0x30] sm:$0xff] }
0x1831   :  { %v2446_v45 = vrot.slane %v2445_v57, 2  ;;  %v2453_v53 = vrot.slane %v2452_v58, 4 }
0x1833   :  { %v2454_v59 = vadd.f32 %v2453_v53, %v2452_v58  ;;  %v2447_v54 = vadd.f32 %v2446_v45, %v2445_v57  ;;  %v6518_v57 = vld [vmem:[%s7517_s10 + $0x8] sm:$0xff]  ;;  %v6524_v58 = vld [vmem:[%s7519_s12 + $0x20] sm:$0xff]  ;;  %v6531_v45 = vld [vmem:[%s7519_s12 + $0x18] sm:$0xff] }
0x1834   :  { %v6537_v53 = vld [vmem:[%s7517_s10] sm:$0xff] }
0x1835   :  { %v2455_v56 = vrot.slane %v2454_v59, 2  ;;  %v2448_v62 = vrot.slane %v2447_v54, 1 }
0x1837   :  { %v2456_v63 = vadd.f32 %v2455_v56, %v2454_v59  ;;  %v2449_v10 = vadd.f32 %v2448_v62, %v2447_v54  ;;  %v6543_v59 = vld [vmem:[%s7519_s12 + $0x10] sm:$0xff]  ;;  %v6550_v54 = vld [vmem:[%s7519_s12 + $0x8] sm:$0xff]  ;;  %v6556_v56 = vld [vmem:[%s7519_s12] sm:$0xff] }
0x1838   :  { %v4920_v62 = vld [vmem:[%s7514_s0 + $0x8] sm:$0x3] }
0x1839   :  { %v2457_v9 = vrot.slane %v2456_v63, 1 }
0x183b   :  { %v2458_v11 = vadd.f32 %v2457_v9, %v2456_v63 }
0x183d   :  { %v2461_v14 = vsel %vm399_vm3, %v2458_v11, %v2449_v10 }
0x183e   :  { %2462 = vrot.lane.b32.xlu1 %v2461_v14, %s5663_s18 }
0x1842   :  { %2871 = vrot.lane.b32.xlu1 %v6372_v3, %s5661_s30  ;;  %v6439_v3 = vld [vmem:[%s7518_s9 + $0x8] sm:$0xff] }
0x18b0   :  { %v2463_v18 = vpop.permute.xlu1 %2462 }
0x18b1   :  { %5253 = vmatmul.mubr.msk.f32.vlgmr.msra.gmra.mxu1 %vm67_vm1, %v2463_v18 }
0x18b2   :  { %5256 = vmatpush3.msra.mxu1 %v6423_v21  ;;  %5263 = vmatprep.mubr.msk.f32.mxu1 %vm5660_vm0, %v7526_v0 }
0x18b3   :  { %5257 = vmatprep.subr.mxu1 %v7526_v0 }
0x18b4   :  { %5258 = vmatpush3.msra.mxu1 %v6432_v49  ;;  %v2872_v36 = vpop.permute.xlu1 %2871 }
0x18b5   :  { %5259 = vmatprep.subr.mxu1 %v7526_v0 }
0x18b6   :  { %5260 = vmatpush3.msra.mxu1 %v6439_v3 }
0x18b7   :  { %5261 = vmatprep.subr.mxu1 %v7526_v0 }
0x18b8   :  { %5262 = vmatpush3.msra.mxu1 %v6446_v5 }
0x18b9   :  { %5264 = vmatmul.mubr.msk.f32.vlgmr.msra.gmra.mxu1 %vm67_vm1, %v2537_v4  ;;  %5266 = vmatprep.subr.mxu1 %v7526_v0 }
0x18ba   :  { %5267 = vmatpush3.msra.mxu1 %v6280_v42  ;;  %5282 = vmatprep.mubr.msk.f32.mxu1 %vm5660_vm0, %v7526_v0 }
0x18bb   :  { %5268 = vmatprep.subr.mxu1 %v7526_v0 }
0x18bc   :  { %5269 = vmatpush3.msra.mxu1 %v6289_v44 }
0x18bd   :  { %5270 = vmatprep.subr.mxu1 %v7526_v0 }
0x18be   :  { %5271 = vmatpush3.msra.mxu1 %v6296_v48 }
0x18bf   :  { %5272 = vmatprep.subr.mxu1 %v7526_v0 }
0x18c0   :  { %5273 = vmatpush3.msra.mxu1 %v6303_v47 }
0x18c1   :  { %5274 = vmatprep.subr.mxu1 %v7526_v0 }
0x18c2   :  { %5275 = vmatpush3.msra.mxu1 %v6310_v16 }
0x18c3   :  { %5276 = vmatprep.subr.mxu1 %v7526_v0 }
0x18c4   :  { %5277 = vmatpush3.msra.mxu1 %v6317_v24 }
0x18c5   :  { %5278 = vmatprep.subr.mxu1 %v7526_v0 }
0x18c6   :  { %5279 = vmatpush3.msra.mxu1 %v6324_v26 }
0x18c7   :  { %5280 = vmatprep.subr.mxu1 %v7526_v0 }
0x18c8   :  { %5281 = vmatpush3.msra.mxu1 %v6331_v27 }
0x18c9   :  { %3300 = vmatprep.subr.mxu1 %v6471_v15 }
0x1971   :  { %v2532_v6 = vpop.f32.mrf.mxu1 }
0x1973   :  { %v5254_v22 = vpop.f32.mrf.mxu1 }
0x1979   :  { %v2606_v7 = vpop.f32.mrf.mxu1 }
0x197a   :  { %v2607_v8 = vadd.f32 %v2606_v7, %v2532_v6 }
0x197b   :  { %v5265_v23 = vpop.f32.mrf.mxu1 }
0x197c   :  { %v2610_v33 = vadd.f32 %v6481_v31, %v2607_v8 }
0x197e   :  { %5457 = vtanh.f32 %v2610_v33 }
0x198b   :  { %v5458_v35 = vpop.eup %5457 }
0x198c   :  { %4916 = vmatmul.mubr.msk.f32.vlgmr.msra.gmra.mxu0 %vm67_vm1, %v5458_v35  ;;  %v2874_v38 = vsel %vm67_vm1, %v5458_v35, %v2872_v36 }
0x198d   :  { %5283 = vmatmul.mubr.msk.f32.vlgmr.msra.gmra.mxu1 %vm192_vm7, %v2874_v38  ;;  %5286 = vmatpush3.msra.mxu0 %v6490_v39 }
0x198e   :  { %5287 = vmatprep.subr.mxu0 %v7526_v0  ;;  %5293 = vmatprep.mubr.msk.f32.mxu0 %vm5660_vm0, %v7526_v0 }
0x198f   :  { %5288 = vmatpush3.msra.mxu0 %v6499_v41  ;;  %3301 = vmatpush1.msra.mxu1 %v6505_v12 }
0x1990   :  { %5289 = vmatprep.subr.mxu0 %v7526_v0  ;;  %3302 = vmatprep.subr.mxu1 %v6512_v13 }
0x1991   :  { %5290 = vmatpush3.msra.mxu0 %v6518_v57  ;;  %3303 = vmatpush1.msra.mxu1 %v6524_v58 }
0x1992   :  { %5291 = vmatprep.subr.mxu0 %v7526_v0  ;;  %3304 = vmatprep.subr.mxu1 %v6531_v45 }
0x1993   :  { %5292 = vmatpush3.msra.mxu0 %v6537_v53  ;;  %3305 = vmatpush1.msra.mxu1 %v6543_v59 }
0x1994   :  { %5296 = vmatprep.subr.mxu0 %v7526_v0  ;;  %3306 = vmatprep.subr.mxu1 %v6550_v54 }
0x1995   :  { %3307 = vmatpush1.msra.mxu1 %v6556_v56  ;;  %3340 = vmatprep.mubr.f32.mxu1 %v7526_v0 }
0x1996   :  { %5326 = vmatprep.subr.mxu1 %v7526_v0 }
0x1a4d   :  { %v2946_v63 = vpop.f32.mrf.mxu1 }
0x1a4e   :  { %v2950_v9 = vadd.f32 %v4920_v62, %v2946_v63 }
0x1a4f   :  { %v5284_v10 = vpop.f32.mrf.mxu1 }
0x1a50   :  { %5459 = vtanh.f32 %v2950_v9  ;;  %v4922_v14 = vmul.f32 -1.442695, %v2950_v9 }
0x1a52   :  { %5461 = vpow2.f32 %v4922_v14 }
0x1a5d   :  { %v5460_v11 = vpop.eup %5459 }
0x1a5e   :  { %2960 = vrot.lane.b32.xlu0 %v5460_v11, %s5661_s30 }
0x1a5f   :  { %v5462_v18 = vpop.eup %5461 }
0x1a60   :  { %v2954_v4 = vadd.f32 1.0, %v5462_v18 }
0x1a62   :  { %5463 = vrcp.f32 %v2954_v4 }
0x1a6f   :  { %v5464_v6 = vpop.eup %5463 }
0x1a70   :  { %v2958_v8 = vmul.f32 %v5464_v6, %v6368_v17 }
0x1ad0   :  { %v2961_v22 = vpop.permute.xlu0 %2960 }
0x1ad1   :  { %v2963_v7 = vmul.f32 %v5464_v6, %v2961_v22 }
0x1ad3   :  { %2965 = vrot.lane.b32.xlu1 %v2963_v7, %s5662_s15 }
0x1b45   :  { %v2966_v23 = vpop.permute.xlu1 %2965 }
0x1b46   :  { %v6567_v33 = vadd.f32 %v2966_v23, %v2958_v8 }
0x1b48   :  { %5465 = vtanh.f32 %v6567_v33 }
0x1b55   :  { %v5466_v35 = vpop.eup %5465 }
0x1b56   :  { %2971 = vrot.lane.b32.xlu0 %v5466_v35, %s5661_s30 }
0x1bc8   :  { %v2972_v36 = vpop.permute.xlu0 %2971 }
0x1bc9   :  { %v6571_v38 = vmul.f32 %v5464_v6, %v2972_v36 }
0x1bcb   :  { %v2982_v62 = vrot.slane %v6571_v38, %v5864_v46 }
0x1bcd   :  { %v2983_v63 = vcombine.high %v2982_v62, %v2982_v62  ;;  %v2990_v9 = vrot.slane %v2982_v62, %v5864_v46 }
0x1bcf   :  { %v3001_v10 = vrot.slane %v2990_v9, %v5871_v50  ;;  %v2997_v17 = vrot.slane %v2983_v63, %v5864_v46 }
0x1bd1   :  { %v3009_v11 = vmul.f32 %v3001_v10, %v5873_v51  ;;  %v3008_v14 = vmul.f32 %v3001_v10, %v5875_v52  ;;  %v3005_v18 = vrot.slane %v2997_v17, %v5871_v50 }
0x1bd3   :  { %3018 = vrot.lane.b32.xlu0 %v3009_v11, %s5662_s15  ;;  %3016 = vrot.lane.b32.xlu1 %v3008_v14, %s5662_s15  ;;  %v3011_v4 = vmul.f32 %v3005_v18, %v5883_v60  ;;  %v3010_v6 = vmul.f32 %v3005_v18, %v5885_v61 }
0x1bd7   :  { %3022 = vrot.lane.b32.xlu0 %v3011_v4, %s5662_s15  ;;  %3020 = vrot.lane.b32.xlu1 %v3010_v6, %s5662_s15 }
0x1c45   :  { %v3019_v22 = vpop.permute.xlu0 %3018  ;;  %v3017_v7 = vpop.permute.xlu1 %3016 }
0x1c46   :  { %v3031_v8 = vsel %vm67_vm1, %v3019_v22, 0.0  ;;  %v3028_v23 = vsel %vm67_vm1, %v3017_v7, 0.0 }
0x1c47   :  { %3032 = vadd.xlane.f32.xlu0 %v3031_v8  ;;  %3029 = vadd.xlane.f32.xlu1 %v3028_v23 }
0x1c49   :  { %v3023_v35 = vpop.permute.xlu0 %3022  ;;  %v3021_v36 = vpop.permute.xlu1 %3020 }
0x1c4a   :  { %v3037_v62 = vsel %vm67_vm1, %v3023_v35, 0.0  ;;  %v3034_v63 = vsel %vm67_vm1, %v3021_v36, 0.0 }
0x1c4b   :  { %3038 = vadd.xlane.f32.xlu1 %v3037_v62  ;;  %3035 = vadd.xlane.f32.xlu0 %v3034_v63 }
0x1cd0   :  { %v3033_v9 = vpop.xlane.xlu0 %3032  ;;  %v3030_v10 = vpop.xlane.xlu1 %3029 }
0x1cd1   :  { %v3051_v17 = vrot.slane %v3033_v9, %v5898_v19  ;;  %v3047_v11 = vrot.slane %v3030_v10, %v5901_v20 }
0x1cd3   :  { %v3052_v22 = vsel %vm388_vm2, %v3051_v17, %v3047_v11 }
0x1cd4   :  { %v3036_v14 = vpop.xlane.xlu0 %3035  ;;  %v3039_v18 = vpop.xlane.xlu1 %3038 }
0x1cd5   :  { %v3056_v4 = vrot.slane %v3036_v14, %v5901_v20  ;;  %v3060_v6 = vrot.slane %v3039_v18, %v5898_v19 }
0x1cd7   :  { %v3061_v7 = vsel %vm388_vm2, %v3060_v6, %v3056_v4 }
0x1cd8   :  { %v3062_v8 = vsel %vm399_vm3, %v3061_v7, %v3052_v22 }
0x1cd9   :  { %v3064_v23 = vsel %vm372_vm4, %v3062_v8, -1e+30 }
0x1cda   :  { %v3065_v35 = vsel %vm403_vm5, %v3064_v23, -inf }
0x1cdb   :  { %3066 = vmax.xlane.f32.xlu0 %v3065_v35 }
0x1d64   :  { %v3067_v36 = vpop.xlane.xlu0 %3066 }
0x1d65   :  { %v3068_v62 = vsub.f32 %v3064_v23, %v3067_v36 }
0x1d67   :  { %v3069_v63 = vmul.f32 1.442695, %v3068_v62 }
0x1d69   :  { %5467 = vpow2.f32 %v3069_v63 }
0x1d76   :  { %v5468_v9 = vpop.eup %5467 }
0x1d77   :  { %v3071_v10 = vsel %vm403_vm5, %v5468_v9, 0.0 }
0x1d78   :  { %3072 = vadd.xlane.f32.xlu1 %v3071_v10 }
0x1e01   :  { %v3073_v14 = vpop.xlane.xlu1 %3072 }
0x1e02   :  { %5469 = vrcp.f32 %v3073_v14 }
0x1e0f   :  { %v5470_v17 = vpop.eup %5469 }
0x1e10   :  { %v3075_v11 = vmul.f32 %v5470_v17, %v5468_v9 }
0x1e12   :  { %v3079_v18 = vrot.slane %v3075_v11, %v5871_v50  ;;  %v3090_v4 = vrot.slane %v3075_v11, %v5922_v55 }
0x1e14   :  { %3085 = vbcast.lane.b32.xlu1 %v3079_v18, 264  ;;  %3081 = vbcast.lane.b32.xlu0 %v3079_v18, 256 }
0x1e18   :  { %3092 = vbcast.lane.b32.xlu1 %v3090_v4, 256  ;;  %3096 = vbcast.lane.b32.xlu0 %v3090_v4, 264 }
0x1e1c   :  { %3197 = vrot.lane.b32.xlu0 %v6571_v38, %s5662_s15 }
0x1e86   :  { %v3086_v6 = vpop.permute.xlu1 %3085  ;;  %v3082_v22 = vpop.permute.xlu0 %3081 }
0x1e87   :  { %v3099_v7 = vmul.f32 %v3086_v6, %v5841_v30  ;;  %v3098_v8 = vmul.f32 %v3082_v22, %v5843_v32 }
0x1e89   :  { %v3103_v23 = vsel %vm441_vm6, %v3099_v7, 0.0  ;;  %v3102_v35 = vsel %vm441_vm6, %v3098_v8, 0.0 }
0x1e8a   :  { %v3104_v36 = vadd.f32 %v3103_v23, %v3102_v35  ;;  %v3093_v62 = vpop.permute.xlu1 %3092  ;;  %v3097_v63 = vpop.permute.xlu0 %3096 }
0x1e8b   :  { %v3100_v9 = vmul.f32 %v3093_v62, %v5857_v40  ;;  %v3101_v10 = vmul.f32 %v3097_v63, %v5847_v34 }
0x1e8c   :  { %v3105_v14 = vrot.slane %v3104_v36, 4 }
0x1e8d   :  { %v3111_v17 = vsel %vm441_vm6, %v3100_v9, 0.0  ;;  %v3112_v11 = vsel %vm441_vm6, %v3101_v10, 0.0 }
0x1e8e   :  { %v3106_v18 = vadd.f32 %v3105_v14, %v3104_v36  ;;  %v3113_v4 = vadd.f32 %v3112_v11, %v3111_v17  ;;  %v7532_v36 = vmov 0.0  }
0x1e90   :  { %v3107_v6 = vrot.slane %v3106_v18, 2  ;;  %v3114_v22 = vrot.slane %v3113_v4, 4 }
0x1e92   :  { %v3108_v0 = vadd.f32 %v3107_v6, %v3106_v18  ;;  %v3115_v7 = vadd.f32 %v3114_v22, %v3113_v4 }
0x1e94   :  { %v3116_v37 = vrot.slane %v3115_v7, 2  ;;  %v3109_v23 = vrot.slane %v3108_v0, 1 }
0x1e96   :  { %v3117_v8 = vadd.f32 %v3116_v37, %v3115_v7  ;;  %v3110_v43 = vadd.f32 %v3109_v23, %v3108_v0  ;;  %v3198_v0 = vpop.permute.xlu0 %3197 }
0x1e98   :  { %v3118_v35 = vrot.slane %v3117_v8, 1 }
0x1e9a   :  { %v3119_v29 = vadd.f32 %v3118_v35, %v3117_v8 }
0x1e9c   :  { %v3122_v62 = vsel %vm399_vm3, %v3119_v29, %v3110_v43 }
0x1e9d   :  { %3123 = vrot.lane.b32.xlu1 %v3122_v62, %s5663_s18 }
0x1ea1   :  { %3532 = vrot.lane.b32.xlu1 %v6571_v38, %s5661_s30  ;;  %v4929_v38 = vld [vmem:[%s7514_s0 + $0xa] sm:$0x3] }
0x1f0f   :  { %v3124_v63 = vpop.permute.xlu1 %3123 }
0x1f10   :  { %5294 = vmatmul.mubr.msk.f32.vlgmr.msra.gmra.mxu0 %vm67_vm1, %v3124_v63 }
0x1f11   :  { %5297 = vmatpush3.msra.mxu0 %v6423_v21  ;;  %5304 = vmatprep.mubr.msk.f32.mxu0 %vm5660_vm0, %v7532_v36 }
0x1f12   :  { %5298 = vmatprep.subr.mxu0 %v7532_v36 }
0x1f13   :  { %5299 = vmatpush3.msra.mxu0 %v6432_v49 }
0x1f14   :  { %5300 = vmatprep.subr.mxu0 %v7532_v36 }
0x1f15   :  { %5301 = vmatpush3.msra.mxu0 %v6439_v3 }
0x1f16   :  { %5302 = vmatprep.subr.mxu0 %v7532_v36 }
0x1f17   :  { %5303 = vmatpush3.msra.mxu0 %v6446_v5 }
0x1f18   :  { %5305 = vmatmul.mubr.msk.f32.vlgmr.msra.gmra.mxu0 %vm67_vm1, %v3198_v0  ;;  %5307 = vmatprep.subr.mxu0 %v7532_v36 }
0x1f19   :  { %5308 = vmatpush3.msra.mxu0 %v6280_v42  ;;  %5323 = vmatprep.mubr.msk.f32.mxu0 %vm5660_vm0, %v7532_v36  ;;  %v6648_v42 = vpop.f32.mrf.mxu0 }
0x1f1a   :  { %5309 = vmatprep.subr.mxu0 %v7532_v36 }
0x1f1b   :  { %5310 = vmatpush3.msra.mxu0 %v6289_v44  ;;  %v6650_v44 = vpop.f32.mrf.mxu0 }
0x1f1c   :  { %5311 = vmatprep.subr.mxu0 %v7532_v36 }
0x1f1d   :  { %5312 = vmatpush3.msra.mxu0 %v6296_v48 }
0x1f1e   :  { %5313 = vmatprep.subr.mxu0 %v7532_v36 }
0x1f1f   :  { %5314 = vmatpush3.msra.mxu0 %v6303_v47 }
0x1f20   :  { %5315 = vmatprep.subr.mxu0 %v7532_v36 }
0x1f21   :  { %5316 = vmatpush3.msra.mxu0 %v6310_v16 }
0x1f22   :  { %5317 = vmatprep.subr.mxu0 %v7532_v36 }
0x1f23   :  { %5318 = vmatpush3.msra.mxu0 %v6317_v24 }
0x1f24   :  { %5319 = vmatprep.subr.mxu0 %v7532_v36 }
0x1f25   :  { %5320 = vmatpush3.msra.mxu0 %v6324_v26  ;;  %v3533_v26 = vpop.permute.xlu1 %3532 }
0x1f26   :  { %5321 = vmatprep.subr.mxu0 %v7532_v36 }
0x1f27   :  { %5322 = vmatpush3.msra.mxu0 %v6331_v27 }
0x1f28   :  { %3961 = vmatprep.subr.mxu0 %v6471_v15 }
0x1fd0   :  { %v3193_v48 = vpop.f32.mrf.mxu0 }
0x1fd2   :  { %v5295_v47 = vpop.f32.mrf.mxu0 }
0x1fd8   :  { %v3267_v16 = vpop.f32.mrf.mxu0 }
0x1fd9   :  { %v3268_v29 = vadd.f32 %v3267_v16, %v3193_v48 }
0x1fda   :  { %v5306_v43 = vpop.f32.mrf.mxu0 }
0x1fdb   :  { %v3271_v24 = vadd.f32 %v6481_v31, %v3268_v29 }
0x1fdd   :  { %5471 = vtanh.f32 %v3271_v24 }
0x1fea   :  { %v5472_v37 = vpop.eup %5471 }
0x1feb   :  { %4925 = vmatmul.mubr.msk.f32.vlgmr.msra.gmra.mxu1 %vm67_vm1, %v5472_v37  ;;  %v3535_v27 = vsel %vm67_vm1, %v5472_v37, %v3533_v26 }
0x1fec   :  { %5324 = vmatmul.mubr.msk.f32.vlgmr.msra.gmra.mxu0 %vm192_vm7, %v3535_v27  ;;  %5327 = vmatpush3.msra.mxu1 %v6490_v39 }
0x1fed   :  { %5328 = vmatprep.subr.mxu1 %v7532_v36  ;;  %5334 = vmatprep.mubr.msk.f32.mxu1 %vm5660_vm0, %v7532_v36 }
0x1fee   :  { %5329 = vmatpush3.msra.mxu1 %v6499_v41  ;;  %3962 = vmatpush1.msra.mxu0 %v6505_v12 }
0x1fef   :  { %5330 = vmatprep.subr.mxu1 %v7532_v36  ;;  %3963 = vmatprep.subr.mxu0 %v6512_v13 }
0x1ff0   :  { %5331 = vmatpush3.msra.mxu1 %v6518_v57  ;;  %3964 = vmatpush1.msra.mxu0 %v6524_v58 }
0x1ff1   :  { %5332 = vmatprep.subr.mxu1 %v7532_v36  ;;  %3965 = vmatprep.subr.mxu0 %v6531_v45 }
0x1ff2   :  { %5333 = vmatpush3.msra.mxu1 %v6537_v53  ;;  %3966 = vmatpush1.msra.mxu0 %v6543_v59 }
0x1ff3   :  { %5337 = vmatprep.subr.mxu1 %v7532_v36  ;;  %3967 = vmatprep.subr.mxu0 %v6550_v54 }
0x1ff4   :  { %3968 = vmatpush1.msra.mxu0 %v6556_v56  ;;  %4001 = vmatprep.mubr.f32.mxu0 %v7532_v36 }
0x1ff5   :  { %5367 = vmatprep.subr.mxu0 %v7532_v36 }
0x20ac   :  { %v3607_v9 = vpop.f32.mrf.mxu0 }
0x20ad   :  { %v3611_v10 = vadd.f32 %v4929_v38, %v3607_v9 }
0x20ae   :  { %v5325_v14 = vpop.f32.mrf.mxu0 }
0x20af   :  { %5473 = vtanh.f32 %v3611_v10  ;;  %v4931_v11 = vmul.f32 -1.442695, %v3611_v10 }
0x20b1   :  { %5475 = vpow2.f32 %v4931_v11 }
0x20bc   :  { %v5474_v17 = vpop.eup %5473 }
0x20bd   :  { %3621 = vrot.lane.b32.xlu0 %v5474_v17, %s5661_s30 }
0x20be   :  { %v5476_v18 = vpop.eup %5475 }
0x20bf   :  { %v3615_v4 = vadd.f32 1.0, %v5476_v18 }
0x20c1   :  { %5477 = vrcp.f32 %v3615_v4 }
0x20ce   :  { %v5478_v6 = vpop.eup %5477 }
0x20cf   :  { %v3619_v8 = vmul.f32 %v5478_v6, %v6567_v33 }
0x212f   :  { %v3622_v22 = vpop.permute.xlu0 %3621 }
0x2130   :  { %v3624_v7 = vmul.f32 %v5478_v6, %v3622_v22 }
0x2132   :  { %3626 = vrot.lane.b32.xlu1 %v3624_v7, %s5662_s15 }
0x21a4   :  { %v3627_v23 = vpop.permute.xlu1 %3626 }
0x21a5   :  { %v6681_v35 = vadd.f32 %v3627_v23, %v3619_v8 }
0x21a7   :  { %5479 = vtanh.f32 %v6681_v35 }
0x21b4   :  { %v5480_v62 = vpop.eup %5479 }
0x21b5   :  { %3632 = vrot.lane.b32.xlu0 %v5480_v62, %s5661_s30 }
0x2227   :  { %v3633_v63 = vpop.permute.xlu0 %3632 }
0x2228   :  { %v6685_v0 = vmul.f32 %v5478_v6, %v3633_v63 }
0x222a   :  { %v3643_v48 = vrot.slane %v6685_v0, %v5864_v46 }
0x222c   :  { %v3644_v47 = vcombine.high %v3643_v48, %v3643_v48  ;;  %v3651_v16 = vrot.slane %v3643_v48, %v5864_v46 }
0x222e   :  { %v3658_v29 = vrot.slane %v3644_v47, %v5864_v46  ;;  %v3662_v33 = vrot.slane %v3651_v16, %v5871_v50 }
0x2230   :  { %v3670_v43 = vmul.f32 %v3662_v33, %v5873_v51  ;;  %v3669_v24 = vmul.f32 %v3662_v33, %v5875_v52  ;;  %v3666_v37 = vrot.slane %v3658_v29, %v5871_v50 }
0x2232   :  { %3679 = vrot.lane.b32.xlu0 %v3670_v43, %s5662_s15  ;;  %3677 = vrot.lane.b32.xlu1 %v3669_v24, %s5662_s15  ;;  %v3672_v26 = vmul.f32 %v3666_v37, %v5883_v60  ;;  %v3671_v27 = vmul.f32 %v3666_v37, %v5885_v61 }
0x2236   :  { %3683 = vrot.lane.b32.xlu0 %v3672_v26, %s5662_s15  ;;  %3681 = vrot.lane.b32.xlu1 %v3671_v27, %s5662_s15 }
0x22a4   :  { %v3680_v38 = vpop.permute.xlu0 %3679  ;;  %v3678_v9 = vpop.permute.xlu1 %3677 }
0x22a5   :  { %v3692_v10 = vsel %vm67_vm1, %v3680_v38, 0.0  ;;  %v3689_v14 = vsel %vm67_vm1, %v3678_v9, 0.0 }
0x22a6   :  { %3693 = vadd.xlane.f32.xlu0 %v3692_v10  ;;  %3690 = vadd.xlane.f32.xlu1 %v3689_v14 }
0x22a8   :  { %v3684_v17 = vpop.permute.xlu0 %3683  ;;  %v3682_v11 = vpop.permute.xlu1 %3681 }
0x22a9   :  { %v3698_v18 = vsel %vm67_vm1, %v3684_v17, 0.0  ;;  %v3695_v4 = vsel %vm67_vm1, %v3682_v11, 0.0 }
0x22aa   :  { %3699 = vadd.xlane.f32.xlu1 %v3698_v18  ;;  %3696 = vadd.xlane.f32.xlu0 %v3695_v4 }
0x232f   :  { %v3694_v6 = vpop.xlane.xlu0 %3693  ;;  %v3691_v22 = vpop.xlane.xlu1 %3690 }
0x2330   :  { %v3712_v7 = vrot.slane %v3694_v6, %v5898_v19  ;;  %v3708_v8 = vrot.slane %v3691_v22, %v5901_v20 }
0x2332   :  { %v3713_v47 = vsel %vm388_vm2, %v3712_v7, %v3708_v8 }
0x2333   :  { %v3697_v23 = vpop.xlane.xlu0 %3696  ;;  %v3700_v62 = vpop.xlane.xlu1 %3699 }
0x2334   :  { %v3717_v63 = vrot.slane %v3697_v23, %v5901_v20  ;;  %v3721_v48 = vrot.slane %v3700_v62, %v5898_v19 }
0x2336   :  { %v3722_v16 = vsel %vm388_vm2, %v3721_v48, %v3717_v63 }
0x2337   :  { %v3723_v29 = vsel %vm399_vm3, %v3722_v16, %v3713_v47 }
0x2338   :  { %v3725_v33 = vsel %vm372_vm4, %v3723_v29, -1e+30 }
0x2339   :  { %v3726_v43 = vsel %vm403_vm5, %v3725_v33, -inf }
0x233a   :  { %3727 = vmax.xlane.f32.xlu0 %v3726_v43 }
0x23c3   :  { %v3728_v24 = vpop.xlane.xlu0 %3727 }
0x23c4   :  { %v3729_v37 = vsub.f32 %v3725_v33, %v3728_v24 }
0x23c6   :  { %v3730_v26 = vmul.f32 1.442695, %v3729_v37 }
0x23c8   :  { %5481 = vpow2.f32 %v3730_v26 }
0x23d5   :  { %v5482_v27 = vpop.eup %5481 }
0x23d6   :  { %v3732_v38 = vsel %vm403_vm5, %v5482_v27, 0.0 }
0x23d7   :  { %3733 = vadd.xlane.f32.xlu1 %v3732_v38 }
0x2460   :  { %v3734_v9 = vpop.xlane.xlu1 %3733 }
0x2461   :  { %5483 = vrcp.f32 %v3734_v9 }
0x246e   :  { %v5484_v10 = vpop.eup %5483 }
0x246f   :  { %v3736_v14 = vmul.f32 %v5484_v10, %v5482_v27 }
0x2471   :  { %v3740_v17 = vrot.slane %v3736_v14, %v5871_v50  ;;  %v3751_v11 = vrot.slane %v3736_v14, %v5922_v55 }
0x2473   :  { %3746 = vbcast.lane.b32.xlu1 %v3740_v17, 264  ;;  %3742 = vbcast.lane.b32.xlu0 %v3740_v17, 256 }
0x2477   :  { %3753 = vbcast.lane.b32.xlu1 %v3751_v11, 256  ;;  %3757 = vbcast.lane.b32.xlu0 %v3751_v11, 264 }
0x247b   :  { %3858 = vrot.lane.b32.xlu0 %v6685_v0, %s5662_s15 }
0x24e5   :  { %v3747_v18 = vpop.permute.xlu1 %3746  ;;  %v3743_v4 = vpop.permute.xlu0 %3742 }
0x24e6   :  { %v3760_v6 = vmul.f32 %v3747_v18, %v5841_v30  ;;  %v3759_v22 = vmul.f32 %v3743_v4, %v5843_v32 }
0x24e8   :  { %v3764_v7 = vsel %vm441_vm6, %v3760_v6, 0.0  ;;  %v3763_v8 = vsel %vm441_vm6, %v3759_v22, 0.0 }
0x24e9   :  { %v3765_v23 = vadd.f32 %v3764_v7, %v3763_v8  ;;  %v3754_v62 = vpop.permute.xlu1 %3753  ;;  %v3758_v63 = vpop.permute.xlu0 %3757  ;;  %v5643_v7 = vld [vmem:[%s7511_s8 + $0x10] sm:$0xff]  ;;  %v5644_v8 = vld [vmem:[%s7511_s8 + $0x8] sm:$0xff] }
0x24ea   :  { %v3761_v48 = vmul.f32 %v3754_v62, %v5857_v40  ;;  %v3762_v47 = vmul.f32 %v3758_v63, %v5847_v34  ;;  %v6778_v62 = vpop.f32.mrf.mxu1 }
0x24eb   :  { %v3766_v16 = vrot.slane %v3765_v23, 4 }
0x24ec   :  { %v3772_v29 = vsel %vm441_vm6, %v3761_v48, 0.0  ;;  %v3773_v33 = vsel %vm441_vm6, %v3762_v47, 0.0  ;;  %v6780_v63 = vpop.f32.mrf.mxu1 }
0x24ed   :  { %v3767_v43 = vadd.f32 %v3766_v16, %v3765_v23  ;;  %v3774_v24 = vadd.f32 %v3773_v33, %v3772_v29  ;;  %v3859_v22 = vpop.permute.xlu0 %3858  ;;  %v5645_v23 = vld [vmem:[%s7511_s8] sm:$0xff] }
0x24ef   :  { %v3768_v37 = vrot.slane %v3767_v43, 2  ;;  %v3775_v26 = vrot.slane %v3774_v24, 4 }
0x24f1   :  { %v3769_v27 = vadd.f32 %v3768_v37, %v3767_v43  ;;  %v3776_v38 = vadd.f32 %v3775_v26, %v3774_v24 }
0x24f3   :  { %v3777_v9 = vrot.slane %v3776_v38, 2  ;;  %v3770_v14 = vrot.slane %v3769_v27, 1 }
0x24f5   :  { %v3778_v10 = vadd.f32 %v3777_v9, %v3776_v38  ;;  %v3771_v11 = vadd.f32 %v3770_v14, %v3769_v27 }
0x24f7   :  { %v3779_v17 = vrot.slane %v3778_v10, 1 }
0x24f9   :  { %v3780_v18 = vadd.f32 %v3779_v17, %v3778_v10 }
0x24fb   :  { %v3783_v4 = vsel %vm399_vm3, %v3780_v18, %v3771_v11 }
0x24fc   :  { %3784 = vrot.lane.b32.xlu1 %v3783_v4, %s5663_s18 }
0x2500   :  { %4193 = vrot.lane.b32.xlu1 %v6685_v0, %s5661_s30  ;;  %v5642_v0 = vld [vmem:[%s7511_s8 + $0x18] sm:$0xff] }
0x256e   :  { %v3785_v6 = vpop.permute.xlu1 %3784 }
0x256f   :  { %5335 = vmatmul.mubr.msk.f32.vlgmr.msra.gmra.mxu1 %vm67_vm1, %v3785_v6 }
0x2570   :  { %5338 = vmatpush3.msra.mxu1 %v6423_v21  ;;  %5345 = vmatprep.mubr.msk.f32.mxu1 %vm5660_vm0, %v7532_v36  ;;  %v5638_v21 = vld [vmem:[%s7511_s8 + $0x38] sm:$0xff] }
0x2571   :  { %5339 = vmatprep.subr.mxu1 %v7532_v36 }
0x2572   :  { %5340 = vmatpush3.msra.mxu1 %v6432_v49  ;;  %v5639_v49 = vld [vmem:[%s7511_s8 + $0x30] sm:$0xff]  ;;  %v4194_v37 = vpop.permute.xlu1 %4193 }
0x2573   :  { %5341 = vmatprep.subr.mxu1 %v7532_v36 }
0x2574   :  { %5342 = vmatpush3.msra.mxu1 %v6439_v3  ;;  %v5640_v3 = vld [vmem:[%s7511_s8 + $0x28] sm:$0xff] }
0x2575   :  { %5343 = vmatprep.subr.mxu1 %v7532_v36 }
0x2576   :  { %5344 = vmatpush3.msra.mxu1 %v6446_v5  ;;  %v5641_v5 = vld [vmem:[%s7511_s8 + $0x20] sm:$0xff] }
0x2577   :  { %5346 = vmatmul.mubr.msk.f32.vlgmr.msra.gmra.mxu1 %vm67_vm1, %v3859_v22  ;;  %5348 = vmatprep.subr.mxu1 %v7532_v36 }
0x2578   :  { %5349 = vmatpush3.msra.mxu1 %v5638_v21  ;;  %5364 = vmatprep.mubr.msk.f32.mxu1 %vm5660_vm0, %v7532_v36 }
0x2579   :  { %5350 = vmatprep.subr.mxu1 %v7532_v36 }
0x257a   :  { %5351 = vmatpush3.msra.mxu1 %v5639_v49 }
0x257b   :  { %5352 = vmatprep.subr.mxu1 %v7532_v36 }
0x257c   :  { %5353 = vmatpush3.msra.mxu1 %v5640_v3 }
0x257d   :  { %5354 = vmatprep.subr.mxu1 %v7532_v36 }
0x257e   :  { %5355 = vmatpush3.msra.mxu1 %v5641_v5 }
0x257f   :  { %5356 = vmatprep.subr.mxu1 %v7532_v36 }
0x2580   :  { %5357 = vmatpush3.msra.mxu1 %v5642_v0 }
0x2581   :  { %5358 = vmatprep.subr.mxu1 %v7532_v36 }
0x2582   :  { %5359 = vmatpush3.msra.mxu1 %v5643_v7 }
0x2583   :  { %5360 = vmatprep.subr.mxu1 %v7532_v36 }
0x2584   :  { %5361 = vmatpush3.msra.mxu1 %v5644_v8 }
0x2585   :  { %5362 = vmatprep.subr.mxu1 %v7532_v36 }
0x2586   :  { %5363 = vmatpush3.msra.mxu1 %v5645_v23 }
0x2587   :  { %4622 = vmatprep.subr.mxu1 %v6471_v15  ;;  %v4938_v15 = vld [vmem:[%s7514_s0 + $0xc] sm:$0x3] }
0x262f   :  { %v3854_v48 = vpop.f32.mrf.mxu1 }
0x2631   :  { %v5336_v47 = vpop.f32.mrf.mxu1 }
0x2637   :  { %v3928_v16 = vpop.f32.mrf.mxu1 }
0x2638   :  { %v3929_v29 = vadd.f32 %v3928_v16, %v3854_v48 }
0x2639   :  { %v5347_v33 = vpop.f32.mrf.mxu1 }
0x263a   :  { %v3932_v43 = vadd.f32 %v6481_v31, %v3929_v29 }
0x263c   :  { %5485 = vtanh.f32 %v3932_v43 }
0x2649   :  { %v5486_v24 = vpop.eup %5485 }
0x264a   :  { %4934 = vmatmul.mubr.msk.f32.vlgmr.msra.gmra.mxu0 %vm67_vm1, %v5486_v24  ;;  %v4196_v26 = vsel %vm67_vm1, %v5486_v24, %v4194_v37 }
0x264b   :  { %5365 = vmatmul.mubr.msk.f32.vlgmr.msra.gmra.mxu1 %vm192_vm7, %v4196_v26  ;;  %5368 = vmatpush3.msra.mxu0 %v6490_v39 }
0x264c   :  { %5369 = vmatprep.subr.mxu0 %v7532_v36  ;;  %5375 = vmatprep.mubr.msk.f32.mxu0 %vm5660_vm0, %v7532_v36 }
0x264d   :  { %5370 = vmatpush3.msra.mxu0 %v6499_v41  ;;  %4623 = vmatpush1.msra.mxu1 %v6505_v12 }
0x264e   :  { %5371 = vmatprep.subr.mxu0 %v7532_v36  ;;  %4624 = vmatprep.subr.mxu1 %v6512_v13 }
0x264f   :  { %5372 = vmatpush3.msra.mxu0 %v6518_v57  ;;  %4625 = vmatpush1.msra.mxu1 %v6524_v58 }
0x2650   :  { %5373 = vmatprep.subr.mxu0 %v7532_v36  ;;  %4626 = vmatprep.subr.mxu1 %v6531_v45 }
0x2651   :  { %5374 = vmatpush3.msra.mxu0 %v6537_v53  ;;  %4627 = vmatpush1.msra.mxu1 %v6543_v59 }
0x2652   :  { %5378 = vmatprep.subr.mxu0 %v7532_v36  ;;  %4628 = vmatprep.subr.mxu1 %v6550_v54 }
0x2653   :  { %4629 = vmatpush1.msra.mxu1 %v6556_v56  ;;  %4662 = vmatprep.mubr.f32.mxu1 %v7532_v36 }
0x270b   :  { %v4268_v31 = vpop.f32.mrf.mxu1 }
0x270c   :  { %v4272_v39 = vadd.f32 %v4938_v15, %v4268_v31 }
0x270d   :  { %v5366_v41 = vpop.f32.mrf.mxu1 }
0x270e   :  { %5487 = vtanh.f32 %v4272_v39  ;;  %v4940_v13 = vmul.f32 -1.442695, %v4272_v39 }
0x2710   :  { %5489 = vpow2.f32 %v4940_v13 }
0x271b   :  { %v5488_v12 = vpop.eup %5487 }
0x271c   :  { %4282 = vrot.lane.b32.xlu0 %v5488_v12, %s5661_s30 }
0x271d   :  { %v5490_v57 = vpop.eup %5489 }
0x271e   :  { %v4276_v58 = vadd.f32 1.0, %v5490_v57 }
0x2720   :  { %5491 = vrcp.f32 %v4276_v58 }
0x272d   :  { %v5492_v45 = vpop.eup %5491 }
0x272e   :  { %v4280_v54 = vmul.f32 %v5492_v45, %v6681_v35 }
0x278e   :  { %v4283_v53 = vpop.permute.xlu0 %4282 }
0x278f   :  { %v4285_v59 = vmul.f32 %v5492_v45, %v4283_v53 }
0x2791   :  { %4287 = vrot.lane.b32.xlu1 %v4285_v59, %s5662_s15 }
0x2803   :  { %v4288_v56 = vpop.permute.xlu1 %4287 }
0x2804   :  { %v4290_v27 = vadd.f32 %v4288_v56, %v4280_v54 }
0x2806   :  { %5493 = vtanh.f32 %v4290_v27 }
0x2813   :  { %v5494_v38 = vpop.eup %5493 }
0x2814   :  { %4293 = vrot.lane.b32.xlu0 %v5494_v38, %s5661_s30 }
0x2886   :  { %v4294_v9 = vpop.permute.xlu0 %4293 }
0x2887   :  { %v4296_v10 = vmul.f32 %v5492_v45, %v4294_v9 }
0x2889   :  { %v4304_v14 = vrot.slane %v4296_v10, %v5864_v46 }
0x288b   :  { %v4305_v17 = vcombine.high %v4304_v14, %v4304_v14  ;;  %v4312_v11 = vrot.slane %v4304_v14, %v5864_v46 }
0x288d   :  { %v4319_v18 = vrot.slane %v4305_v17, %v5864_v46  ;;  %v4323_v4 = vrot.slane %v4312_v11, %v5871_v50 }
0x288f   :  { %v4331_v6 = vmul.f32 %v4323_v4, %v5873_v51  ;;  %v4330_v35 = vmul.f32 %v4323_v4, %v5875_v52  ;;  %v4327_v22 = vrot.slane %v4319_v18, %v5871_v50 }
0x2891   :  { %4340 = vrot.lane.b32.xlu0 %v4331_v6, %s5662_s15  ;;  %4338 = vrot.lane.b32.xlu1 %v4330_v35, %s5662_s15  ;;  %v4333_v21 = vmul.f32 %v4327_v22, %v5883_v60  ;;  %v4332_v49 = vmul.f32 %v4327_v22, %v5885_v61 }
0x2895   :  { %4344 = vrot.lane.b32.xlu0 %v4333_v21, %s5662_s15  ;;  %4342 = vrot.lane.b32.xlu1 %v4332_v49, %s5662_s15 }
0x2903   :  { %v4341_v3 = vpop.permute.xlu0 %4340  ;;  %v4339_v5 = vpop.permute.xlu1 %4338 }
0x2904   :  { %v4353_v51 = vsel %vm67_vm1, %v4341_v3, 0.0  ;;  %v4350_v52 = vsel %vm67_vm1, %v4339_v5, 0.0 }
0x2905   :  { %4354 = vadd.xlane.f32.xlu0 %v4353_v51  ;;  %4351 = vadd.xlane.f32.xlu1 %v4350_v52 }
0x2907   :  { %v4345_v0 = vpop.permute.xlu0 %4344  ;;  %v4343_v7 = vpop.permute.xlu1 %4342 }
0x2908   :  { %v4359_v8 = vsel %vm67_vm1, %v4345_v0, 0.0  ;;  %v4356_v60 = vsel %vm67_vm1, %v4343_v7, 0.0 }
0x2909   :  { %4360 = vadd.xlane.f32.xlu1 %v4359_v8  ;;  %4357 = vadd.xlane.f32.xlu0 %v4356_v60 }
0x298e   :  { %v4355_v61 = vpop.xlane.xlu0 %4354  ;;  %v4352_v23 = vpop.xlane.xlu1 %4351 }
0x298f   :  { %v4373_v48 = vrot.slane %v4355_v61, %v5898_v19  ;;  %v4369_v47 = vrot.slane %v4352_v23, %v5901_v20 }
0x2991   :  { %v4374_v24 = vsel %vm388_vm2, %v4373_v48, %v4369_v47 }
0x2992   :  { %v4358_v16 = vpop.xlane.xlu0 %4357  ;;  %v4361_v29 = vpop.xlane.xlu1 %4360 }
0x2993   :  { %v4378_v33 = vrot.slane %v4358_v16, %v5901_v20  ;;  %v4382_v43 = vrot.slane %v4361_v29, %v5898_v19  ;;  %v6870_v29 = vld [vmem:[%s7522_s1] sm:$0x3] }
0x2994   :  { %vm711_vm8 = vcmp.gt.f32.partialorder %v6870_v29, 0.0 }
0x2995   :  { %v4383_v37 = vsel %vm388_vm2, %v4382_v43, %v4378_v33 }
0x2996   :  { %v4384_v26 = vsel %vm399_vm3, %v4383_v37, %v4374_v24 }
0x2997   :  { %v4386_v15 = vsel %vm372_vm4, %v4384_v26, -1e+30 }
0x2998   :  { %v4387_v31 = vsel %vm403_vm5, %v4386_v15, -inf }
0x2999   :  { %4388 = vmax.xlane.f32.xlu0 %v4387_v31  ;;  %v6884_v31 = vld [vmem:[%s7513_s3 + $0x8] sm:$0xff] }
0x2a22   :  { %v4389_v39 = vpop.xlane.xlu0 %4388 }
0x2a23   :  { %v4390_v41 = vsub.f32 %v4386_v15, %v4389_v39 }
0x2a25   :  { %v4391_v12 = vmul.f32 1.442695, %v4390_v41 }
0x2a27   :  { %5495 = vpow2.f32 %v4391_v12  ;;  %v6892_v12 = vld [vmem:[%s7513_s3 + $0x18] sm:$0xff] }
0x2a34   :  { %v5496_v13 = vpop.eup %5495 }
0x2a35   :  { %v4393_v57 = vsel %vm403_vm5, %v5496_v13, 0.0 }
0x2a36   :  { %4394 = vadd.xlane.f32.xlu1 %v4393_v57 }
0x2abf   :  { %v4395_v58 = vpop.xlane.xlu1 %4394 }
0x2ac0   :  { %5497 = vrcp.f32 %v4395_v58 }
0x2acd   :  { %v5498_v45 = vpop.eup %5497 }
0x2ace   :  { %v4397_v53 = vmul.f32 %v5498_v45, %v5496_v13  ;;  %v5648_v45 = vld [vmem:[%s7518_s9 + $0x18] sm:$0xff] }
0x2ad0   :  { %v4401_v59 = vrot.slane %v4397_v53, %v5871_v50  ;;  %v4412_v54 = vrot.slane %v4397_v53, %v5922_v55  ;;  %v5649_v53 = vld [vmem:[%s7518_s9 + $0x10] sm:$0xff] }
0x2ad2   :  { %4407 = vbcast.lane.b32.xlu1 %v4401_v59, 264  ;;  %4403 = vbcast.lane.b32.xlu0 %v4401_v59, 256  ;;  %v5650_v59 = vld [vmem:[%s7518_s9 + $0x8] sm:$0xff] }
0x2ad6   :  { %4414 = vbcast.lane.b32.xlu1 %v4412_v54, 256  ;;  %4418 = vbcast.lane.b32.xlu0 %v4412_v54, 264 }
0x2ada   :  { %4519 = vrot.lane.b32.xlu0 %v4296_v10, %s5662_s15 }
0x2b44   :  { %v4408_v56 = vpop.permute.xlu1 %4407  ;;  %v4404_v27 = vpop.permute.xlu0 %4403 }
0x2b45   :  { %v4421_v38 = vmul.f32 %v4408_v56, %v5841_v30  ;;  %v4420_v9 = vmul.f32 %v4404_v27, %v5843_v32  ;;  %v5651_v56 = vld [vmem:[%s7518_s9] sm:$0xff] }
0x2b47   :  { %v4425_v14 = vsel %vm441_vm6, %v4421_v38, 0.0  ;;  %v4424_v17 = vsel %vm441_vm6, %v4420_v9, 0.0 }
0x2b48   :  { %v4426_v11 = vadd.f32 %v4425_v14, %v4424_v17  ;;  %v4415_v18 = vpop.permute.xlu1 %4414  ;;  %v4419_v4 = vpop.permute.xlu0 %4418 }
0x2b49   :  { %v4422_v6 = vmul.f32 %v4415_v18, %v5857_v40  ;;  %v4423_v35 = vmul.f32 %v4419_v4, %v5847_v34  ;;  %v190_v34 = vld [vmem:[%s7521_s13] sm:$0x3]  ;;  %v6929_v4 = vld [vmem:[%s7513_s3 + $0x10] sm:$0xff] }
0x2b4a   :  { %v4427_v22 = vrot.slane %v4426_v11, 4  ;;  %v6856_v23 = vrot.slane %v190_v34, %v5871_v50  ;;  %v6865_v16 = vrot.slane %v190_v34, %v5922_v55 }
0x2b4b   :  { %v4433_v10 = vsel %vm441_vm6, %v4422_v6, 0.0  ;;  %v4434_v21 = vsel %vm441_vm6, %v4423_v35, 0.0 }
0x2b4c   :  { %v4428_v49 = vadd.f32 %v4427_v22, %v4426_v11  ;;  %v4435_v30 = vadd.f32 %v4434_v21, %v4433_v10  ;;  %v6860_v48 = vadd.f32 %v6181_v1, %v6856_v23  ;;  %v702_v24 = vadd.f32 %v6183_v2, %v6865_v16  ;;  %v4520_v54 = vpop.permute.xlu0 %4519  ;;  %v6933_v22 = vpop.f32.mrf.mxu0 }
0x2b4e   :  { %v4429_v3 = vrot.slane %v4428_v49, 2  ;;  %v4436_v32 = vrot.slane %v4435_v30, 4  ;;  %v732_v47 = vrot.slane %v6860_v48, %v5864_v46  ;;  %v712_v26 = vsel %vm711_vm8, %v702_v24, -1e+30  ;;  %v6935_v10 = vpop.f32.mrf.mxu0 }
0x2b4f   :  { %v714_v15 = vsel %vm713_vm9, %v712_v26, -inf }
0x2b50   :  { %v4430_v5 = vadd.f32 %v4429_v3, %v4428_v49  ;;  %v4437_v51 = vadd.f32 %v4436_v32, %v4435_v30  ;;  %v733_v33 = vcombine.high %v732_v47, %v732_v47  ;;  %v740_v43 = vrot.slane %v732_v47, %v5864_v46 }
0x2b52   :  { %v4438_v52 = vrot.slane %v4437_v51, 2  ;;  %v4431_v7 = vrot.slane %v4430_v5, 1  ;;  %v747_v1 = vrot.slane %v733_v33, %v5864_v46  ;;  %v751_v37 = vrot.slane %v740_v43, %v5871_v50 }
0x2b54   :  { %v4439_v0 = vadd.f32 %v4438_v52, %v4437_v51  ;;  %v4432_v60 = vadd.f32 %v4431_v7, %v4430_v5  ;;  %v759_v39 = vmul.f32 %v6884_v31, %v751_v37  ;;  %v755_v2 = vrot.slane %v747_v1, %v5871_v50  ;;  %v5654_v5 = vld [vmem:[%s7520_s11] ss:$0 sm:$0xff] }
0x2b56   :  { %v4440_v8 = vrot.slane %v4439_v0, 1  ;;  %v765_v41 = vsel %vm67_vm1, %v759_v39, 0.0  ;;  %v761_v13 = vmul.f32 %v6892_v12, %v755_v2  ;;  %v760_v6 = vmul.f32 %v6929_v4, %v755_v2 }
0x2b58   :  { %v4441_v61 = vadd.f32 %v4440_v8, %v4439_v0  ;;  %v771_v57 = vsel %vm67_vm1, %v761_v13, 0.0  ;;  %v768_v35 = vsel %vm67_vm1, %v760_v6, 0.0 }
0x2b5a   :  { %v4444_v40 = vsel %vm399_vm3, %v4441_v61, %v4432_v60 }
0x2b5b   :  { %4445 = vrot.lane.b32.xlu1 %v4444_v40, %s5663_s18 }
0x2b7f   :  { %715 = vmax.xlane.f32.xlu1 %v714_v15 }
0x2b83   :  { %766 = vadd.xlane.f32.xlu1 %v765_v41 }
0x2b87   :  { %772 = vadd.xlane.f32.xlu1 %v771_v57 }
0x2bcd   :  { %v4446_v58 = vpop.permute.xlu1 %4445 }
0x2bce   :  { %5376 = vmatmul.mubr.msk.f32.vlgmr.msra.gmra.mxu0 %vm67_vm1, %v4446_v58 }
0x2bcf   :  { %5379 = vmatpush3.msra.mxu0 %v5648_v45  ;;  %5386 = vmatprep.mubr.msk.f32.mxu0 %vm5660_vm0, %v7532_v36 }
0x2bd0   :  { %5380 = vmatprep.subr.mxu0 %v7532_v36 }
0x2bd1   :  { %5381 = vmatpush3.msra.mxu0 %v5649_v53 }
0x2bd2   :  { %5382 = vmatprep.subr.mxu0 %v7532_v36 }
0x2bd3   :  { %5383 = vmatpush3.msra.mxu0 %v5650_v59 }
0x2bd4   :  { %5384 = vmatprep.subr.mxu0 %v7532_v36  ;;  %v6922_v36 = vld [vmem:[%s7513_s3] sm:$0xff] }
0x2bd5   :  { %5385 = vmatpush3.msra.mxu0 %v5651_v56  ;;  %v758_v11 = vmul.f32 %v6922_v36, %v751_v37  ;;  %v6964_v56 = vld [vmem:[%s7523_s5] sm:$0xff] }
0x2bd6   :  { %5387 = vmatmul.mubr.msk.f32.vlgmr.msra.gmra.mxu0 %vm67_vm1, %v4520_v54  ;;  %v6959_v54 = vld [vmem:[%s7523_s5 + $0x8] sm:$0xff] }
0x2bd7   :  { %v762_v18 = vsel %vm67_vm1, %v758_v11, 0.0  ;;  %v6971_v11 = vld [vmem:[%s7523_s5 + $0x10] sm:$0xff] }
0x2c08   :  { %v716_v27 = vpop.xlane.xlu1 %715 }
0x2c09   :  { %v717_v38 = vsub.f32 %v712_v26, %v716_v27 }
0x2c0b   :  { %v718_v9 = vmul.f32 1.442695, %v717_v38 }
0x2c0c   :  { %v767_v52 = vpop.xlane.xlu1 %766 }
0x2c0d   :  { %5499 = vpow2.f32 %v718_v9  ;;  %v785_v34 = vrot.slane %v767_v52, %v5898_v19 }
0x2c10   :  { %v773_v60 = vpop.xlane.xlu1 %772 }
0x2c11   :  { %v794_v47 = vrot.slane %v773_v60, %v5898_v19 }
0x2c1a   :  { %v6915_v14 = vpop.eup %5499 }
0x2c1b   :  { %v720_v17 = vsel %vm713_vm9, %v6915_v14, 0.0 }
0x2c1c   :  { %721 = vadd.xlane.f32.xlu0 %v720_v17 }
0x2c20   :  { %763 = vadd.xlane.f32.xlu0 %v762_v18  ;;  %v6976_v18 = vld [vmem:[%s7523_s5 + $0x18] sm:$0xff] }
0x2c24   :  { %769 = vadd.xlane.f32.xlu0 %v768_v35 }
0x2c8e   :  { %v4515_v21 = vpop.f32.mrf.mxu0 }
0x2c90   :  { %v5377_v49 = vpop.f32.mrf.mxu0 }
0x2c96   :  { %v4589_v30 = vpop.f32.mrf.mxu0 }
0x2c97   :  { %v4590_v3 = vadd.f32 %v4589_v30, %v4515_v21 }
0x2c98   :  { %v5388_v32 = vpop.f32.mrf.mxu0 }
0x2c99   :  { %v4593_v51 = vadd.f32 %v5654_v5, %v4590_v3 }
0x2c9b   :  { %5501 = vtanh.f32 %v4593_v51 }
0x2ca5   :  { %v6940_v0 = vpop.xlane.xlu0 %721 }
0x2ca8   :  { %v5502_v7 = vpop.eup %5501 }
0x2ca9   :  { %4943 = vmatmul.mubr.msk.f32.vlgmr.msra.gmra.mxu1 %vm67_vm1, %v5502_v7  ;;  %v764_v8 = vpop.xlane.xlu0 %763  ;;  %v6982_v7 = vadd.f32 %v6335_v28, %v6856_v23  ;;  %v7533_v28 = vld [vmem:[#allocation2_spill] sm:$0xff] }
0x2caa   :  { %v781_v61 = vrot.slane %v764_v8, %v5901_v20 }
0x2cac   :  { %v786_v43 = vsel %vm388_vm2, %v785_v34, %v781_v61 }
0x2cad   :  { %v770_v40 = vpop.xlane.xlu0 %769 }
0x2cae   :  { %v790_v33 = vrot.slane %v770_v40, %v5901_v20  ;;  %v1392_v40 = vrot.slane %v6982_v7, %v5864_v46 }
0x2cb0   :  { %v795_v24 = vsel %vm388_vm2, %v794_v47, %v790_v33 }
0x2cb1   :  { %v796_v1 = vsel %vm399_vm3, %v795_v24, %v786_v43  ;;  %v6989_v43 = vld [vmem:[%s7522_s1 + $0x2] sm:$0x3]  ;;  %v1400_v24 = vrot.slane %v1392_v40, %v5864_v46 }
0x2cb2   :  { %v798_v37 = vsel %vm372_vm4, %v796_v1, -1e+30  ;;  %vm1372_vm10 = vcmp.gt.f32.partialorder %v6989_v43, 0.0 }
0x2cb3   :  { %v799_v26 = vsel %vm403_vm5, %v798_v37, -inf }
0x2cb4   :  { %800 = vmax.xlane.f32.xlu0 %v799_v26  ;;  %v1362_v26 = vadd.f32 %v7533_v28, %v6865_v16 }
0x2d3d   :  { %v801_v15 = vpop.xlane.xlu0 %800 }
0x2d3e   :  { %v802_v39 = vsub.f32 %v798_v37, %v801_v15 }
0x2d40   :  { %v803_v2 = vmul.f32 1.442695, %v802_v39 }
0x2d42   :  { %5503 = vpow2.f32 %v803_v2  ;;  %v1393_v2 = vcombine.high %v1392_v40, %v1392_v40 }
0x2d4f   :  { %v5504_v41 = vpop.eup %5503 }
0x2d50   :  { %v805_v13 = vsel %vm403_vm5, %v5504_v41, 0.0 }
0x2d51   :  { %806 = vadd.xlane.f32.xlu1 %v805_v13  ;;  %v1411_v13 = vrot.slane %v1400_v24, %v5871_v50 }
0x2d53   :  { %v1419_v29 = vmul.f32 %v6884_v31, %v1411_v13 }
0x2dda   :  { %v807_v57 = vpop.xlane.xlu1 %806 }
0x2ddb   :  { %5505 = vrcp.f32 %v807_v57  ;;  %v1373_v57 = vsel %vm1372_vm10, %v1362_v26, -1e+30 }
0x2de8   :  { %v5506_v58 = vpop.eup %5505 }
0x2de9   :  { %v809_v45 = vmul.f32 %v5506_v58, %v5504_v41  ;;  %v1407_v58 = vrot.slane %v1393_v2, %v5864_v46 }
0x2deb   :  { %v813_v53 = vrot.slane %v809_v45, %v5871_v50  ;;  %v824_v59 = vrot.slane %v809_v45, %v5922_v55  ;;  %v1374_v45 = vsel %vm713_vm9, %v1373_v57, -inf }
0x2ded   :  { %819 = vbcast.lane.b32.xlu1 %v813_v53, 264  ;;  %815 = vbcast.lane.b32.xlu0 %v813_v53, 256  ;;  %v1418_v53 = vmul.f32 %v6922_v36, %v1411_v13 }
0x2df1   :  { %826 = vbcast.lane.b32.xlu1 %v824_v59, 256  ;;  %830 = vbcast.lane.b32.xlu0 %v824_v59, 264  ;;  %v1422_v59 = vsel %vm67_vm1, %v1418_v53, 0.0 }
0x2e5f   :  { %v820_v27 = vpop.permute.xlu1 %819  ;;  %v816_v38 = vpop.permute.xlu0 %815 }
0x2e60   :  { %v833_v9 = vmul.f32 %v820_v27, %v6959_v54  ;;  %v832_v17 = vmul.f32 %v816_v38, %v6964_v56  ;;  %v1415_v27 = vrot.slane %v1407_v58, %v5871_v50  ;;  %v1425_v38 = vsel %vm67_vm1, %v1419_v29, 0.0 }
0x2e62   :  { %v836_v6 = vadd.f32 %v833_v9, %v832_v17  ;;  %v1420_v9 = vmul.f32 %v6929_v4, %v1415_v27 }
0x2e63   :  { %v827_v35 = vpop.permute.xlu1 %826  ;;  %v831_v21 = vpop.permute.xlu0 %830 }
0x2e64   :  { %v837_v49 = vrot.slane %v836_v6, 4  ;;  %v834_v30 = vmul.f32 %v827_v35, %v6971_v11  ;;  %v835_v3 = vmul.f32 %v831_v21, %v6976_v18  ;;  %v1428_v17 = vsel %vm67_vm1, %v1420_v9, 0.0 }
0x2e66   :  { %v838_v32 = vadd.f32 %v837_v49, %v836_v6  ;;  %v843_v5 = vadd.f32 %v835_v3, %v834_v30  ;;  %v1421_v6 = vmul.f32 %v6892_v12, %v1415_v27 }
0x2e68   :  { %v839_v51 = vrot.slane %v838_v32, 2  ;;  %v844_v52 = vrot.slane %v843_v5, 4  ;;  %v1431_v35 = vsel %vm67_vm1, %v1421_v6, 0.0  ;;  %v7534_v6 = vld [vmem:[#allocation3_spill] sm:$0xff] }
0x2e6a   :  { %v840_v8 = vadd.f32 %v839_v51, %v838_v32  ;;  %v845_v60 = vadd.f32 %v844_v52, %v843_v5 }
0x2e6c   :  { %v846_v61 = vrot.slane %v845_v60, 2  ;;  %v841_v34 = vrot.slane %v840_v8, 1 }
0x2e6e   :  { %v847_v47 = vadd.f32 %v846_v61, %v845_v60  ;;  %v842_v1 = vadd.f32 %v841_v34, %v840_v8 }
0x2e70   :  { %v848_v33 = vrot.slane %v847_v47, 1 }
0x2e72   :  { %v849_v37 = vadd.f32 %v848_v33, %v847_v47 }
0x2e74   :  { %v852_v15 = vsel %vm399_vm3, %v849_v37, %v842_v1 }
0x2e75   :  { %v854_v39 = vsel %vm711_vm8, %v852_v15, -1e+30 }
0x2e76   :  { %v855_v41 = vsel %vm713_vm9, %v854_v39, -inf }
0x2e77   :  { %856 = vmax.xlane.f32.xlu1 %v855_v41 }
0x2e7b   :  { %1375 = vmax.xlane.f32.xlu1 %v1374_v45 }
0x2e7f   :  { %1423 = vadd.xlane.f32.xlu1 %v1422_v59 }
0x2e83   :  { %1426 = vadd.xlane.f32.xlu1 %v1425_v38 }
0x2e87   :  { %1429 = vadd.xlane.f32.xlu1 %v1428_v17 }
0x2e8b   :  { %1432 = vadd.xlane.f32.xlu1 %v1431_v35  ;;  %v7040_v35 = vadd.f32 %v7534_v6, %v6856_v23 }
0x2f00   :  { %v857_v21 = vpop.xlane.xlu1 %856 }
0x2f01   :  { %v858_v49 = vsub.f32 %v854_v39, %v857_v21  ;;  %v2053_v21 = vrot.slane %v7040_v35, %v5864_v46 }
0x2f03   :  { %v859_v30 = vmul.f32 1.442695, %v858_v49  ;;  %v2054_v49 = vcombine.high %v2053_v21, %v2053_v21 }
0x2f04   :  { %v1376_v3 = vpop.xlane.xlu1 %1375 }
0x2f05   :  { %5507 = vpow2.f32 %v859_v30  ;;  %v1377_v32 = vsub.f32 %v1373_v57, %v1376_v3  ;;  %v2061_v30 = vrot.slane %v2053_v21, %v5864_v46  ;;  %v7047_v3 = vadd.f32 %v6933_v22, %v6856_v23 }
0x2f07   :  { %v1378_v5 = vmul.f32 1.442695, %v1377_v32  ;;  %v2068_v32 = vrot.slane %v2054_v49, %v5864_v46 }
0x2f08   :  { %v1424_v51 = vpop.xlane.xlu1 %1423 }
0x2f09   :  { %5509 = vpow2.f32 %v1378_v5  ;;  %v1441_v47 = vrot.slane %v1424_v51, %v5901_v20  ;;  %v4036_v5 = vrot.slane %v7047_v3, %v5864_v46  ;;  %v7053_v51 = vrot.slane %v2061_v30, %v5871_v50 }
0x2f0a   :  { %v7063_v22 = vrot.slane %v2068_v32, %v5871_v50 }
0x2f0c   :  { %v1427_v52 = vpop.xlane.xlu1 %1426 }
0x2f0d   :  { %v1445_v61 = vrot.slane %v1427_v52, %v5898_v19  ;;  %v7057_v52 = vadd.f32 %v6648_v42, %v6856_v23  ;;  %v2082_v42 = vmul.f32 %v6892_v12, %v7063_v22 }
0x2f0f   :  { %v1446_v37 = vsel %vm388_vm2, %v1445_v61, %v1441_v47  ;;  %v4044_v61 = vrot.slane %v4036_v5, %v5864_v46 }
0x2f10   :  { %v1430_v8 = vpop.xlane.xlu1 %1429 }
0x2f11   :  { %v1450_v33 = vrot.slane %v1430_v8, %v5901_v20  ;;  %v4037_v8 = vcombine.high %v4036_v5, %v4036_v5 }
0x2f12   :  { %v7013_v60 = vpop.eup %5507 }
0x2f13   :  { %v861_v40 = vsel %vm713_vm9, %v7013_v60, 0.0  ;;  %v4051_v47 = vrot.slane %v4037_v8, %v5864_v46 }
0x2f14   :  { %862 = vadd.xlane.f32.xlu0 %v861_v40  ;;  %v1433_v34 = vpop.xlane.xlu1 %1432  ;;  %v2079_v40 = vmul.f32 %v6922_v36, %v7053_v51 }
0x2f15   :  { %v1454_v24 = vrot.slane %v1433_v34, %v5898_v19  ;;  %v2714_v34 = vrot.slane %v7057_v52, %v5864_v46 }
0x2f16   :  { %v7021_v1 = vpop.eup %5509 }
0x2f17   :  { %v1455_v28 = vsel %vm388_vm2, %v1454_v24, %v1450_v33  ;;  %v1380_v26 = vsel %vm713_vm9, %v7021_v1, 0.0  ;;  %v2083_v33 = vsel %vm67_vm1, %v2079_v40, 0.0  ;;  %v7072_v24 = vrot.slane %v4044_v61, %v5871_v50 }
0x2f18   :  { %1381 = vadd.xlane.f32.xlu0 %v1380_v26  ;;  %v1456_v15 = vsel %vm399_vm3, %v1455_v28, %v1446_v37  ;;  %v2715_v37 = vcombine.high %v2714_v34, %v2714_v34  ;;  %v2722_v28 = vrot.slane %v2714_v34, %v5864_v46  ;;  %v7077_v26 = vadd.f32 %v6778_v62, %v6856_v23 }
0x2f19   :  { %v1458_v39 = vsel %vm372_vm4, %v1456_v15, -1e+30  ;;  %v2092_v15 = vsel %vm67_vm1, %v2082_v42, 0.0 }
0x2f1a   :  { %v1459_v2 = vsel %vm403_vm5, %v1458_v39, -inf }
0x2f1b   :  { %1460 = vmax.xlane.f32.xlu1 %v1459_v2  ;;  %v7083_v2 = vrot.slane %v4051_v47, %v5871_v50 }
0x2f9d   :  { %v7032_v53 = vpop.xlane.xlu0 %862 }
0x2fa1   :  { %v7034_v59 = vpop.xlane.xlu0 %1381 }
0x2fa4   :  { %v1461_v41 = vpop.xlane.xlu1 %1460 }
0x2fa5   :  { %v1462_v13 = vsub.f32 %v1458_v39, %v1461_v41  ;;  %v4063_v39 = vmul.f32 %v6884_v31, %v7072_v24  ;;  %v4664_v41 = vpop.f32.mrf.mxu1 }
0x2fa6   :  { %v7092_v62 = vadd.f32 %v4664_v41, %v6856_v23 }
0x2fa7   :  { %v1463_v57 = vmul.f32 1.442695, %v1462_v13  ;;  %v2729_v13 = vrot.slane %v2715_v37, %v5864_v46 }
0x2fa9   :  { %5511 = vpow2.f32 %v1463_v57  ;;  %v7087_v57 = vrot.slane %v2722_v28, %v5871_v50 }
0x2fab   :  { %v2741_v23 = vmul.f32 %v6884_v31, %v7087_v57 }
0x2fad   :  { %v2747_v30 = vsel %vm67_vm1, %v2741_v23, 0.0 }
0x2fb6   :  { %v5512_v58 = vpop.eup %5511 }
0x2fb7   :  { %v1465_v45 = vsel %vm403_vm5, %v5512_v58, 0.0 }
0x2fb8   :  { %1466 = vadd.xlane.f32.xlu0 %v1465_v45  ;;  %v4069_v45 = vsel %vm67_vm1, %v4063_v39, 0.0 }
0x3041   :  { %v1467_v29 = vpop.xlane.xlu0 %1466 }
0x3042   :  { %5513 = vrcp.f32 %v1467_v29  ;;  %v4065_v29 = vmul.f32 %v6892_v12, %v7083_v2 }
0x304f   :  { %v5514_v27 = vpop.eup %5513 }
0x3050   :  { %v1469_v38 = vmul.f32 %v5514_v27, %v5512_v58  ;;  %v3375_v58 = vrot.slane %v7077_v26, %v5864_v46  ;;  %v7098_v27 = vrot.slane %v2729_v13, %v5871_v50 }
0x3052   :  { %v1473_v9 = vrot.slane %v1469_v38, %v5871_v50  ;;  %v1484_v17 = vrot.slane %v1469_v38, %v5922_v55  ;;  %v3383_v38 = vrot.slane %v3375_v58, %v5864_v46  ;;  %v2743_v6 = vmul.f32 %v6892_v12, %v7098_v27 }
0x3053   :  { %v3376_v8 = vcombine.high %v3375_v58, %v3375_v58  ;;  %v5665_v58 = vmov 0  }
0x3054   :  { %1479 = vbcast.lane.b32.xlu0 %v1473_v9, 264  ;;  %1475 = vbcast.lane.b32.xlu1 %v1473_v9, 256  ;;  %v4697_v9 = vrot.slane %v7092_v62, %v5864_v46  ;;  %v7111_v32 = vrot.slane %v3383_v38, %v5871_v50  ;;  %v2753_v5 = vsel %vm67_vm1, %v2743_v6, 0.0 }
0x3055   :  { %v3390_v47 = vrot.slane %v3376_v8, %v5864_v46  ;;  %5397 = vset.pattern.permute.xlu1 %v5665_v58  ;;  %5398 = vset.pattern.permute.xlu0 %v5665_v58 }
0x3056   :  { %v4698_v21 = vcombine.high %v4697_v9, %v4697_v9  ;;  %v4705_v49 = vrot.slane %v4697_v9, %v5864_v46  ;;  %v3402_v40 = vmul.f32 %v6884_v31, %v7111_v32 }
0x3057   :  { %v7131_v39 = vrot.slane %v3390_v47, %v5871_v50 }
0x3058   :  { %1486 = vbcast.lane.b32.xlu1 %v1484_v17, 256  ;;  %v4712_v61 = vrot.slane %v4698_v21, %v5864_v46  ;;  %v7118_v34 = vrot.slane %v4705_v49, %v5871_v50 }
0x3059   :  { %v3404_v41 = vmul.f32 %v6892_v12, %v7131_v39 }
0x305a   :  { %v4724_v42 = vmul.f32 %v6884_v31, %v7118_v34  ;;  %v7125_v37 = vrot.slane %v4712_v61, %v5871_v50 }
0x305b   :  { %v3414_v13 = vsel %vm67_vm1, %v3404_v41, 0.0 }
0x305c   :  { %1490 = vbcast.lane.b32.xlu1 %v1484_v17, 264  ;;  %v4075_v17 = vsel %vm67_vm1, %v4065_v29, 0.0  ;;  %v4730_v28 = vsel %vm67_vm1, %v4724_v42, 0.0  ;;  %v4901_v29 = vld [vmem:[%s7524_s2 + $0x2] sm:$0x3] }
0x305d   :  { %vm1542_vm12 = vcmp.gt.f32.partialorder %v4901_v29, 0.0 }
0x305e   :  { %v1543_v38 = vsel %vm1542_vm12, 1, %v5665_v58 }
0x3080   :  { %2084 = vadd.xlane.f32.xlu1 %v2083_v33  ;;  %v3408_v33 = vsel %vm67_vm1, %v3402_v40, 0.0 }
0x3084   :  { %2093 = vadd.xlane.f32.xlu1 %v2092_v15  ;;  %v4726_v15 = vmul.f32 %v6892_v12, %v7125_v37 }
0x3086   :  { %v4736_v46 = vsel %vm67_vm1, %v4726_v15, 0.0 }
0x3088   :  { %4070 = vadd.xlane.f32.xlu1 %v4069_v45  ;;  %v866_v45 = vld [vmem:[%s7524_s2] sm:$0x3] }
0x3089   :  { %vm881_vm11 = vcmp.gt.f32.partialorder %v866_v45, 0.0 }
0x308a   :  { %v882_v12 = vsel %vm881_vm11, 1, %v5665_v58  ;;  %vm4870_vm11 = vcmask 1043456  }
0x308c   :  { %4076 = vadd.xlane.f32.xlu1 %v4075_v17 }
0x3090   :  { %2748 = vadd.xlane.f32.xlu1 %v2747_v30 }
0x3094   :  { %2754 = vadd.xlane.f32.xlu1 %v2753_v5 }
0x3098   :  { %3409 = vadd.xlane.f32.xlu1 %v3408_v33 }
0x309c   :  { %4731 = vadd.xlane.f32.xlu1 %v4730_v28 }
0x30a0   :  { %4737 = vadd.xlane.f32.xlu1 %v4736_v46 }
0x30a4   :  { %3415 = vadd.xlane.f32.xlu1 %v3414_v13 }
0x30b5   :  { %884 = vperm.xlu1 %5397, %v882_v12  }
0x30b9   :  { %1545 = vperm.xlu1 %5397, %v1543_v38  }
0x30c6   :  { %v1480_v9 = vpop.permute.xlu0 %1479  ;;  %v1476_v17 = vpop.permute.xlu1 %1475 }
0x30c7   :  { %v1493_v23 = vmul.f32 %v1480_v9, %v6959_v54  ;;  %v1492_v6 = vmul.f32 %v1476_v17, %v6964_v56 }
0x30c9   :  { %v1496_v21 = vadd.f32 %v1493_v23, %v1492_v6  ;;  %v2080_v23 = vmul.f32 %v6884_v31, %v7053_v51  ;;  %v2740_v51 = vmul.f32 %v6922_v36, %v7087_v57 }
0x30ca   :  { %v1487_v49 = vpop.permute.xlu1 %1486 }
0x30cb   :  { %v1497_v30 = vrot.slane %v1496_v21, 4  ;;  %v1494_v61 = vmul.f32 %v1487_v49, %v6971_v11  ;;  %v2086_v6 = vsel %vm67_vm1, %v2080_v23, 0.0 }
0x30cd   :  { %v1498_v5 = vadd.f32 %v1497_v30, %v1496_v21  ;;  %v2081_v21 = vmul.f32 %v6929_v4, %v7063_v22  ;;  %v4062_v30 = vmul.f32 %v6922_v36, %v7072_v24  ;;  %v2744_v22 = vsel %vm67_vm1, %v2740_v51, 0.0 }
0x30ce   :  { %v1491_v8 = vpop.permute.xlu1 %1490 }
0x30cf   :  { %v1495_v40 = vmul.f32 %v1491_v8, %v6976_v18  ;;  %v1499_v47 = vrot.slane %v1498_v5, 2  ;;  %v2089_v49 = vsel %vm67_vm1, %v2081_v21, 0.0  ;;  %v4066_v43 = vsel %vm67_vm1, %v4062_v30, 0.0 }
0x30d0   :  { %v2742_v8 = vmul.f32 %v6929_v4, %v7098_v27 }
0x30d1   :  { %v1503_v33 = vadd.f32 %v1495_v40, %v1494_v61  ;;  %v1500_v28 = vadd.f32 %v1499_v47, %v1498_v5  ;;  %v4064_v5 = vmul.f32 %v6929_v4, %v7083_v2  ;;  %v3401_v61 = vmul.f32 %v6922_v36, %v7111_v32 }
0x30d2   :  { %v2750_v24 = vsel %vm67_vm1, %v2742_v8, 0.0  ;;  %v4723_v40 = vmul.f32 %v6922_v36, %v7118_v34  ;;  %v4725_v47 = vmul.f32 %v6929_v4, %v7125_v37 }
0x30d3   :  { %v1504_v42 = vrot.slane %v1503_v33, 4  ;;  %v1501_v41 = vrot.slane %v1500_v28, 1  ;;  %v4072_v31 = vsel %vm67_vm1, %v4064_v5, 0.0  ;;  %v3405_v2 = vsel %vm67_vm1, %v3401_v61, 0.0 }
0x30d4   :  { %v4727_v57 = vsel %vm67_vm1, %v4723_v40, 0.0  ;;  %v4733_v27 = vsel %vm67_vm1, %v4725_v47, 0.0 }
0x30d5   :  { %v1505_v15 = vadd.f32 %v1504_v42, %v1503_v33  ;;  %v1502_v29 = vadd.f32 %v1501_v41, %v1500_v28  ;;  %v3403_v33 = vmul.f32 %v6929_v4, %v7131_v39 }
0x30d7   :  { %v1506_v46 = vrot.slane %v1505_v15, 2  ;;  %v3411_v32 = vsel %vm67_vm1, %v3403_v33, 0.0 }
0x30d9   :  { %v1507_v13 = vadd.f32 %v1506_v46, %v1505_v15 }
0x30db   :  { %v1508_v45 = vrot.slane %v1507_v13, 1 }
0x30dd   :  { %v1509_v12 = vadd.f32 %v1508_v45, %v1507_v13 }
0x30df   :  { %v1512_v38 = vsel %vm399_vm3, %v1509_v12, %v1502_v29 }
0x30e0   :  { %v1514_v9 = vsel %vm1372_vm10, %v1512_v38, -1e+30 }
0x30e1   :  { %v1515_v17 = vsel %vm713_vm9, %v1514_v9, -inf }
0x30e2   :  { %1516 = vmax.xlane.f32.xlu0 %v1515_v17 }
0x30e6   :  { %2087 = vadd.xlane.f32.xlu0 %v2086_v6 }
0x30ea   :  { %2090 = vadd.xlane.f32.xlu0 %v2089_v49 }
0x30ee   :  { %4067 = vadd.xlane.f32.xlu0 %v4066_v43 }
0x30f2   :  { %4073 = vadd.xlane.f32.xlu0 %v4072_v31 }
0x30f6   :  { %2745 = vadd.xlane.f32.xlu0 %v2744_v22 }
0x30fa   :  { %2751 = vadd.xlane.f32.xlu0 %v2750_v24 }
0x30fe   :  { %3406 = vadd.xlane.f32.xlu0 %v3405_v2 }
0x3102   :  { %4728 = vadd.xlane.f32.xlu0 %v4727_v57 }
0x3106   :  { %4734 = vadd.xlane.f32.xlu0 %v4733_v27 }
0x3109   :  { %v2085_v42 = vpop.xlane.xlu1 %2084 }
0x310a   :  { %3412 = vadd.xlane.f32.xlu0 %v3411_v32  ;;  %v2102_v12 = vrot.slane %v2085_v42, %v5901_v20 }
0x310d   :  { %v2094_v28 = vpop.xlane.xlu1 %2093 }
0x310e   :  { %v2115_v4 = vrot.slane %v2094_v28, %v5898_v19 }
0x3111   :  { %v4071_v15 = vpop.xlane.xlu1 %4070 }
0x3112   :  { %v4089_v5 = vrot.slane %v4071_v15, %v5898_v19 }
0x3115   :  { %v4077_v46 = vpop.xlane.xlu1 %4076 }
0x3116   :  { %v4098_v31 = vrot.slane %v4077_v46, %v5898_v19 }
0x3119   :  { %v2749_v45 = vpop.xlane.xlu1 %2748 }
0x311a   :  { %v2767_v42 = vrot.slane %v2749_v45, %v5898_v19 }
0x311d   :  { %v2755_v21 = vpop.xlane.xlu1 %2754 }
0x311e   :  { %v2776_v28 = vrot.slane %v2755_v21, %v5898_v19 }
0x3121   :  { %v3410_v2 = vpop.xlane.xlu1 %3409 }
0x316b   :  { %v1517_v36 = vpop.xlane.xlu0 %1516 }
0x316c   :  { %v1518_v34 = vsub.f32 %v1514_v9, %v1517_v36  ;;  %v4732_v36 = vpop.xlane.xlu1 %4731 }
0x316e   :  { %v1519_v41 = vmul.f32 1.442695, %v1518_v34 }
0x316f   :  { %v2088_v13 = vpop.xlane.xlu0 %2087 }
0x3170   :  { %5515 = vpow2.f32 %v1519_v41  ;;  %v2106_v37 = vrot.slane %v2088_v13, %v5898_v19  ;;  %v4738_v45 = vpop.xlane.xlu1 %4737 }
0x3172   :  { %v2107_v17 = vsel %vm388_vm2, %v2106_v37, %v2102_v12 }
0x3173   :  { %v2091_v29 = vpop.xlane.xlu0 %2090 }
0x3174   :  { %v2111_v39 = vrot.slane %v2091_v29, %v5901_v20  ;;  %v3416_v21 = vpop.xlane.xlu1 %3415 }
0x3176   :  { %v2116_v38 = vsel %vm388_vm2, %v2115_v4, %v2111_v39 }
0x3177   :  { %v4068_v23 = vpop.xlane.xlu0 %4067  ;;  %v2117_v9 = vsel %vm399_vm3, %v2116_v38, %v2107_v17  ;;  %v7232_v38 = vld [vmem:[%s7522_s1 + $0x4] sm:$0x3]  ;;  %v4750_v17 = vrot.slane %v4732_v36, %v5898_v19 }
0x3178   :  { %v7194_v6 = vsel %vm372_vm4, %v2117_v9, -1e+30  ;;  %v4085_v30 = vrot.slane %v4068_v23, %v5901_v20  ;;  %v4759_v23 = vrot.slane %v4738_v45, %v5898_v19  ;;  %vm2033_vm13 = vcmp.gt.f32.partialorder %v7232_v38, 0.0  ;;  %v7296_v38 = vld [vmem:[%s7522_s1 + $0x6] sm:$0x3] }
0x3179   :  { %v2120_v49 = vsel %vm403_vm5, %v7194_v6, -inf  ;;  %vm2694_vm14 = vcmp.gt.f32.partialorder %v7296_v38, 0.0 }
0x317a   :  { %2121 = vmax.xlane.f32.xlu1 %v2120_v49  ;;  %v4090_v8 = vsel %vm388_vm2, %v4089_v5, %v4085_v30  ;;  %v7535_v49 = vld [vmem:[#allocation4_spill] sm:$0xff] }
0x317b   :  { %v4074_v43 = vpop.xlane.xlu0 %4073  ;;  %v2023_v30 = vadd.f32 %v7535_v49, %v6865_v16 }
0x317c   :  { %v4094_v51 = vrot.slane %v4074_v43, %v5901_v20 }
0x317d   :  { %v7202_v22 = vpop.eup %5515 }
0x317e   :  { %v4099_v24 = vsel %vm388_vm2, %v4098_v31, %v4094_v51  ;;  %v1521_v61 = vsel %vm713_vm9, %v7202_v22, 0.0 }
0x317f   :  { %1522 = vadd.xlane.f32.xlu0 %v1521_v61  ;;  %v2746_v40 = vpop.xlane.xlu0 %2745  ;;  %v4100_v57 = vsel %vm399_vm3, %v4099_v24, %v4090_v8  ;;  %v3428_v24 = vrot.slane %v3410_v2, %v5898_v19  ;;  %v3437_v61 = vrot.slane %v3416_v21, %v5898_v19 }
0x3180   :  { %v7211_v47 = vsel %vm372_vm4, %v4100_v57, -1e+30  ;;  %v2763_v33 = vrot.slane %v2746_v40, %v5901_v20 }
0x3181   :  { %v4103_v27 = vsel %vm403_vm5, %v7211_v47, -inf }
0x3182   :  { %v2768_v34 = vsel %vm388_vm2, %v2767_v42, %v2763_v33  ;;  %v2034_v33 = vsel %vm2033_vm13, %v2023_v30, -1e+30 }
0x3183   :  { %v2752_v32 = vpop.xlane.xlu0 %2751  ;;  %4104 = vmax.xlane.f32.xlu0 %v4103_v27 }
0x3184   :  { %v2772_v15 = vrot.slane %v2752_v32, %v5901_v20 }
0x3186   :  { %v2777_v46 = vsel %vm388_vm2, %v2776_v28, %v2772_v15  ;;  %v7262_v15 = vpop.permute.xlu1 %884 }
0x3187   :  { %v3407_v41 = vpop.xlane.xlu0 %3406  ;;  %v2778_v13 = vsel %vm399_vm3, %v2777_v46, %v2768_v34  ;;  %vm886_vm8 = vcmp.eq.s32.totalorder %v7262_v15, 1 }
0x3188   :  { %v7224_v37 = vsel %vm372_vm4, %v2778_v13, -1e+30  ;;  %v3424_v43 = vrot.slane %v3407_v41, %v5901_v20 }
0x3189   :  { %v2781_v29 = vsel %vm403_vm5, %v7224_v37, -inf }
0x318a   :  { %2782 = vmax.xlane.f32.xlu0 %v2781_v29  ;;  %v3429_v32 = vsel %vm388_vm2, %v3428_v24, %v3424_v43  ;;  %v7264_v36 = vpop.permute.xlu1 %1545 }
0x318b   :  { %v4729_v12 = vpop.xlane.xlu0 %4728  ;;  %vm1547_vm7 = vcmp.eq.s32.totalorder %v7264_v36, 1 }
0x318c   :  { %v4746_v4 = vrot.slane %v4729_v12, %v5901_v20 }
0x318e   :  { %v4751_v5 = vsel %vm388_vm2, %v4750_v17, %v4746_v4 }
0x318f   :  { %v4735_v39 = vpop.xlane.xlu0 %4734 }
0x3190   :  { %v4755_v9 = vrot.slane %v4735_v39, %v5901_v20 }
0x3192   :  { %v4760_v31 = vsel %vm388_vm2, %v4759_v23, %v4755_v9 }
0x3193   :  { %v3413_v51 = vpop.xlane.xlu0 %3412  ;;  %v4761_v8 = vsel %vm399_vm3, %v4760_v31, %v4751_v5 }
0x3194   :  { %v3433_v40 = vrot.slane %v3413_v51, %v5901_v20  ;;  %v7249_v57 = vsel %vm372_vm4, %v4761_v8, -1e+30  ;;  %v2035_v20 = vsel %vm713_vm9, %v2034_v33, -inf }
0x3195   :  { %v4764_v27 = vsel %vm403_vm5, %v7249_v57, -inf }
0x3196   :  { %v3438_v42 = vsel %vm388_vm2, %v3437_v61, %v3433_v40  ;;  %4765 = vmax.xlane.f32.xlu1 %v4764_v27 }
0x3197   :  { %v3439_v2 = vsel %vm399_vm3, %v3438_v42, %v3429_v32 }
0x3198   :  { %v3441_v19 = vsel %vm372_vm4, %v3439_v2, -1e+30 }
0x3199   :  { %v3442_v28 = vsel %vm403_vm5, %v3441_v19, -inf }
0x319a   :  { %2036 = vmax.xlane.f32.xlu1 %v2035_v20  ;;  %3443 = vmax.xlane.f32.xlu0 %v3442_v28 }
0x3203   :  { %v2122_v34 = vpop.xlane.xlu1 %2121 }
0x3204   :  { %v2123_v46 = vsub.f32 %v7194_v6, %v2122_v34 }
0x3206   :  { %v2124_v41 = vmul.f32 1.442695, %v2123_v46 }
0x3208   :  { %5517 = vpow2.f32 %v2124_v41  ;;  %v7276_v30 = vpop.xlane.xlu0 %1522 }
0x320c   :  { %v4105_v43 = vpop.xlane.xlu0 %4104 }
0x320d   :  { %v4106_v27 = vsub.f32 %v7211_v47, %v4105_v43 }
0x320f   :  { %v4107_v34 = vmul.f32 1.442695, %v4106_v27 }
0x3213   :  { %v2783_v5 = vpop.xlane.xlu0 %2782 }
0x3214   :  { %v2784_v46 = vsub.f32 %v7224_v37, %v2783_v5 }
0x3215   :  { %v5518_v13 = vpop.eup %5517 }
0x3216   :  { %v2126_v29 = vsel %vm403_vm5, %v5518_v13, 0.0 }
0x3217   :  { %2127 = vadd.xlane.f32.xlu1 %v2126_v29 }
0x321f   :  { %v7268_v25 = vpop.xlane.xlu1 %4765 }
0x3223   :  { %v2037_v45 = vpop.xlane.xlu1 %2036  ;;  %v3444_v31 = vpop.xlane.xlu0 %3443 }
0x3224   :  { %v2038_v12 = vsub.f32 %v2034_v33, %v2037_v45 }
0x3226   :  { %v2039_v4 = vmul.f32 1.442695, %v2038_v12  ;;  %v2785_v12 = vmul.f32 1.442695, %v2784_v46 }
0x3228   :  { %5519 = vpow2.f32 %v2039_v4  ;;  %v3445_v4 = vsub.f32 %v3441_v19, %v3444_v31 }
0x3235   :  { %v7270_v39 = vpop.eup %5519 }
0x3236   :  { %v2041_v17 = vsel %vm713_vm9, %v7270_v39, 0.0 }
0x3237   :  { %2042 = vadd.xlane.f32.xlu0 %v2041_v17 }
0x32a0   :  { %v2128_v23 = vpop.xlane.xlu1 %2127 }
0x32a1   :  { %5521 = vrcp.f32 %v2128_v23 }
0x32a2   :  { %5523 = vpow2.f32 %v4107_v34 }
0x32a3   :  { %5525 = vpow2.f32 %v2785_v12 }
0x32ae   :  { %v5522_v6 = vpop.eup %5521 }
0x32af   :  { %v2130_v9 = vmul.f32 %v5522_v6, %v5518_v13  ;;  %v3446_v6 = vmul.f32 1.442695, %v3445_v4 }
0x32b1   :  { %v2134_v21 = vrot.slane %v2130_v9, %v5871_v50  ;;  %v2145_v49 = vrot.slane %v2130_v9, %v5922_v55  ;;  %5527 = vpow2.f32 %v3446_v6 }
0x32b3   :  { %2140 = vbcast.lane.b32.xlu1 %v2134_v21, 264  ;;  %2136 = vbcast.lane.b32.xlu0 %v2134_v21, 256 }
0x32b7   :  { %2147 = vbcast.lane.b32.xlu1 %v2145_v49, 256  ;;  %2151 = vbcast.lane.b32.xlu0 %v2145_v49, 264 }
0x32c0   :  { %v7278_v51 = vpop.xlane.xlu0 %2042 }
0x3325   :  { %v2141_v8 = vpop.permute.xlu1 %2140  ;;  %v2137_v24 = vpop.permute.xlu0 %2136 }
0x3326   :  { %v2154_v61 = vmul.f32 %v2141_v8, %v6959_v54  ;;  %v2153_v40 = vmul.f32 %v2137_v24, %v6964_v56  ;;  %v5524_v24 = vpop.eup %5523 }
0x3327   :  { %v4109_v19 = vsel %vm403_vm5, %v5524_v24, 0.0  ;;  %v5526_v31 = vpop.eup %5525 }
0x3328   :  { %v2157_v33 = vadd.f32 %v2154_v61, %v2153_v40  ;;  %v2787_v40 = vsel %vm403_vm5, %v5526_v31, 0.0  ;;  %v5528_v27 = vpop.eup %5527 }
0x3329   :  { %v2148_v32 = vpop.permute.xlu1 %2147  ;;  %v2152_v42 = vpop.permute.xlu0 %2151 }
0x332a   :  { %v2158_v2 = vrot.slane %v2157_v33, 4  ;;  %v2155_v20 = vmul.f32 %v2148_v32, %v6971_v11  ;;  %v2156_v28 = vmul.f32 %v2152_v42, %v6976_v18 }
0x332c   :  { %v2159_v41 = vadd.f32 %v2158_v2, %v2157_v33  ;;  %v2164_v13 = vadd.f32 %v2156_v28, %v2155_v20  ;;  %v3448_v33 = vsel %vm403_vm5, %v5528_v27, 0.0  ;;  %v2684_v20 = vadd.f32 %v6650_v44, %v6865_v16  ;;  %v4910_v44 = vld [vmem:[%s7524_s2 + $0x4] sm:$0x3] }
0x332d   :  { %vm2203_vm15 = vcmp.gt.f32.partialorder %v4910_v44, 0.0 }
0x332e   :  { %v2160_v29 = vrot.slane %v2159_v41, 2  ;;  %v2165_v45 = vrot.slane %v2164_v13, 4  ;;  %v2204_v12 = vsel %vm2203_vm15, 1, %v5665_v58 }
0x3330   :  { %v2161_v17 = vadd.f32 %v2160_v29, %v2159_v41  ;;  %v2166_v47 = vadd.f32 %v2165_v45, %v2164_v13  ;;  %v2695_v41 = vsel %vm2694_vm14, %v2684_v20, -1e+30 }
0x3331   :  { %v2696_v13 = vsel %vm713_vm9, %v2695_v41, -inf }
0x3332   :  { %v2167_v23 = vrot.slane %v2166_v47, 2  ;;  %v2162_v9 = vrot.slane %v2161_v17, 1 }
0x3334   :  { %v2168_v21 = vadd.f32 %v2167_v23, %v2166_v47  ;;  %v2163_v43 = vadd.f32 %v2162_v9, %v2161_v17 }
0x3336   :  { %v2169_v49 = vrot.slane %v2168_v21, 1 }
0x3338   :  { %v2170_v8 = vadd.f32 %v2169_v49, %v2168_v21 }
0x333a   :  { %v2173_v37 = vsel %vm399_vm3, %v2170_v8, %v2163_v43 }
0x333b   :  { %v2175_v5 = vsel %vm2033_vm13, %v2173_v37, -1e+30  ;;  %vm4872_vm13 = vcmask 1045504  }
0x333c   :  { %v2176_v61 = vsel %vm713_vm9, %v2175_v5, -inf }
0x333d   :  { %2177 = vmax.xlane.f32.xlu1 %v2176_v61 }
0x3341   :  { %4110 = vadd.xlane.f32.xlu1 %v4109_v19 }
0x3345   :  { %2788 = vadd.xlane.f32.xlu1 %v2787_v40 }
0x3349   :  { %3449 = vadd.xlane.f32.xlu1 %v3448_v33 }
0x33c6   :  { %v2178_v32 = vpop.xlane.xlu1 %2177 }
0x33c7   :  { %v2179_v42 = vsub.f32 %v2175_v5, %v2178_v32 }
0x33c9   :  { %v2180_v2 = vmul.f32 1.442695, %v2179_v42 }
0x33ca   :  { %v4111_v34 = vpop.xlane.xlu1 %4110 }
0x33cb   :  { %5529 = vpow2.f32 %v2180_v2 }
0x33ce   :  { %v2789_v29 = vpop.xlane.xlu1 %2788 }
0x33cf   :  { %5531 = vrcp.f32 %v2789_v29 }
0x33d0   :  { %5533 = vrcp.f32 %v4111_v34 }
0x33d2   :  { %v3450_v6 = vpop.xlane.xlu1 %3449 }
0x33d3   :  { %5535 = vrcp.f32 %v3450_v6 }
0x33d8   :  { %v7301_v28 = vpop.eup %5529 }
0x33d9   :  { %v2182_v46 = vsel %vm713_vm9, %v7301_v28, 0.0 }
0x33da   :  { %2183 = vadd.xlane.f32.xlu0 %v2182_v46 }
0x33dc   :  { %v5532_v45 = vpop.eup %5531 }
0x33dd   :  { %v2791_v4 = vmul.f32 %v5532_v45, %v5526_v31  ;;  %v5534_v23 = vpop.eup %5533 }
0x33de   :  { %2697 = vmax.xlane.f32.xlu0 %v2696_v13  ;;  %v4113_v9 = vmul.f32 %v5534_v23, %v5524_v24  ;;  %v4767_v24 = vsub.f32 %v7249_v57, %v7268_v25 }
0x33df   :  { %v2795_v17 = vrot.slane %v2791_v4, %v5871_v50  ;;  %v2806_v47 = vrot.slane %v2791_v4, %v5922_v55 }
0x33e0   :  { %v4117_v21 = vrot.slane %v4113_v9, %v5871_v50  ;;  %v4128_v49 = vrot.slane %v4113_v9, %v5922_v55  ;;  %v5536_v43 = vpop.eup %5535  ;;  %v4768_v40 = vmul.f32 1.442695, %v4767_v24 }
0x33e1   :  { %v3452_v8 = vmul.f32 %v5536_v43, %v5528_v27 }
0x33e3   :  { %v3456_v37 = vrot.slane %v3452_v8, %v5871_v50  ;;  %v3467_v5 = vrot.slane %v3452_v8, %v5922_v55 }
0x33f4   :  { %2206 = vperm.xlu0 %5398, %v2204_v12  }
0x33f8   :  { %2797 = vbcast.lane.b32.xlu0 %v2795_v17, 256 }
0x33fc   :  { %2808 = vbcast.lane.b32.xlu0 %v2806_v47, 256 }
0x3400   :  { %2812 = vbcast.lane.b32.xlu0 %v2806_v47, 264 }
0x3404   :  { %4119 = vbcast.lane.b32.xlu0 %v4117_v21, 256 }
0x3408   :  { %4123 = vbcast.lane.b32.xlu0 %v4117_v21, 264 }
0x340c   :  { %4130 = vbcast.lane.b32.xlu0 %v4128_v49, 256 }
0x3410   :  { %4134 = vbcast.lane.b32.xlu0 %v4128_v49, 264 }
0x3414   :  { %3458 = vbcast.lane.b32.xlu0 %v3456_v37, 256 }
0x3418   :  { %3469 = vbcast.lane.b32.xlu0 %v3467_v5, 256 }
0x3463   :  { %v7318_v61 = vpop.xlane.xlu0 %2183 }
0x3467   :  { %v2698_v19 = vpop.xlane.xlu0 %2697 }
0x3468   :  { %v2699_v31 = vsub.f32 %v2695_v41, %v2698_v19 }
0x346a   :  { %v2700_v33 = vmul.f32 1.442695, %v2699_v31 }
0x346c   :  { %5537 = vpow2.f32 %v2700_v33 }
0x346d   :  { %5539 = vpow2.f32 %v4768_v40 }
0x346f   :  { %v7327_v20 = vpop.permute.xlu0 %2206 }
0x3470   :  { %vm2208_vm10 = vcmp.eq.s32.totalorder %v7327_v20, 1 }
0x3473   :  { %v2798_v57 = vpop.permute.xlu0 %2797 }
0x3474   :  { %v2814_v47 = vmul.f32 %v2798_v57, %v6964_v56 }
0x3477   :  { %v2809_v25 = vpop.permute.xlu0 %2808 }
0x3478   :  { %v2816_v41 = vmul.f32 %v2809_v25, %v6971_v11 }
0x3479   :  { %v7322_v32 = vpop.eup %5537 }
0x347a   :  { %v2702_v27 = vsel %vm713_vm9, %v7322_v32, 0.0  ;;  %v5540_v42 = vpop.eup %5539 }
0x347b   :  { %2703 = vadd.xlane.f32.xlu1 %v2702_v27  ;;  %v4770_v2 = vsel %vm403_vm5, %v5540_v42, 0.0  ;;  %v2813_v34 = vpop.permute.xlu0 %2812 }
0x347c   :  { %v2817_v46 = vmul.f32 %v2813_v34, %v6976_v18 }
0x347e   :  { %v2825_v13 = vadd.f32 %v2817_v46, %v2816_v41 }
0x347f   :  { %4771 = vadd.xlane.f32.xlu1 %v4770_v2 }
0x3480   :  { %v2826_v44 = vrot.slane %v2825_v13, 4 }
0x3482   :  { %v2827_v12 = vadd.f32 %v2826_v44, %v2825_v13 }
0x3484   :  { %v2828_v23 = vrot.slane %v2827_v12, 2 }
0x3486   :  { %v2829_v21 = vadd.f32 %v2828_v23, %v2827_v12 }
0x3488   :  { %v2830_v24 = vrot.slane %v2829_v21, 1 }
0x348a   :  { %v2831_v2 = vadd.f32 %v2830_v24, %v2829_v21 }
0x3490   :  { %2801 = vbcast.lane.b32.xlu1 %v2795_v17, 264 }
0x3504   :  { %v7331_v29 = vpop.xlane.xlu1 %2703 }
0x3508   :  { %v4772_v45 = vpop.xlane.xlu1 %4771 }
0x3509   :  { %5541 = vrcp.f32 %v4772_v45 }
0x350c   :  { %v2802_v4 = vpop.permute.xlu1 %2801 }
0x350d   :  { %v2815_v17 = vmul.f32 %v2802_v4, %v6959_v54 }
0x350f   :  { %v2818_v6 = vadd.f32 %v2815_v17, %v2814_v47  ;;  %v5655_v47 = vld [vmem:[%s7523_s5 + $0x8] sm:$0xff] }
0x3511   :  { %v2819_v9 = vrot.slane %v2818_v6, 4 }
0x3513   :  { %v2820_v49 = vadd.f32 %v2819_v9, %v2818_v6  ;;  %v5656_v6 = vld [vmem:[%s7523_s5] sm:$0xff] }
0x3515   :  { %v2821_v43 = vrot.slane %v2820_v49, 2 }
0x3516   :  { %v5542_v8 = vpop.eup %5541 }
0x3517   :  { %v2822_v19 = vadd.f32 %v2821_v43, %v2820_v49  ;;  %v4774_v31 = vmul.f32 %v5542_v8, %v5540_v42  ;;  %v4006_v42 = vadd.f32 %v6935_v10, %v6865_v16 }
0x3519   :  { %v2823_v40 = vrot.slane %v2822_v19, 1  ;;  %v4778_v33 = vrot.slane %v4774_v31, %v5871_v50  ;;  %v4789_v25 = vrot.slane %v4774_v31, %v5922_v55  ;;  %v7344_v50 = vld [vmem:[%s7522_s1 + $0xa] sm:$0x3] }
0x351a   :  { %vm4016_vm0 = vcmp.gt.f32.partialorder %v7344_v50, 0.0 }
0x351b   :  { %4780 = vbcast.lane.b32.xlu0 %v4778_v33, 256  ;;  %v2824_v27 = vadd.f32 %v2823_v40, %v2822_v19  ;;  %v7351_v38 = vsel %vm4016_vm0, %v4006_v42, -1e+30  ;;  %v5657_v40 = vld [vmem:[%s7523_s5 + $0x18] sm:$0xff] }
0x351c   :  { %v4018_v55 = vsel %vm713_vm9, %v7351_v38, -inf }
0x351d   :  { %v2834_v56 = vsel %vm399_vm3, %v2831_v2, %v2824_v27  ;;  %v5658_v2 = vld [vmem:[%s7523_s5 + $0x10] sm:$0xff] }
0x351e   :  { %v2836_v54 = vsel %vm2694_vm14, %v2834_v56, -1e+30 }
0x351f   :  { %4784 = vbcast.lane.b32.xlu0 %v4778_v33, 264  ;;  %v2837_v57 = vsel %vm713_vm9, %v2836_v54, -inf }
0x3520   :  { %2838 = vmax.xlane.f32.xlu1 %v2837_v57 }
0x3523   :  { %4791 = vbcast.lane.b32.xlu0 %v4789_v25, 256 }
0x3527   :  { %4795 = vbcast.lane.b32.xlu0 %v4789_v25, 264 }
0x352b   :  { %3473 = vbcast.lane.b32.xlu0 %v3467_v5, 264  ;;  %v7528_v5 = vmov 32  }
0x352c   :  { %5400 = vset.pattern.permute.xlu1 %v7528_v5 }
0x3531   :  { %3462 = vbcast.lane.b32.xlu1 %v3456_v37, 264  ;;  %v4120_v37 = vpop.permute.xlu0 %4119 }
0x3532   :  { %v4136_v9 = vmul.f32 %v5656_v6, %v4120_v37 }
0x3535   :  { %v4124_v34 = vpop.permute.xlu0 %4123 }
0x3536   :  { %v4137_v17 = vmul.f32 %v5655_v47, %v4124_v34 }
0x3538   :  { %v4140_v49 = vadd.f32 %v4137_v17, %v4136_v9 }
0x3539   :  { %v4131_v46 = vpop.permute.xlu0 %4130 }
0x353a   :  { %v4138_v23 = vmul.f32 %v4131_v46, %v6971_v11  ;;  %v4141_v24 = vrot.slane %v4140_v49, 4 }
0x353c   :  { %v4142_v31 = vadd.f32 %v4141_v24, %v4140_v49 }
0x353d   :  { %v4135_v41 = vpop.permute.xlu0 %4134 }
0x353e   :  { %v4139_v12 = vmul.f32 %v4135_v41, %v6976_v18  ;;  %v4143_v42 = vrot.slane %v4142_v31, 2 }
0x3540   :  { %v4147_v21 = vadd.f32 %v4139_v12, %v4138_v23  ;;  %v4144_v49 = vadd.f32 %v4143_v42, %v4142_v31 }
0x3541   :  { %v3459_v13 = vpop.permute.xlu0 %3458 }
0x3542   :  { %v4148_v8 = vrot.slane %v4147_v21, 4  ;;  %v3475_v12 = vmul.f32 %v5656_v6, %v3459_v13 }
0x3544   :  { %v4149_v19 = vadd.f32 %v4148_v8, %v4147_v21 }
0x3545   :  { %v3470_v44 = vpop.permute.xlu0 %3469 }
0x3546   :  { %v4150_v27 = vrot.slane %v4149_v19, 2  ;;  %v3477_v56 = vmul.f32 %v5658_v2, %v3470_v44 }
0x3548   :  { %v4151_v41 = vadd.f32 %v4150_v27, %v4149_v19 }
0x354a   :  { %v4152_v5 = vrot.slane %v4151_v41, 1 }
0x354c   :  { %v4153_v19 = vadd.f32 %v4152_v5, %v4151_v41  ;;  %v4927_v41 = vld [vmem:[%s7522_s1 + $0x8] sm:$0x3] }
0x354d   :  { %vm3355_vm2 = vcmp.gt.f32.partialorder %v4927_v41, 0.0 }
0x3555   :  { %4019 = vmax.xlane.f32.xlu1 %v4018_v55 }
0x358d   :  { %v4781_v10 = vpop.permute.xlu0 %4780 }
0x358e   :  { %v4797_v23 = vmul.f32 %v5656_v6, %v4781_v10  ;;  %v4666_v6 = vpop.f32.mrf.mxu1 }
0x358f   :  { %v4667_v5 = vadd.f32 %v4666_v6, %v6865_v16 }
0x3591   :  { %v4785_v45 = vpop.permute.xlu0 %4784 }
0x3592   :  { %v4798_v55 = vmul.f32 %v5655_v47, %v4785_v45 }
0x3594   :  { %v4801_v8 = vadd.f32 %v4798_v55, %v4797_v23 }
0x3595   :  { %v4792_v4 = vpop.permute.xlu0 %4791 }
0x3596   :  { %v4799_v37 = vmul.f32 %v5658_v2, %v4792_v4 }
0x3599   :  { %v4796_v43 = vpop.permute.xlu0 %4795 }
0x359a   :  { %v4800_v57 = vmul.f32 %v5657_v40, %v4796_v43 }
0x359c   :  { %v4808_v9 = vadd.f32 %v4800_v57, %v4799_v37  ;;  %v4945_v57 = vld [vmem:[%s7522_s1 + $0xc] sm:$0x3] }
0x359d   :  { %v3474_v18 = vpop.permute.xlu0 %3473  ;;  %vm4677_vm1 = vcmp.gt.f32.partialorder %v4945_v57, 0.0 }
0x359e   :  { %v3478_v33 = vmul.f32 %v5657_v40, %v3474_v18  ;;  %v4809_v44 = vrot.slane %v4808_v9, 4  ;;  %v4802_v40 = vrot.slane %v4801_v8, 4 }
0x35a0   :  { %v3486_v34 = vadd.f32 %v3478_v33, %v3477_v56  ;;  %v4810_v33 = vadd.f32 %v4809_v44, %v4808_v9  ;;  %v4803_v13 = vadd.f32 %v4802_v40, %v4801_v8  ;;  %v3345_v9 = vadd.f32 %v6780_v63, %v6865_v16 }
0x35a1   :  { %v4892_v44 = vmul.f32 -1.442695, %v6860_v48 }
0x35a2   :  { %v3487_v24 = vrot.slane %v3486_v34, 4  ;;  %v4811_v2 = vrot.slane %v4810_v33, 2 }
0x35a4   :  { %v3488_v45 = vadd.f32 %v3487_v24, %v3486_v34  ;;  %v4812_v34 = vadd.f32 %v4811_v2, %v4810_v33  ;;  %v4919_v2 = vld [vmem:[%s7524_s2 + $0x6] sm:$0x3] }
0x35a6   :  { %v3489_v27 = vrot.slane %v3488_v45, 2  ;;  %v4813_v50 = vrot.slane %v4812_v34, 1 }
0x35a8   :  { %v3490_v42 = vadd.f32 %v3489_v27, %v3488_v45  ;;  %v4814_v16 = vadd.f32 %v4813_v50, %v4812_v34 }
0x35a9   :  { %v2839_v11 = vpop.xlane.xlu1 %2838 }
0x35aa   :  { %v2840_v25 = vsub.f32 %v2836_v54, %v2839_v11  ;;  %v4145_v54 = vrot.slane %v4144_v49, 1 }
0x35ac   :  { %v2841_v46 = vmul.f32 1.442695, %v2840_v25  ;;  %v4146_v10 = vadd.f32 %v4145_v54, %v4144_v49  ;;  %v4804_v25 = vrot.slane %v4803_v13, 2  ;;  %v4899_v54 = vmul.f32 -1.442695, %v6982_v7 }
0x35ad   :  { %v3463_v17 = vpop.permute.xlu1 %3462  ;;  %v4908_v7 = vmul.f32 -1.442695, %v7040_v35 }
0x35ae   :  { %5543 = vpow2.f32 %v2841_v46  ;;  %v3476_v21 = vmul.f32 %v5655_v47, %v3463_v17  ;;  %v4156_v31 = vsel %vm399_vm3, %v4153_v19, %v4146_v10  ;;  %v3491_v17 = vrot.slane %v3490_v42, 1 }
0x35af   :  { %v7381_v37 = vsel %vm4016_vm0, %v4156_v31, -1e+30  ;;  %5545 = vpow2.f32 %v4892_v44 }
0x35b0   :  { %v3479_v18 = vadd.f32 %v3476_v21, %v3475_v12  ;;  %v4805_v12 = vadd.f32 %v4804_v25, %v4803_v13  ;;  %v4159_v23 = vsel %vm713_vm9, %v7381_v37, -inf  ;;  %v7391_v21 = vsel %vm4677_vm1, %v4667_v5, -1e+30 }
0x35b1   :  { %v4679_v24 = vsel %vm713_vm9, %v7391_v21, -inf  ;;  %5547 = vpow2.f32 %v4899_v54  ;;  %v4917_v54 = vmul.f32 -1.442695, %v7057_v52  ;;  %v4935_v52 = vmul.f32 -1.442695, %v7047_v3 }
0x35b2   :  { %v3480_v43 = vrot.slane %v3479_v18, 4  ;;  %v4806_v8 = vrot.slane %v4805_v12, 1  ;;  %5549 = vpow2.f32 %v4908_v7  ;;  %v4944_v7 = vmul.f32 -1.442695, %v7092_v62 }
0x35b4   :  { %v3481_v4 = vadd.f32 %v3480_v43, %v3479_v18  ;;  %v3492_v18 = vadd.f32 %v3491_v17, %v3490_v42  ;;  %v3356_v43 = vsel %vm3355_vm2, %v3345_v9, -1e+30  ;;  %v4807_v45 = vadd.f32 %v4806_v8, %v4805_v12 }
0x35b5   :  { %v3357_v40 = vsel %vm713_vm9, %v3356_v43, -inf  ;;  %v7536_v42 = vmov 32  }
0x35b6   :  { %v3482_v11 = vrot.slane %v3481_v4, 2  ;;  %v4817_v33 = vsel %vm399_vm3, %v4814_v16, %v4807_v45 }
0x35b8   :  { %v3483_v47 = vadd.f32 %v3482_v11, %v3481_v4  ;;  %v4819_v11 = vsel %vm4677_vm1, %v4817_v33, -1e+30 }
0x35b9   :  { %v4820_v19 = vsel %vm713_vm9, %v4819_v11, -inf }
0x35ba   :  { %v3484_v46 = vrot.slane %v3483_v47, 1 }
0x35bb   :  { %v7371_v56 = vpop.eup %5543 }
0x35bc   :  { %v2843_v55 = vsel %vm713_vm9, %v7371_v56, 0.0  ;;  %v3485_v49 = vadd.f32 %v3484_v46, %v3483_v47  ;;  %v5546_v13 = vpop.eup %5545 }
0x35bd   :  { %2844 = vadd.xlane.f32.xlu0 %v2843_v55  ;;  %v707_v10 = vadd.f32 1.0, %v5546_v13 }
0x35be   :  { %v3495_v63 = vsel %vm399_vm3, %v3492_v18, %v3485_v49  ;;  %v5548_v27 = vpop.eup %5547  ;;  %vm2864_vm3 = vcmp.gt.f32.partialorder %v4919_v2, 0.0 }
0x35bf   :  { %v3497_v4 = vsel %vm3355_vm2, %v3495_v63, -1e+30  ;;  %v1367_v6 = vadd.f32 1.0, %v5548_v27  ;;  %5551 = vrcp.f32 %v707_v10  ;;  %v5550_v47 = vpop.eup %5549  ;;  %v2865_v57 = vsel %vm2864_vm3, 1, %v5665_v58 }
0x35c0   :  { %v3498_v48 = vsel %vm713_vm9, %v3497_v4, -inf  ;;  %v2028_v31 = vadd.f32 1.0, %v5550_v47 }
0x35c1   :  { %4160 = vmax.xlane.f32.xlu0 %v4159_v23  ;;  %5553 = vrcp.f32 %v1367_v6 }
0x35c2   :  { %5555 = vrcp.f32 %v2028_v31 }
0x35c5   :  { %4680 = vmax.xlane.f32.xlu0 %v4679_v24 }
0x35c9   :  { %3358 = vmax.xlane.f32.xlu0 %v3357_v40 }
0x35cc   :  { %v7410_v35 = vpop.eup %5551 }
0x35cd   :  { %3499 = vmax.xlane.f32.xlu0 %v3498_v48  ;;  %v873_v62 = vsub.f32 1.0, %v7410_v35 }
0x35ce   :  { %v7412_v25 = vpop.eup %5553 }
0x35cf   :  { %v1534_v55 = vsub.f32 1.0, %v7412_v25  ;;  %v7417_v5 = vpop.eup %5555 }
0x35d1   :  { %4821 = vmax.xlane.f32.xlu0 %v4820_v19 }
0x35de   :  { %v4020_v12 = vpop.xlane.xlu1 %4019 }
0x35df   :  { %v4021_v9 = vsub.f32 %v7351_v38, %v4020_v12 }
0x35e1   :  { %v4022_v24 = vmul.f32 1.442695, %v4021_v9 }
0x35e7   :  { %2867 = vperm.xlu0 %5398, %v2865_v57  }
0x35eb   :  { %5399 = vset.pattern.permute.xlu0 %v7536_v42 }
0x35ec   :  { %869 = vperm.xlu0 %5399, %v7410_v35  }
0x35f0   :  { %1537 = vperm.xlu0 %5399, %v1534_v55  }
0x35f4   :  { %2191 = vperm.xlu0 %5399, %v7417_v5  }
0x3646   :  { %v7420_v34 = vpop.xlane.xlu0 %2844 }
0x364a   :  { %v4161_v46 = vpop.xlane.xlu0 %4160 }
0x364b   :  { %v4162_v18 = vsub.f32 %v7381_v37, %v4161_v46  ;;  %v2195_v46 = vsub.f32 1.0, %v7417_v5  ;;  %v4937_v5 = vld [vmem:[%s7524_s2 + $0xa] sm:$0x3] }
0x364c   :  { %vm4186_vm4 = vcmp.gt.f32.partialorder %v4937_v5, 0.0 }
0x364d   :  { %v4163_v63 = vmul.f32 1.442695, %v4162_v18  ;;  %v4187_v18 = vsel %vm4186_vm4, 1, %v5665_v58 }
0x364e   :  { %v4681_v41 = vpop.xlane.xlu0 %4680 }
0x364f   :  { %v4682_v16 = vsub.f32 %v7391_v21, %v4681_v41 }
0x3652   :  { %v3359_v17 = vpop.xlane.xlu0 %3358 }
0x3653   :  { %v3360_v23 = vsub.f32 %v3356_v43, %v3359_v17  ;;  %v4683_v43 = vmul.f32 1.442695, %v4682_v16 }
0x3655   :  { %v3361_v50 = vmul.f32 1.442695, %v3360_v23 }
0x3656   :  { %v3500_v49 = vpop.xlane.xlu0 %3499 }
0x3657   :  { %5557 = vpow2.f32 %v3361_v50  ;;  %v3501_v8 = vsub.f32 %v3497_v4, %v3500_v49  ;;  %v4926_v4 = vmul.f32 -1.442695, %v7077_v26 }
0x3659   :  { %v3502_v44 = vmul.f32 1.442695, %v3501_v8 }
0x365a   :  { %v4822_v40 = vpop.xlane.xlu0 %4821 }
0x365b   :  { %5559 = vpow2.f32 %v3502_v44  ;;  %v4823_v38 = vsub.f32 %v4819_v11, %v4822_v40  ;;  %v4928_v44 = vld [vmem:[%s7524_s2 + $0x8] sm:$0x3] }
0x365c   :  { %5561 = vpow2.f32 %v4022_v24  ;;  %v4946_v24 = vld [vmem:[%s7524_s2 + $0xc] sm:$0x3]  ;;  %vm3525_vm6 = vcmp.gt.f32.partialorder %v4928_v44, 0.0 }
0x365d   :  { %5563 = vpow2.f32 %v4917_v54  ;;  %v4824_v33 = vmul.f32 1.442695, %v4823_v38  ;;  %vm4847_vm5 = vcmp.gt.f32.partialorder %v4946_v24, 0.0 }
0x365e   :  { %5565 = vpow2.f32 %v4163_v63  ;;  %v4848_v54 = vsel %vm4847_vm5, 1, %v5665_v58  ;;  %v3526_v63 = vsel %vm3525_vm6, 1, %v5665_v58 }
0x365f   :  { %5567 = vpow2.f32 %v4683_v43 }
0x3660   :  { %5569 = vpow2.f32 %v4926_v4 }
0x3661   :  { %5571 = vpow2.f32 %v4824_v33 }
0x3662   :  { %5573 = vpow2.f32 %v4935_v52  ;;  %v7470_v16 = vpop.permute.xlu0 %2867 }
0x3663   :  { %5575 = vpow2.f32 %v4944_v7  ;;  %vm2869_vm12 = vcmp.eq.s32.totalorder %v7470_v16, 1 }
0x3664   :  { %v7426_v45 = vpop.eup %5557 }
0x3665   :  { %v3363_v37 = vsel %vm713_vm9, %v7426_v45, 0.0 }
0x3666   :  { %3364 = vadd.xlane.f32.xlu1 %v3363_v37 }
0x3667   :  { %v870_v40 = vpop.permute.xlu0 %869 }
0x3668   :  { %v7432_v48 = vpop.eup %5559 }
0x3669   :  { %v3504_v21 = vsel %vm713_vm9, %v7432_v48, 0.0  ;;  %v7436_v11 = vpop.eup %5561 }
0x366a   :  { %3505 = vadd.xlane.f32.xlu0 %v3504_v21  ;;  %v5564_v26 = vpop.eup %5563  ;;  %v4024_v19 = vsel %vm713_vm9, %v7436_v11, 0.0 }
0x366b   :  { %v7441_v13 = vpop.eup %5565  ;;  %v2689_v3 = vadd.f32 1.0, %v5564_v26  ;;  %v1538_v43 = vpop.permute.xlu0 %1537 }
0x366c   :  { %v4165_v27 = vsel %vm713_vm9, %v7441_v13, 0.0  ;;  %v7445_v10 = vpop.eup %5567 }
0x366d   :  { %v5570_v6 = vpop.eup %5569  ;;  %5577 = vrcp.f32 %v2689_v3  ;;  %v4685_v2 = vsel %vm713_vm9, %v7445_v10, 0.0 }
0x366e   :  { %4025 = vadd.xlane.f32.xlu0 %v4024_v19  ;;  %v7450_v47 = vpop.eup %5571  ;;  %v3350_v57 = vadd.f32 1.0, %v5570_v6 }
0x366f   :  { %v5574_v31 = vpop.eup %5573  ;;  %v4826_v42 = vsel %vm713_vm9, %v7450_v47, 0.0  ;;  %v2192_v38 = vpop.permute.xlu0 %2191 }
0x3670   :  { %v4011_v55 = vadd.f32 1.0, %v5574_v31  ;;  %5579 = vrcp.f32 %v3350_v57  ;;  %v5576_v41 = vpop.eup %5575 }
0x3671   :  { %v4672_v35 = vadd.f32 1.0, %v5576_v41 }
0x3672   :  { %4166 = vadd.xlane.f32.xlu0 %v4165_v27  ;;  %5581 = vrcp.f32 %v4011_v55 }
0x3673   :  { %5583 = vrcp.f32 %v4672_v35 }
0x3674   :  { %5585 = vrcp.f32 %v6940_v0 }
0x3675   :  { %5587 = vrcp.f32 %v7032_v53 }
0x3676   :  { %4686 = vadd.xlane.f32.xlu0 %v4685_v2  ;;  %5589 = vrcp.f32 %v7034_v59 }
0x3677   :  { %876 = vperm.xlu1 %5400, %v873_v62   ;;  %5591 = vrcp.f32 %v7276_v30 }
0x3678   :  { %5593 = vrcp.f32 %v7278_v51 }
0x3679   :  { %5595 = vrcp.f32 %v7318_v61 }
0x367a   :  { %4827 = vadd.xlane.f32.xlu0 %v4826_v42  ;;  %v5578_v12 = vpop.eup %5577  ;;  %5597 = vrcp.f32 %v7331_v29 }
0x367b   :  { %1530 = vperm.xlu1 %5400, %v7412_v25   ;;  %v2856_v17 = vsub.f32 1.0, %v5578_v12  ;;  %5599 = vrcp.f32 %v7420_v34 }
0x367d   :  { %v5580_v23 = vpop.eup %5579 }
0x367e   :  { %v3517_v8 = vsub.f32 1.0, %v5580_v23 }
0x367f   :  { %2198 = vperm.xlu1 %5400, %v2195_v46   ;;  %v5582_v9 = vpop.eup %5581 }
0x3680   :  { %v4178_v50 = vsub.f32 1.0, %v5582_v9  ;;  %v5584_v49 = vpop.eup %5583 }
0x3681   :  { %v4839_v25 = vsub.f32 1.0, %v5584_v49 }
0x3683   :  { %2852 = vperm.xlu1 %5400, %v5578_v12  }
0x3687   :  { %2859 = vperm.xlu1 %5400, %v2856_v17  }
0x368b   :  { %3513 = vperm.xlu1 %5400, %v5580_v23  }
0x368f   :  { %4174 = vperm.xlu1 %5400, %v5582_v9  }
0x3690   :  { %4181 = vperm.xlu0 %5399, %v4178_v50  }
0x3693   :  { %4835 = vperm.xlu1 %5400, %v5584_v49  }
0x3694   :  { %5402 = vset.pattern.permute.xlu0 %v5665_v58 }
0x3697   :  { %4842 = vperm.xlu1 %5400, %v4839_v25  }
0x369b   :  { %3520 = vperm.xlu1 %5400, %v3517_v8  }
0x369f   :  { %5401 = vset.pattern.permute.xlu1 %v5665_v58  ;;  %v5586_v58 = vpop.eup %5585 }
0x36a0   :  { %4189 = vperm.xlu1 %5401, %v4187_v18   ;;  %v5588_v33 = vpop.eup %5587  ;;  %v724_v30 = vmul.f32 %v5586_v58, %v6915_v14 }
0x36a1   :  { %v5590_v0 = vpop.eup %5589  ;;  %v865_v51 = vmul.f32 %v5588_v33, %v7013_v60 }
0x36a2   :  { %v5592_v53 = vpop.eup %5591  ;;  %v1384_v61 = vmul.f32 %v5590_v0, %v7021_v1 }
0x36a3   :  { %v5594_v52 = vpop.eup %5593  ;;  %v1525_v26 = vmul.f32 %v5592_v53, %v7202_v22  ;;  %v872_v29 = vmul.f32 %v870_v40, %v865_v51 }
0x36a4   :  { %4850 = vperm.xlu1 %5401, %v4848_v54   ;;  %v5596_v7 = vpop.eup %5595  ;;  %v1540_v27 = vmul.f32 %v1538_v43, %v1384_v61  ;;  %v2045_v14 = vmul.f32 %v5594_v52, %v7270_v39 }
0x36a5   :  { %v2186_v34 = vmul.f32 %v5596_v7, %v7301_v28  ;;  %v5598_v55 = vpop.eup %5597 }
0x36a6   :  { %v5600_v35 = vpop.eup %5599  ;;  %v2706_v9 = vmul.f32 %v5598_v55, %v7322_v32 }
0x36a7   :  { %v2194_v1 = vmul.f32 %v2192_v38, %v2186_v34  ;;  %v2847_v23 = vmul.f32 %v5600_v35, %v7371_v56 }
0x36a8   :  { %3528 = vperm.xlu1 %5401, %v3526_v63  }
0x36ef   :  { %v7478_v4 = vpop.xlane.xlu1 %3364 }
0x36f3   :  { %v877_v37 = vpop.permute.xlu1 %876  ;;  %v3506_v59 = vpop.xlane.xlu0 %3505 }
0x36f4   :  { %v879_v21 = vmul.f32 %v877_v37, %v724_v30 }
0x36f6   :  { %v880_v2 = vadd.f32 %v879_v21, %v872_v29 }
0x36f7   :  { %v1531_v19 = vpop.permute.xlu1 %1530  ;;  %v4026_v3 = vpop.xlane.xlu0 %4025 }
0x36f8   :  { %v1533_v6 = vmul.f32 %v1531_v19, %v1525_v26  ;;  %v887_v46 = vsel %vm886_vm8, %v880_v2, %v724_v30 }
0x36fa   :  { %v1541_v62 = vadd.f32 %v1540_v27, %v1533_v6 }
0x36fb   :  { %v2199_v60 = vpop.permute.xlu1 %2198  ;;  %v4167_v31 = vpop.xlane.xlu0 %4166 }
0x36fc   :  { %v1548_v57 = vsel %vm1547_vm7, %v1541_v62, %v1384_v61  ;;  %v2201_v42 = vmul.f32 %v2199_v60, %v2045_v14  ;;  %5601 = vrcp.f32 %v4167_v31 }
0x36fd   :  { %v4855_v22 = vrot.slane %v1548_v57, 6 }
0x36fe   :  { %v2202_v41 = vadd.f32 %v2201_v42, %v2194_v1 }
0x36ff   :  { %v4869_v28 = vsel %vm713_vm9, %v887_v46, %v4855_v22  ;;  %v2853_v12 = vpop.permute.xlu1 %2852  ;;  %v4687_v39 = vpop.xlane.xlu0 %4686 }
0x3700   :  { %v2209_v17 = vsel %vm2208_vm10, %v2202_v41, %v2045_v14  ;;  %v2855_v49 = vmul.f32 %v2853_v12, %v2847_v23 }
0x3701   :  { %v4858_v36 = vrot.slane %v2209_v17, 4 }
0x3703   :  { %v2860_v50 = vpop.permute.xlu1 %2859  ;;  %v4871_v15 = vsel %vm4870_vm11, %v4869_v28, %v4858_v36  ;;  %v4828_v5 = vpop.xlane.xlu0 %4827 }
0x3704   :  { %v2862_v25 = vmul.f32 %v2860_v50, %v2706_v9  ;;  %5603 = vrcp.f32 %v4828_v5 }
0x3705   :  { %5605 = vrcp.f32 %v4026_v3 }
0x3706   :  { %v2863_v8 = vadd.f32 %v2862_v25, %v2855_v49  ;;  %5607 = vrcp.f32 %v4687_v39 }
0x3707   :  { %v3514_v20 = vpop.permute.xlu1 %3513  ;;  %5609 = vrcp.f32 %v7478_v4 }
0x3708   :  { %v2870_v24 = vsel %vm2869_vm12, %v2863_v8, %v2706_v9  ;;  %5611 = vrcp.f32 %v3506_v59 }
0x3709   :  { %v4861_v18 = vrot.slane %v2870_v24, 2  ;;  %v5602_v63 = vpop.eup %5601 }
0x370a   :  { %v4169_v38 = vmul.f32 %v5602_v63, %v7441_v13 }
0x370b   :  { %v4175_v56 = vpop.permute.xlu1 %4174  ;;  %v4873_v44 = vsel %vm4872_vm13, %v4871_v15, %v4861_v18  ;;  %v4182_v33 = vpop.permute.xlu0 %4181 }
0x370c   :  { %4876 = vst [vmem:[%s7525_s14] sm:$0xff] %v4873_v44  ;;  %v4177_v52 = vmul.f32 %v4175_v56, %v4169_v38 }
0x370f   :  { %v4836_v32 = vpop.permute.xlu1 %4835 }
0x3711   :  { %v5604_v16 = vpop.eup %5603 }
0x3712   :  { %v5606_v40 = vpop.eup %5605  ;;  %v4830_v0 = vmul.f32 %v5604_v16, %v7450_v47 }
0x3713   :  { %v4843_v54 = vpop.permute.xlu1 %4842  ;;  %v5608_v43 = vpop.eup %5607  ;;  %v4028_v53 = vmul.f32 %v5606_v40, %v7436_v11 }
0x3714   :  { %v5610_v37 = vpop.eup %5609  ;;  %v4689_v30 = vmul.f32 %v5608_v43, %v7445_v10  ;;  %v4838_v61 = vmul.f32 %v4836_v32, %v4830_v0 }
0x3715   :  { %v4184_v4 = vmul.f32 %v4182_v33, %v4028_v53  ;;  %v5612_v51 = vpop.eup %5611  ;;  %v3367_v26 = vmul.f32 %v5610_v37, %v7426_v45 }
0x3716   :  { %v4845_v21 = vmul.f32 %v4843_v54, %v4689_v30  ;;  %v3508_v13 = vmul.f32 %v5612_v51, %v7432_v48 }
0x3717   :  { %v3521_v58 = vpop.permute.xlu1 %3520  ;;  %v4185_v7 = vadd.f32 %v4184_v4, %v4177_v52 }
0x3718   :  { %v3523_v19 = vmul.f32 %v3521_v58, %v3367_v26  ;;  %v4846_v47 = vadd.f32 %v4845_v21, %v4838_v61  ;;  %v3516_v11 = vmul.f32 %v3514_v20, %v3508_v13 }
0x371a   :  { %v3524_v10 = vadd.f32 %v3523_v19, %v3516_v11 }
0x371b   :  { %v4190_v59 = vpop.permute.xlu1 %4189 }
0x371c   :  { %vm4191_vm14 = vcmp.eq.s32.totalorder %v4190_v59, 1 }
0x371d   :  { %v4192_v29 = vsel %vm4191_vm14, %v4185_v7, %v4028_v53 }
0x371e   :  { %v4864_v34 = vrot.slane %v4192_v29, 6 }
0x371f   :  { %v4851_v3 = vpop.permute.xlu1 %4850 }
0x3720   :  { %vm4852_vm15 = vcmp.eq.s32.totalorder %v4851_v3, 1 }
0x3721   :  { %v4853_v27 = vsel %vm4852_vm15, %v4846_v47, %v4689_v30 }
0x3722   :  { %v4867_v2 = vrot.slane %v4853_v27, 4 }
0x3723   :  { %v3529_v6 = vpop.permute.xlu1 %3528 }
0x3724   :  { %vm3530_vm0 = vcmp.eq.s32.totalorder %v3529_v6, 1 }
0x3725   :  { %v3531_v62 = vsel %vm3530_vm0, %v3524_v10, %v3367_v26 }
0x3726   :  { %v4874_v14 = vsel %vm713_vm9, %v3531_v62, %v4864_v34 }
0x3727   :  { %v4875_v45 = vsel %vm4870_vm11, %v4874_v14, %v4867_v2 }
0x3728   :  { %4877 = vst [vmem:[%s7525_s14 + $0x8] sm:$0x3f] %v4875_v45 }

</bundles_post_ra>
